<compile_context>
chip_gen: v5e
topology: v5e:2x2
jax: 0.10.0
libtpu: 0.0.40
codegen_flags: <defaults>
</compile_context>

<pallas_src>
import numpy as np
import jax
import jax.numpy as jnp
from jax import lax
from jax.experimental import pallas as pl
from jax.experimental.pallas import tpu as pltpu

EPS = 1e-5

# Logical sizes from the PyTorch module and their lane-padded counterparts.
H1, H2, OUT = 500, 50, 1
H1_P, H2_P, OUT_P = 512, 128, 8       # OUT padded only to 8 (narrow output store)
LANE, SUBLANE = 128, 8


def _round_up(n, m):
    return (n + m - 1) // m * m


def _pad2(a, rows, cols):
    r, c = a.shape
    return jnp.pad(a, ((0, rows - r), (0, cols - c)))


# ---------------------------------------------------------------------------
# Kernel factory: one batch tile per grid step.  Weights / BN params use
# constant index_maps so they stay VMEM-resident for the whole grid.  Padded
# feature columns are zero in every weight/bias, so they stay zero through the
# matmuls, BN and ReLU (exact).  Rows past the logical batch (last tile only)
# are excluded from the BN statistics via an in-kernel iota mask.
# ---------------------------------------------------------------------------
def _make_kernel(n_rows, tb):
    ragged = (n_rows % tb) != 0

    def kernel(
        x_ref,
        # Layer1 (in -> 500): fused [dense1 | downsample], bn1, dense2, bn2
        w1cat_ref, bd1_ref, g11_ref, be11_ref, w1b_ref, g12_ref, be12_ref,
        # Layer2 (500 -> 50): fused [dense1 | downsample], bn1, dense2, bn2
        w2cat_ref, bd2_ref, g21_ref, be21_ref, w2b_ref, g22_ref, be22_ref,
        # predict (50 -> 1, lane-padded to 8)
        wp_ref, bp_ref,
        o_ref,
    ):
        if ragged:
            i = pl.program_id(0)
            valid = jnp.minimum(n_rows - i * tb, tb)          # scalar: #real rows
            row_id = lax.broadcasted_iota(jnp.int32, (tb, 1), 0)
            mask = row_id < valid                             # (tb, 1) bool
            inv_n = 1.0 / valid.astype(jnp.float32)           # scalar (no XLU reduce)

            def mask_rows(v):
                return jnp.where(mask, v, 0)
        else:
            inv_n = 1.0 / float(tb)

            def mask_rows(v):
                return v

        xin = mask_rows(x_ref[...])                           # bf16; pad rows -> 0

        def bn(h, gamma, beta):
            # Training-mode BatchNorm1d fused to a single scale/shift.  Padded
            # rows of h are zero, so the sums only see the valid rows.
            s = jnp.sum(h, axis=0, keepdims=True)
            s2 = jnp.sum(h * h, axis=0, keepdims=True)
            mean = s * inv_n
            var = jnp.maximum(s2 * inv_n - mean * mean, 0.0)  # biased variance
            scale = gamma * lax.rsqrt(var + EPS)              # EUP rsqrt (free slot)
            shift = beta - mean * scale
            return h * scale + shift

        def block(inp_bf16, wcat_ref, bd_ref, g1_ref, be1_ref,
                  wb_ref, g2_ref, be2_ref, nout):
            # Fused main-path + downsample matmul over the shared LHS: one
            # wide-N bf16 dot, sliced at the tile-aligned `nout` lane boundary.
            hcat = jnp.dot(inp_bf16, wcat_ref[...],
                           preferred_element_type=jnp.float32)   # (tb, 2*nout) f32
            h = hcat[:, :nout]
            identity = hcat[:, nout:] + bd_ref[...]
            # Pre-BN linear biases omitted: BN(h + b) == BN(h) in training mode.
            a = mask_rows(jnp.maximum(bn(h, g1_ref[...], be1_ref[...]), 0.0))
            h2 = jnp.dot(a.astype(jnp.bfloat16), wb_ref[...],
                         preferred_element_type=jnp.float32)
            y = bn(h2, g2_ref[...], be2_ref[...])
            return mask_rows(jnp.maximum(y + identity, 0.0))

        h1 = block(xin, w1cat_ref, bd1_ref, g11_ref, be11_ref,
                   w1b_ref, g12_ref, be12_ref, H1_P)
        h2 = block(h1.astype(jnp.bfloat16), w2cat_ref, bd2_ref, g21_ref, be21_ref,
                   w2b_ref, g22_ref, be22_ref, H2_P)
        # Predict head on an 8-lane padded output; the real result is column 0.
        o_ref[...] = jnp.dot(h2.astype(jnp.bfloat16), wp_ref[...],
                             preferred_element_type=jnp.float32) + bp_ref[...]

    return kernel


def init_params(key, in_feature):
    """Logical (unpadded) parameters mirroring the PyTorch module.

    Linear weights: kaiming_uniform(mode='fan_in'), stored transposed as (in, out).
    Linear biases: U(-1/sqrt(fan_in), +1/sqrt(fan_in)).  BatchNorm1d: gamma=1, beta=0.
    (Pre-BN biases are still generated — the reference uses them — but the kernel
    drops them because training-mode BN cancels them exactly.)
    """
    def linear(k, fan_in, fan_out):
        kw, kb = jax.random.split(k)
        wb = np.sqrt(6.0 / fan_in)
        bb = 1.0 / np.sqrt(fan_in)
        w = jax.random.uniform(kw, (fan_in, fan_out), jnp.float32, -wb, wb)
        b = jax.random.uniform(kb, (1, fan_out), jnp.float32, -bb, bb)
        return w, b

    def bn(feat):
        return jnp.ones((1, feat), jnp.float32), jnp.zeros((1, feat), jnp.float32)

    keys = jax.random.split(key, 8)
    w1a, b1a = linear(keys[0], in_feature, H1)
    g11, be11 = bn(H1)
    w1b, b1b = linear(keys[1], H1, H1)
    g12, be12 = bn(H1)
    wd1, bd1 = linear(keys[2], in_feature, H1)    # downsample (in != 500)
    w2a, b2a = linear(keys[3], H1, H2)
    g21, be21 = bn(H2)
    w2b, b2b = linear(keys[4], H2, H2)
    g22, be22 = bn(H2)
    wd2, bd2 = linear(keys[5], H1, H2)            # downsample (500 != 50)
    wp, bp = linear(keys[6], H2, OUT)

    return [
        w1a, b1a, g11, be11, w1b, b1b, g12, be12, wd1, bd1,
        w2a, b2a, g21, be21, w2b, b2b, g22, be22, wd2, bd2,
        wp, bp,
    ]


def pack_params(params, in_feature):
    """Pad to lane multiples, fuse main-path/downsample weights, cast W to bf16.

    Done once on the host; zero-padded columns/rows keep the math exact.
    """
    (w1a, _b1a, g11, be11, w1b, _b1b, g12, be12, wd1, bd1,
     w2a, _b2a, g21, be21, w2b, _b2b, g22, be22, wd2, bd2,
     wp, bp) = params
    bf = jnp.bfloat16

    w1cat = jnp.concatenate([_pad2(w1a, in_feature, H1_P),
                             _pad2(wd1, in_feature, H1_P)], axis=1).astype(bf)
    w2cat = jnp.concatenate([_pad2(w2a, H1_P, H2_P),
                             _pad2(wd2, H1_P, H2_P)], axis=1).astype(bf)
    return [
        w1cat, _pad2(bd1, 1, H1_P), _pad2(g11, 1, H1_P), _pad2(be11, 1, H1_P),
        _pad2(w1b, H1_P, H1_P).astype(bf), _pad2(g12, 1, H1_P), _pad2(be12, 1, H1_P),
        w2cat, _pad2(bd2, 1, H2_P), _pad2(g21, 1, H2_P), _pad2(be21, 1, H2_P),
        _pad2(w2b, H2_P, H2_P).astype(bf), _pad2(g22, 1, H2_P), _pad2(be22, 1, H2_P),
        _pad2(wp, H2_P, OUT_P).astype(bf), _pad2(bp, 1, OUT_P),
    ]


def resnet_small_forward(x, packed_params, *, batch_tile=1024):
    """ResNetSmall forward on packed (padded/fused/bf16) parameters.

    Each `tb`-row tile is its own BN mini-batch; for B <= batch_tile (single tile,
    as in the demo) this matches PyTorch whole-batch training-mode BN exactly.
    """
    # TODO(synk): exact full-batch BN across multiple batch tiles would need a
    # two-pass (stats, then normalize) grid; with B <= batch_tile it is exact.
    B, fin = x.shape
    tb = min(_round_up(batch_tile, SUBLANE), _round_up(B, SUBLANE))
    n_tiles = pl.cdiv(B, tb)

    x_bf = x.astype(jnp.bfloat16)     # bf16 MXU operand; no host-side padding pass

    def tiled(shape):                 # block index follows the batch-grid index
        return pl.BlockSpec(shape, lambda i: (i, 0))

    def resident(shape):              # constant block -> VMEM-resident, DMA'd once
        # TODO(synk): pipeline_mode=pl.Buffered(1) would single-buffer these
        # (~1 MB saved on v7x); left at the default since VMEM headroom is ample.
        return pl.BlockSpec(shape, lambda i: (0, 0))

    in_specs = [tiled((tb, fin))] + [resident(tuple(p.shape)) for p in packed_params]
    out_specs = tiled((tb, OUT_P))

    rows = n_tiles * tb
    flops = 2 * rows * (fin * 2 * H1_P + H1_P * H1_P
                        + H1_P * 2 * H2_P + H2_P * H2_P + H2_P * OUT_P)
    param_bytes = sum(int(np.prod(p.shape)) * p.dtype.itemsize for p in packed_params)
    bytes_accessed = B * fin * 2 + B * OUT_P * 4 + param_bytes
    cost = pl.CostEstimate(
        flops=flops,
        transcendentals=n_tiles * 2 * (H1_P + H2_P),   # rsqrt per BN feature
        bytes_accessed=bytes_accessed,
    )

    out = pl.pallas_call(
        _make_kernel(B, tb),
        out_shape=jax.ShapeDtypeStruct((B, OUT_P), jnp.float32),
        grid_spec=pltpu.PrefetchScalarGridSpec(
            num_scalar_prefetch=0,
            grid=(n_tiles,),
            in_specs=in_specs,
            out_specs=out_specs,
        ),
        compiler_params=pltpu.CompilerParams(
            dimension_semantics=("parallel",),          # megacore split when grid > 1
            vmem_limit_bytes=32 * 1024 * 1024,          # fits v5e/v6e/v7x budgets
        ),
        cost_estimate=cost,
    )(x_bf, *packed_params)

    return out[:, :OUT]


def resnet_small_reference(x, params):
    """Pure-JAX f32 reference with the original PyTorch math (two-pass BN, biases)."""
    (w1a, b1a, g11, be11, w1b, b1b, g12, be12, wd1, bd1,
     w2a, b2a, g21, be21, w2b, b2b, g22, be22, wd2, bd2,
     wp, bp) = params

    def bn(h, g, b):
        mean = jnp.mean(h, axis=0, keepdims=True)
        var = jnp.mean((h - mean) ** 2, axis=0, keepdims=True)
        return (h - mean) * lax.rsqrt(var + EPS) * g + b

    def block(inp, wa, ba, g1, be1, wb, bb, g2, be2, wd, bd):
        out = inp @ wa + ba
        out = jnp.maximum(bn(out, g1, be1), 0.0)
        out = out @ wb + bb
        out = bn(out, g2, be2)
        return jnp.maximum(out + (inp @ wd + bd), 0.0)

    h = block(x, w1a, b1a, g11, be11, w1b, b1b, g12, be12, wd1, bd1)
    h = block(h, w2a, b2a, g21, be21, w2b, b2b, g22, be22, wd2, bd2)
    return h @ wp + bp


if __name__ == "__main__":
    IN_FEATURE = 64
    key = jax.random.PRNGKey(0)
    kx, kp, kx2 = jax.random.split(key, 3)
    params = init_params(kp, IN_FEATURE)
    packed = pack_params(params, IN_FEATURE)

    # Case 1: batch multiple of 8, single tile -> exact full-batch BN semantics.
    x = jax.random.normal(kx, (32, IN_FEATURE), jnp.float32)
    out = jax.block_until_ready(resnet_small_forward(x, packed))
    ref = resnet_small_reference(x, params)
    assert out.shape == (32, 1), out.shape
    # bf16 MXU operands (f32 accumulation) vs an all-f32 reference -> relaxed tol.
    np.testing.assert_allclose(np.asarray(out), np.asarray(ref), rtol=3e-2, atol=3e-2)

    # Case 2: ragged batch (exercises the in-kernel row mask in the BN statistics).
    x2 = jax.random.normal(kx2, (20, IN_FEATURE), jnp.float32)
    out2 = jax.block_until_ready(resnet_small_forward(x2, packed))
    ref2 = resnet_small_reference(x2, params)
    assert out2.shape == (20, 1), out2.shape
    np.testing.assert_allclose(np.asarray(out2), np.asarray(ref2), rtol=3e-2, atol=3e-2)

    print("KERNEL_OK")
</pallas_src>

<mosaic_0001>
module attributes {stable_mosaic.version = 11 : i64} {
  func.func @kernel(%arg0: i32, %arg1: memref<32x64xbf16, #tpu.memory_space<vmem>>, %arg2: memref<64x1024xbf16, #tpu.memory_space<vmem>>, %arg3: memref<1x512xf32, #tpu.memory_space<vmem>>, %arg4: memref<1x512xf32, #tpu.memory_space<vmem>>, %arg5: memref<1x512xf32, #tpu.memory_space<vmem>>, %arg6: memref<512x512xbf16, #tpu.memory_space<vmem>>, %arg7: memref<1x512xf32, #tpu.memory_space<vmem>>, %arg8: memref<1x512xf32, #tpu.memory_space<vmem>>, %arg9: memref<512x256xbf16, #tpu.memory_space<vmem>>, %arg10: memref<1x128xf32, #tpu.memory_space<vmem>>, %arg11: memref<1x128xf32, #tpu.memory_space<vmem>>, %arg12: memref<1x128xf32, #tpu.memory_space<vmem>>, %arg13: memref<128x128xbf16, #tpu.memory_space<vmem>>, %arg14: memref<1x128xf32, #tpu.memory_space<vmem>>, %arg15: memref<1x128xf32, #tpu.memory_space<vmem>>, %arg16: memref<128x8xbf16, #tpu.memory_space<vmem>>, %arg17: memref<1x8xf32, #tpu.memory_space<vmem>>, %arg18: memref<32x8xf32, #tpu.memory_space<vmem>>) attributes {dimension_semantics = [#tpu.dimension_semantics<parallel>], iteration_bounds = array<i64: 1>, scalar_prefetch = 0 : i64, scratch_operands = 0 : i64, tpu.core_type = #tpu.core_type<tc>, window_params = [{transform_indices = @transform_0, window_bounds = array<i64: 32, 64>}, {pipeline_mode = #tpu.pipeline_mode<synchronous>, transform_indices = @transform_1, window_bounds = array<i64: 64, 1024>}, {pipeline_mode = #tpu.pipeline_mode<synchronous>, transform_indices = @transform_2, window_bounds = array<i64: 1, 512>}, {pipeline_mode = #tpu.pipeline_mode<synchronous>, transform_indices = @transform_3, window_bounds = array<i64: 1, 512>}, {pipeline_mode = #tpu.pipeline_mode<synchronous>, transform_indices = @transform_4, window_bounds = array<i64: 1, 512>}, {pipeline_mode = #tpu.pipeline_mode<synchronous>, transform_indices = @transform_5, window_bounds = array<i64: 512, 512>}, {pipeline_mode = #tpu.pipeline_mode<synchronous>, transform_indices = @transform_6, window_bounds = array<i64: 1, 512>}, {pipeline_mode = #tpu.pipeline_mode<synchronous>, transform_indices = @transform_7, window_bounds = array<i64: 1, 512>}, {pipeline_mode = #tpu.pipeline_mode<synchronous>, transform_indices = @transform_8, window_bounds = array<i64: 512, 256>}, {pipeline_mode = #tpu.pipeline_mode<synchronous>, transform_indices = @transform_9, window_bounds = array<i64: 1, 128>}, {pipeline_mode = #tpu.pipeline_mode<synchronous>, transform_indices = @transform_10, window_bounds = array<i64: 1, 128>}, {pipeline_mode = #tpu.pipeline_mode<synchronous>, transform_indices = @transform_11, window_bounds = array<i64: 1, 128>}, {pipeline_mode = #tpu.pipeline_mode<synchronous>, transform_indices = @transform_12, window_bounds = array<i64: 128, 128>}, {pipeline_mode = #tpu.pipeline_mode<synchronous>, transform_indices = @transform_13, window_bounds = array<i64: 1, 128>}, {pipeline_mode = #tpu.pipeline_mode<synchronous>, transform_indices = @transform_14, window_bounds = array<i64: 1, 128>}, {pipeline_mode = #tpu.pipeline_mode<synchronous>, transform_indices = @transform_15, window_bounds = array<i64: 128, 8>}, {pipeline_mode = #tpu.pipeline_mode<synchronous>, transform_indices = @transform_16, window_bounds = array<i64: 1, 8>}, {transform_indices = @transform_17, window_bounds = array<i64: 32, 8>}]} {
    %c0 = arith.constant 0 : index
    %c0_0 = arith.constant 0 : index
    %0 = vector.load %arg1[%c0, %c0_0] : memref<32x64xbf16, #tpu.memory_space<vmem>>, vector<32x64xbf16>
    %c0_1 = arith.constant 0 : index
    %c0_2 = arith.constant 0 : index
    %1 = vector.load %arg2[%c0_1, %c0_2] : memref<64x1024xbf16, #tpu.memory_space<vmem>>, vector<64x1024xbf16>
    %cst = arith.constant dense<0.000000e+00> : vector<32x1024xf32>
    %2 = tpu.matmul %0, %1, %cst {dimension_numbers = #tpu.dot_dimension_numbers<[1], [0], [0], [1], [0, 0, 1, 1], [], []>} : vector<32x64xbf16>, vector<64x1024xbf16>, vector<32x1024xf32> -> vector<32x1024xf32>
    %3 = vector.extract_strided_slice %2 {offsets = [0, 0], sizes = [32, 512], strides = [1, 1]} : vector<32x1024xf32> to vector<32x512xf32>
    %4 = vector.extract_strided_slice %2 {offsets = [0, 512], sizes = [32, 512], strides = [1, 1]} : vector<32x1024xf32> to vector<32x512xf32>
    %c0_3 = arith.constant 0 : index
    %c0_4 = arith.constant 0 : index
    %5 = vector.load %arg3[%c0_3, %c0_4] : memref<1x512xf32, #tpu.memory_space<vmem>>, vector<1x512xf32>
    %6 = vector.broadcast %5 : vector<1x512xf32> to vector<32x512xf32>
    %7 = arith.addf %4, %6 : vector<32x512xf32>
    %c0_5 = arith.constant 0 : index
    %c0_6 = arith.constant 0 : index
    %8 = vector.load %arg4[%c0_5, %c0_6] : memref<1x512xf32, #tpu.memory_space<vmem>>, vector<1x512xf32>
    %c0_7 = arith.constant 0 : index
    %c0_8 = arith.constant 0 : index
    %9 = vector.load %arg5[%c0_7, %c0_8] : memref<1x512xf32, #tpu.memory_space<vmem>>, vector<1x512xf32>
    %cst_9 = arith.constant dense<0.000000e+00> : vector<512xf32>
    %10 = vector.multi_reduction <add>, %3, %cst_9 [0] : vector<32x512xf32> to vector<512xf32>
    %11 = vector.shape_cast %10 : vector<512xf32> to vector<1x512xf32>
    %12 = arith.mulf %3, %3 : vector<32x512xf32>
    %cst_10 = arith.constant dense<0.000000e+00> : vector<512xf32>
    %13 = vector.multi_reduction <add>, %12, %cst_10 [0] : vector<32x512xf32> to vector<512xf32>
    %14 = vector.shape_cast %13 : vector<512xf32> to vector<1x512xf32>
    %cst_11 = arith.constant 3.125000e-02 : f32
    %15 = vector.broadcast %cst_11 : f32 to vector<1x512xf32>
    %16 = arith.mulf %11, %15 : vector<1x512xf32>
    %cst_12 = arith.constant 3.125000e-02 : f32
    %17 = vector.broadcast %cst_12 : f32 to vector<1x512xf32>
    %18 = arith.mulf %14, %17 : vector<1x512xf32>
    %19 = arith.mulf %16, %16 : vector<1x512xf32>
    %20 = arith.subf %18, %19 : vector<1x512xf32>
    %cst_13 = arith.constant 0.000000e+00 : f32
    %21 = vector.broadcast %cst_13 : f32 to vector<1x512xf32>
    %22 = arith.maximumf %20, %21 : vector<1x512xf32>
    %cst_14 = arith.constant 9.99999974E-6 : f32
    %23 = vector.broadcast %cst_14 : f32 to vector<1x512xf32>
    %24 = arith.addf %22, %23 : vector<1x512xf32>
    %25 = math.rsqrt %24 : vector<1x512xf32>
    %26 = arith.mulf %8, %25 : vector<1x512xf32>
    %27 = arith.mulf %16, %26 : vector<1x512xf32>
    %28 = arith.subf %9, %27 : vector<1x512xf32>
    %29 = vector.broadcast %26 : vector<1x512xf32> to vector<32x512xf32>
    %30 = arith.mulf %3, %29 : vector<32x512xf32>
    %31 = vector.broadcast %28 : vector<1x512xf32> to vector<32x512xf32>
    %32 = arith.addf %30, %31 : vector<32x512xf32>
    %cst_15 = arith.constant 0.000000e+00 : f32
    %33 = vector.broadcast %cst_15 : f32 to vector<32x512xf32>
    %34 = arith.maximumf %32, %33 : vector<32x512xf32>
    %35 = arith.truncf %34 : vector<32x512xf32> to vector<32x512xbf16>
    %c0_16 = arith.constant 0 : index
    %c0_17 = arith.constant 0 : index
    %36 = vector.load %arg6[%c0_16, %c0_17] : memref<512x512xbf16, #tpu.memory_space<vmem>>, vector<512x512xbf16>
    %cst_18 = arith.constant dense<0.000000e+00> : vector<32x512xf32>
    %37 = tpu.matmul %35, %36, %cst_18 {dimension_numbers = #tpu.dot_dimension_numbers<[1], [0], [0], [1], [0, 0, 1, 1], [], []>} : vector<32x512xbf16>, vector<512x512xbf16>, vector<32x512xf32> -> vector<32x512xf32>
    %c0_19 = arith.constant 0 : index
    %c0_20 = arith.constant 0 : index
    %38 = vector.load %arg7[%c0_19, %c0_20] : memref<1x512xf32, #tpu.memory_space<vmem>>, vector<1x512xf32>
    %c0_21 = arith.constant 0 : index
    %c0_22 = arith.constant 0 : index
    %39 = vector.load %arg8[%c0_21, %c0_22] : memref<1x512xf32, #tpu.memory_space<vmem>>, vector<1x512xf32>
    %cst_23 = arith.constant dense<0.000000e+00> : vector<512xf32>
    %40 = vector.multi_reduction <add>, %37, %cst_23 [0] : vector<32x512xf32> to vector<512xf32>
    %41 = vector.shape_cast %40 : vector<512xf32> to vector<1x512xf32>
    %42 = arith.mulf %37, %37 : vector<32x512xf32>
    %cst_24 = arith.constant dense<0.000000e+00> : vector<512xf32>
    %43 = vector.multi_reduction <add>, %42, %cst_24 [0] : vector<32x512xf32> to vector<512xf32>
    %44 = vector.shape_cast %43 : vector<512xf32> to vector<1x512xf32>
    %cst_25 = arith.constant 3.125000e-02 : f32
    %45 = vector.broadcast %cst_25 : f32 to vector<1x512xf32>
    %46 = arith.mulf %41, %45 : vector<1x512xf32>
    %cst_26 = arith.constant 3.125000e-02 : f32
    %47 = vector.broadcast %cst_26 : f32 to vector<1x512xf32>
    %48 = arith.mulf %44, %47 : vector<1x512xf32>
    %49 = arith.mulf %46, %46 : vector<1x512xf32>
    %50 = arith.subf %48, %49 : vector<1x512xf32>
    %cst_27 = arith.constant 0.000000e+00 : f32
    %51 = vector.broadcast %cst_27 : f32 to vector<1x512xf32>
    %52 = arith.maximumf %50, %51 : vector<1x512xf32>
    %cst_28 = arith.constant 9.99999974E-6 : f32
    %53 = vector.broadcast %cst_28 : f32 to vector<1x512xf32>
    %54 = arith.addf %52, %53 : vector<1x512xf32>
    %55 = math.rsqrt %54 : vector<1x512xf32>
    %56 = arith.mulf %38, %55 : vector<1x512xf32>
    %57 = arith.mulf %46, %56 : vector<1x512xf32>
    %58 = arith.subf %39, %57 : vector<1x512xf32>
    %59 = vector.broadcast %56 : vector<1x512xf32> to vector<32x512xf32>
    %60 = arith.mulf %37, %59 : vector<32x512xf32>
    %61 = vector.broadcast %58 : vector<1x512xf32> to vector<32x512xf32>
    %62 = arith.addf %60, %61 : vector<32x512xf32>
    %63 = arith.addf %62, %7 : vector<32x512xf32>
    %cst_29 = arith.constant 0.000000e+00 : f32
    %64 = vector.broadcast %cst_29 : f32 to vector<32x512xf32>
    %65 = arith.maximumf %63, %64 : vector<32x512xf32>
    %66 = arith.truncf %65 : vector<32x512xf32> to vector<32x512xbf16>
    %c0_30 = arith.constant 0 : index
    %c0_31 = arith.constant 0 : index
    %67 = vector.load %arg9[%c0_30, %c0_31] : memref<512x256xbf16, #tpu.memory_space<vmem>>, vector<512x256xbf16>
    %cst_32 = arith.constant dense<0.000000e+00> : vector<32x256xf32>
    %68 = tpu.matmul %66, %67, %cst_32 {dimension_numbers = #tpu.dot_dimension_numbers<[1], [0], [0], [1], [0, 0, 1, 1], [], []>} : vector<32x512xbf16>, vector<512x256xbf16>, vector<32x256xf32> -> vector<32x256xf32>
    %69 = vector.extract_strided_slice %68 {offsets = [0, 0], sizes = [32, 128], strides = [1, 1]} : vector<32x256xf32> to vector<32x128xf32>
    %70 = vector.extract_strided_slice %68 {offsets = [0, 128], sizes = [32, 128], strides = [1, 1]} : vector<32x256xf32> to vector<32x128xf32>
    %c0_33 = arith.constant 0 : index
    %c0_34 = arith.constant 0 : index
    %71 = vector.load %arg10[%c0_33, %c0_34] : memref<1x128xf32, #tpu.memory_space<vmem>>, vector<1x128xf32>
    %72 = vector.broadcast %71 : vector<1x128xf32> to vector<32x128xf32>
    %73 = arith.addf %70, %72 : vector<32x128xf32>
    %c0_35 = arith.constant 0 : index
    %c0_36 = arith.constant 0 : index
    %74 = vector.load %arg11[%c0_35, %c0_36] : memref<1x128xf32, #tpu.memory_space<vmem>>, vector<1x128xf32>
    %c0_37 = arith.constant 0 : index
    %c0_38 = arith.constant 0 : index
    %75 = vector.load %arg12[%c0_37, %c0_38] : memref<1x128xf32, #tpu.memory_space<vmem>>, vector<1x128xf32>
    %cst_39 = arith.constant dense<0.000000e+00> : vector<128xf32>
    %76 = vector.multi_reduction <add>, %69, %cst_39 [0] : vector<32x128xf32> to vector<128xf32>
    %77 = vector.shape_cast %76 : vector<128xf32> to vector<1x128xf32>
    %78 = arith.mulf %69, %69 : vector<32x128xf32>
    %cst_40 = arith.constant dense<0.000000e+00> : vector<128xf32>
    %79 = vector.multi_reduction <add>, %78, %cst_40 [0] : vector<32x128xf32> to vector<128xf32>
    %80 = vector.shape_cast %79 : vector<128xf32> to vector<1x128xf32>
    %cst_41 = arith.constant 3.125000e-02 : f32
    %81 = vector.broadcast %cst_41 : f32 to vector<1x128xf32>
    %82 = arith.mulf %77, %81 : vector<1x128xf32>
    %cst_42 = arith.constant 3.125000e-02 : f32
    %83 = vector.broadcast %cst_42 : f32 to vector<1x128xf32>
    %84 = arith.mulf %80, %83 : vector<1x128xf32>
    %85 = arith.mulf %82, %82 : vector<1x128xf32>
    %86 = arith.subf %84, %85 : vector<1x128xf32>
    %cst_43 = arith.constant 0.000000e+00 : f32
    %87 = vector.broadcast %cst_43 : f32 to vector<1x128xf32>
    %88 = arith.maximumf %86, %87 : vector<1x128xf32>
    %cst_44 = arith.constant 9.99999974E-6 : f32
    %89 = vector.broadcast %cst_44 : f32 to vector<1x128xf32>
    %90 = arith.addf %88, %89 : vector<1x128xf32>
    %91 = math.rsqrt %90 : vector<1x128xf32>
    %92 = arith.mulf %74, %91 : vector<1x128xf32>
    %93 = arith.mulf %82, %92 : vector<1x128xf32>
    %94 = arith.subf %75, %93 : vector<1x128xf32>
    %95 = vector.broadcast %92 : vector<1x128xf32> to vector<32x128xf32>
    %96 = arith.mulf %69, %95 : vector<32x128xf32>
    %97 = vector.broadcast %94 : vector<1x128xf32> to vector<32x128xf32>
    %98 = arith.addf %96, %97 : vector<32x128xf32>
    %cst_45 = arith.constant 0.000000e+00 : f32
    %99 = vector.broadcast %cst_45 : f32 to vector<32x128xf32>
    %100 = arith.maximumf %98, %99 : vector<32x128xf32>
    %101 = arith.truncf %100 : vector<32x128xf32> to vector<32x128xbf16>
    %c0_46 = arith.constant 0 : index
    %c0_47 = arith.constant 0 : index
    %102 = vector.load %arg13[%c0_46, %c0_47] : memref<128x128xbf16, #tpu.memory_space<vmem>>, vector<128x128xbf16>
    %cst_48 = arith.constant dense<0.000000e+00> : vector<32x128xf32>
    %103 = tpu.matmul %101, %102, %cst_48 {dimension_numbers = #tpu.dot_dimension_numbers<[1], [0], [0], [1], [0, 0, 1, 1], [], []>} : vector<32x128xbf16>, vector<128x128xbf16>, vector<32x128xf32> -> vector<32x128xf32>
    %c0_49 = arith.constant 0 : index
    %c0_50 = arith.constant 0 : index
    %104 = vector.load %arg14[%c0_49, %c0_50] : memref<1x128xf32, #tpu.memory_space<vmem>>, vector<1x128xf32>
    %c0_51 = arith.constant 0 : index
    %c0_52 = arith.constant 0 : index
    %105 = vector.load %arg15[%c0_51, %c0_52] : memref<1x128xf32, #tpu.memory_space<vmem>>, vector<1x128xf32>
    %cst_53 = arith.constant dense<0.000000e+00> : vector<128xf32>
    %106 = vector.multi_reduction <add>, %103, %cst_53 [0] : vector<32x128xf32> to vector<128xf32>
    %107 = vector.shape_cast %106 : vector<128xf32> to vector<1x128xf32>
    %108 = arith.mulf %103, %103 : vector<32x128xf32>
    %cst_54 = arith.constant dense<0.000000e+00> : vector<128xf32>
    %109 = vector.multi_reduction <add>, %108, %cst_54 [0] : vector<32x128xf32> to vector<128xf32>
    %110 = vector.shape_cast %109 : vector<128xf32> to vector<1x128xf32>
    %cst_55 = arith.constant 3.125000e-02 : f32
    %111 = vector.broadcast %cst_55 : f32 to vector<1x128xf32>
    %112 = arith.mulf %107, %111 : vector<1x128xf32>
    %cst_56 = arith.constant 3.125000e-02 : f32
    %113 = vector.broadcast %cst_56 : f32 to vector<1x128xf32>
    %114 = arith.mulf %110, %113 : vector<1x128xf32>
    %115 = arith.mulf %112, %112 : vector<1x128xf32>
    %116 = arith.subf %114, %115 : vector<1x128xf32>
    %cst_57 = arith.constant 0.000000e+00 : f32
    %117 = vector.broadcast %cst_57 : f32 to vector<1x128xf32>
    %118 = arith.maximumf %116, %117 : vector<1x128xf32>
    %cst_58 = arith.constant 9.99999974E-6 : f32
    %119 = vector.broadcast %cst_58 : f32 to vector<1x128xf32>
    %120 = arith.addf %118, %119 : vector<1x128xf32>
    %121 = math.rsqrt %120 : vector<1x128xf32>
    %122 = arith.mulf %104, %121 : vector<1x128xf32>
    %123 = arith.mulf %112, %122 : vector<1x128xf32>
    %124 = arith.subf %105, %123 : vector<1x128xf32>
    %125 = vector.broadcast %122 : vector<1x128xf32> to vector<32x128xf32>
    %126 = arith.mulf %103, %125 : vector<32x128xf32>
    %127 = vector.broadcast %124 : vector<1x128xf32> to vector<32x128xf32>
    %128 = arith.addf %126, %127 : vector<32x128xf32>
    %129 = arith.addf %128, %73 : vector<32x128xf32>
    %cst_59 = arith.constant 0.000000e+00 : f32
    %130 = vector.broadcast %cst_59 : f32 to vector<32x128xf32>
    %131 = arith.maximumf %129, %130 : vector<32x128xf32>
    %132 = arith.truncf %131 : vector<32x128xf32> to vector<32x128xbf16>
    %c0_60 = arith.constant 0 : index
    %c0_61 = arith.constant 0 : index
    %133 = vector.load %arg16[%c0_60, %c0_61] : memref<128x8xbf16, #tpu.memory_space<vmem>>, vector<128x8xbf16>
    %cst_62 = arith.constant dense<0.000000e+00> : vector<32x8xf32>
    %134 = tpu.matmul %132, %133, %cst_62 {dimension_numbers = #tpu.dot_dimension_numbers<[1], [0], [0], [1], [0, 0, 1, 1], [], []>} : vector<32x128xbf16>, vector<128x8xbf16>, vector<32x8xf32> -> vector<32x8xf32>
    %c0_63 = arith.constant 0 : index
    %c0_64 = arith.constant 0 : index
    %135 = vector.load %arg17[%c0_63, %c0_64] : memref<1x8xf32, #tpu.memory_space<vmem>>, vector<1x8xf32>
    %136 = vector.broadcast %135 : vector<1x8xf32> to vector<32x8xf32>
    %137 = arith.addf %134, %136 : vector<32x8xf32>
    %c0_65 = arith.constant 0 : index
    %c0_66 = arith.constant 0 : index
    %138 = vector.load %arg18[%c0_65, %c0_66] : memref<32x8xf32, #tpu.memory_space<vmem>>, vector<32x8xf32>
    tpu.vector_store %arg18[%c0_65, %c0_66], %137 {strides = array<i32>} : memref<32x8xf32, #tpu.memory_space<vmem>>, vector<32x8xf32>,
    return
  }
  func.func @transform_0(%arg0: i32) -> (i32, i32) {
    %c0_i32 = arith.constant 0 : i32
    %c0_i32_0 = arith.constant 0 : i32
    return %arg0, %c0_i32 : i32, i32
  }
  func.func @transform_1(%arg0: i32) -> (i32, i32) {
    %c0_i32 = arith.constant 0 : i32
    %c0_i32_0 = arith.constant 0 : i32
    %c0_i32_1 = arith.constant 0 : i32
    return %c0_i32, %c0_i32_0 : i32, i32
  }
  func.func @transform_2(%arg0: i32) -> (i32, i32) {
    %c0_i32 = arith.constant 0 : i32
    %c0_i32_0 = arith.constant 0 : i32
    %c0_i32_1 = arith.constant 0 : i32
    return %c0_i32, %c0_i32_0 : i32, i32
  }
  func.func @transform_3(%arg0: i32) -> (i32, i32) {
    %c0_i32 = arith.constant 0 : i32
    %c0_i32_0 = arith.constant 0 : i32
    %c0_i32_1 = arith.constant 0 : i32
    return %c0_i32, %c0_i32_0 : i32, i32
  }
  func.func @transform_4(%arg0: i32) -> (i32, i32) {
    %c0_i32 = arith.constant 0 : i32
    %c0_i32_0 = arith.constant 0 : i32
    %c0_i32_1 = arith.constant 0 : i32
    return %c0_i32, %c0_i32_0 : i32, i32
  }
  func.func @transform_5(%arg0: i32) -> (i32, i32) {
    %c0_i32 = arith.constant 0 : i32
    %c0_i32_0 = arith.constant 0 : i32
    %c0_i32_1 = arith.constant 0 : i32
    return %c0_i32, %c0_i32_0 : i32, i32
  }
  func.func @transform_6(%arg0: i32) -> (i32, i32) {
    %c0_i32 = arith.constant 0 : i32
    %c0_i32_0 = arith.constant 0 : i32
    %c0_i32_1 = arith.constant 0 : i32
    return %c0_i32, %c0_i32_0 : i32, i32
  }
  func.func @transform_7(%arg0: i32) -> (i32, i32) {
    %c0_i32 = arith.constant 0 : i32
    %c0_i32_0 = arith.constant 0 : i32
    %c0_i32_1 = arith.constant 0 : i32
    return %c0_i32, %c0_i32_0 : i32, i32
  }
  func.func @transform_8(%arg0: i32) -> (i32, i32) {
    %c0_i32 = arith.constant 0 : i32
    %c0_i32_0 = arith.constant 0 : i32
    %c0_i32_1 = arith.constant 0 : i32
    return %c0_i32, %c0_i32_0 : i32, i32
  }
  func.func @transform_9(%arg0: i32) -> (i32, i32) {
    %c0_i32 = arith.constant 0 : i32
    %c0_i32_0 = arith.constant 0 : i32
    %c0_i32_1 = arith.constant 0 : i32
    return %c0_i32, %c0_i32_0 : i32, i32
  }
  func.func @transform_10(%arg0: i32) -> (i32, i32) {
    %c0_i32 = arith.constant 0 : i32
    %c0_i32_0 = arith.constant 0 : i32
    %c0_i32_1 = arith.constant 0 : i32
    return %c0_i32, %c0_i32_0 : i32, i32
  }
  func.func @transform_11(%arg0: i32) -> (i32, i32) {
    %c0_i32 = arith.constant 0 : i32
    %c0_i32_0 = arith.constant 0 : i32
    %c0_i32_1 = arith.constant 0 : i32
    return %c0_i32, %c0_i32_0 : i32, i32
  }
  func.func @transform_12(%arg0: i32) -> (i32, i32) {
    %c0_i32 = arith.constant 0 : i32
    %c0_i32_0 = arith.constant 0 : i32
    %c0_i32_1 = arith.constant 0 : i32
    return %c0_i32, %c0_i32_0 : i32, i32
  }
  func.func @transform_13(%arg0: i32) -> (i32, i32) {
    %c0_i32 = arith.constant 0 : i32
    %c0_i32_0 = arith.constant 0 : i32
    %c0_i32_1 = arith.constant 0 : i32
    return %c0_i32, %c0_i32_0 : i32, i32
  }
  func.func @transform_14(%arg0: i32) -> (i32, i32) {
    %c0_i32 = arith.constant 0 : i32
    %c0_i32_0 = arith.constant 0 : i32
    %c0_i32_1 = arith.constant 0 : i32
    return %c0_i32, %c0_i32_0 : i32, i32
  }
  func.func @transform_15(%arg0: i32) -> (i32, i32) {
    %c0_i32 = arith.constant 0 : i32
    %c0_i32_0 = arith.constant 0 : i32
    %c0_i32_1 = arith.constant 0 : i32
    return %c0_i32, %c0_i32_0 : i32, i32
  }
  func.func @transform_16(%arg0: i32) -> (i32, i32) {
    %c0_i32 = arith.constant 0 : i32
    %c0_i32_0 = arith.constant 0 : i32
    %c0_i32_1 = arith.constant 0 : i32
    return %c0_i32, %c0_i32_0 : i32, i32
  }
  func.func @transform_17(%arg0: i32) -> (i32, i32) {
    %c0_i32 = arith.constant 0 : i32
    %c0_i32_0 = arith.constant 0 : i32
    return %arg0, %c0_i32 : i32, i32
  }
}

</mosaic_0001>

<bundles_post_ra>
// kernel: tpu_custom_call.1
= control target key start
LH: loop header
LB: loop body
LE: loop exit
PB: predicated region body
PF: predicated region fallthrough
CT: control target
= control target key end

     0   :  { %s5519_s0 = inlined_call_operand.hbm [shape: bf16[32,64], index: 0, kind: input, shape index: {}]   ;;  %s5520_s1 = inlined_call_operand.hbm [shape: bf16[64,1024], index: 1, kind: input, shape index: {}]   ;;  %s5521_s2 = inlined_call_operand.vmem [shape: f32[1,512], index: 2, kind: input, shape index: {}]   ;;  %s5522_s3 = inlined_call_operand.vmem [shape: f32[1,512], index: 3, kind: input, shape index: {}]   ;;  %s5523_s4 = inlined_call_operand.vmem [shape: f32[1,512], index: 4, kind: input, shape index: {}]   ;;  %s5524_s5 = inlined_call_operand.hbm [shape: bf16[512,512], index: 5, kind: input, shape index: {}]   ;;  %s5525_s6 = inlined_call_operand.hbm [shape: f32[1,512], index: 6, kind: input, shape index: {}]   ;;  %s5526_s7 = inlined_call_operand.hbm [shape: f32[1,512], index: 7, kind: input, shape index: {}]   ;;  %s5527_s8 = inlined_call_operand.hbm [shape: bf16[512,256], index: 8, kind: input, shape index: {}]   ;;  %s5528_s9 = inlined_call_operand.hbm [shape: f32[1,128], index: 9, kind: input, shape index: {}]   ;;  %s5529_s10 = inlined_call_operand.hbm [shape: f32[1,128], index: 10, kind: input, shape index: {}]   ;;  %s5530_s11 = inlined_call_operand.hbm [shape: f32[1,128], index: 11, kind: input, shape index: {}]   ;;  %s5531_s12 = inlined_call_operand.vmem [shape: bf16[128,128], index: 12, kind: input, shape index: {}]   ;;  %s5532_s13 = inlined_call_operand.hbm [shape: f32[1,128], index: 13, kind: input, shape index: {}]   ;;  %s5533_s14 = inlined_call_operand.vmem [shape: f32[1,128], index: 14, kind: input, shape index: {}]   ;;  %s5534_s15 = inlined_call_operand.vmem [shape: bf16[128,8], index: 15, kind: input, shape index: {}]   ;;  %s5535_s16 = inlined_call_operand.vmem [shape: f32[1,8], index: 16, kind: input, shape index: {}]   ;;  %s5536_s17 = inlined_call_operand.vmem [shape: f32[32,8], index: 17, kind: output, shape index: {}]  }
   0x1   :  { %5539 = sst [smem:[#allocation26_spill]] %s5519_s0 }
   0x2   :  { %5540 = sst [smem:[#allocation27_spill]] %s5520_s1 }
   0x3   :  { %5541 = sst [smem:[#allocation28_spill]] %s5536_s17 }
   0x4   :  { %22 = vsyncpa [#allocation3], 0 }
   0x5   :  { %23 = vsyncpa [#allocation5], 0 }
   0x6   :  { %24 = vsyncpa [#allocation8], 0 }
   0x7   :  { %25 = vsyncpa [#allocation11], 0 }
   0x8   :  { %26 = vsyncpa [#allocation14], 0  ;;  %s5542_s26 = sld [smem:[#allocation27_spill]] }
   0xe   :  { %s45_s27 = sshll.u32 %s5542_s26, 4  ;;  %s46_s27 = int_to_ptr.hbm [resolvable:$true] %s45_s27 }
   0xf   :  { %27 = vsyncpa [#allocation17], 0  ;;  %s4580_s28 = smov [#allocation4]   ;;  %s78_s18 = sshll.u32 %s5525_s6, 4  ;;  %s79_s18 = int_to_ptr.hbm [resolvable:$true] %s78_s18 }
  0x10   :  { %s47_s29 = sshll.u32 %s4580_s28, 4  ;;  %s4581_s19 = smov 512   ;;  %s48_s29 = int_to_ptr.vmem [resolvable:$true] %s47_s29 }
  0x11   :  { %s4582_s1 = smov 32   ;;  %s4583_s20 = smov [#allocation7]  }
  0x12   :  { %53 = dma.hbm_to_vmem [thread:$0]  %s46_s27, 4096, %s48_s29, [#allocation5], %s4581_s19, %s4581_s19, %s4582_s1  }
  0x13   :  { %s80_s21 = sshll.u32 %s4583_s20, 4  ;;  %s99_s24 = sshll.u32 %s5527_s8, 4  ;;  %s81_s21 = int_to_ptr.vmem [resolvable:$true] %s80_s21  ;;  %s100_s24 = int_to_ptr.hbm [resolvable:$true] %s99_s24 }
  0x14   :  { %83 = dma.hbm_to_vmem [thread:$0]  %s79_s18, 64, %s81_s21, [#allocation8]  }
  0x15   :  { %s4584_s25 = smov [#allocation10]   ;;  %s124_s6 = sshll.u32 %s5529_s10, 4  ;;  %s125_s6 = int_to_ptr.hbm [resolvable:$true] %s124_s6 }
  0x16   :  { %s101_s26 = sshll.u32 %s4584_s25, 4  ;;  %s4585_s0 = smov 128   ;;  %s102_s26 = int_to_ptr.vmem [resolvable:$true] %s101_s26 }
  0x17   :  { %s4586_s30 = smov 8   ;;  %s4587_s27 = smov [#allocation13]  }
  0x18   :  { %107 = dma.hbm_to_vmem [thread:$0]  %s100_s24, 8192, %s102_s26, [#allocation11], %s4585_s0, %s4585_s0, %s4586_s30  }
  0x19   :  { %s126_s29 = sshll.u32 %s4587_s27, 4  ;;  %s5543_s20 = sld [smem:[#allocation26_spill]]  ;;  %s127_s29 = int_to_ptr.vmem [resolvable:$true] %s126_s29 }
  0x1a   :  { %129 = dma.hbm_to_vmem [thread:$0]  %s125_s6, 16, %s127_s29, [#allocation14]  }
  0x1b   :  { %s4588_s18 = smov [#allocation2]   ;;  %s64_s10 = sshll.u32 %s5524_s5, 4  ;;  %s65_s10 = int_to_ptr.hbm [resolvable:$true] %s64_s10 }
  0x1c   :  { %s34_s21 = sshll.u32 %s4588_s18, 4  ;;  %s4589_s17 = smov 64   ;;  %s35_s21 = int_to_ptr.vmem [resolvable:$true] %s34_s21 }
  0x1d   :  { %s4590_s25 = smov 4   ;;  %s4591_s24 = smov [#allocation6]  }
  0x1e   :  { %s66_s26 = sshll.u32 %s4591_s24, 4  ;;  %s4592_s28 = smov 256   ;;  %s67_s26 = int_to_ptr.vmem [resolvable:$true] %s66_s26 }
  0x1f   :  { %s32_s8 = sshll.u32 %s5543_s20, 4  ;;  %s4593_s0 = smov 16   ;;  %s33_s8 = int_to_ptr.hbm [resolvable:$true] %s32_s8 }
  0x20   :  { %40 = dma.hbm_to_vmem [thread:$0]  %s33_s8, 256, %s35_s21, [#allocation3], %s4589_s17, %s4589_s17, %s4590_s25  }
  0x21   :  { %72 = dma.hbm_to_vmem [thread:$0]  %s65_s10, 16384, %s67_s26, [#allocation5], %s4592_s28, %s4592_s28, %s4593_s0  }
  0x22   :  { %s89_s6 = sshll.u32 %s5526_s7, 4  ;;  %s4594_s29 = smov [#allocation9]   ;;  %s90_s6 = int_to_ptr.hbm [resolvable:$true] %s89_s6 }
  0x23   :  { %s91_s19 = sshll.u32 %s4594_s29, 4  ;;  %s113_s20 = sshll.u32 %s5528_s9, 4  ;;  %s92_s19 = int_to_ptr.vmem [resolvable:$true] %s91_s19  ;;  %s114_s20 = int_to_ptr.hbm [resolvable:$true] %s113_s20 }
  0x24   :  { %94 = dma.hbm_to_vmem [thread:$0]  %s90_s6, 64, %s92_s19, [#allocation8]  }
  0x25   :  { %s4595_s8 = smov [#allocation12]   ;;  %s135_s23 = sshll.u32 %s5530_s11, 4  ;;  %s136_s23 = int_to_ptr.hbm [resolvable:$true] %s135_s23 }
  0x26   :  { %s115_s18 = sshll.u32 %s4595_s8, 4  ;;  %s148_s17 = sshll.u32 %s5532_s13, 4  ;;  %s116_s18 = int_to_ptr.vmem [resolvable:$true] %s115_s18  ;;  %s149_s17 = int_to_ptr.hbm [resolvable:$true] %s148_s17 }
  0x27   :  { %118 = dma.hbm_to_vmem [thread:$0]  %s114_s20, 16, %s116_s18, [#allocation11]  }
  0x28   :  { %s4596_s25 = smov [#allocation15]   ;;  %s4597_s9 = smov [#allocation16]  }
  0x29   :  { %s137_s24 = sshll.u32 %s4596_s25, 4  ;;  %s150_s26 = sshll.u32 %s4597_s9, 4  ;;  %s138_s24 = int_to_ptr.vmem [resolvable:$true] %s137_s24  ;;  %s151_s26 = int_to_ptr.vmem [resolvable:$true] %s150_s26 }
  0x2a   :  { %140 = dma.hbm_to_vmem [thread:$0]  %s136_s23, 16, %s138_s24, [#allocation14]  }
  0x2b   :  { %153 = dma.hbm_to_vmem [thread:$0]  %s149_s17, 16, %s151_s26, [#allocation17]  }
  0x2c   :  { %4568 = dma.done.wait [#allocation3], 256  }
  0x2d   :  { %4569 = vsyncadd [#allocation3], 4294967040 }
  0x2e   :  { %4570 = dma.done.wait [#allocation5], 20480  }
  0x2f   :  { %4571 = vsyncadd [#allocation5], 4294946816 }
  0x30   :  { %4572 = dma.done.wait [#allocation8], 128  }
  0x31   :  { %4573 = vsyncadd [#allocation8], 4294967168 }
  0x32   :  { %4574 = dma.done.wait [#allocation11], 8208  }
  0x33   :  { %4575 = vsyncadd [#allocation11], 4294959088 }
  0x34   :  { %4576 = dma.done.wait [#allocation14], 32  }
  0x35   :  { %4577 = vsyncadd [#allocation14], 4294967264 }
  0x36   :  { %4578 = dma.done.wait [#allocation17], 16  }
  0x37   :  { %4579 = vsyncadd [#allocation17], 4294967280  ;;  %v3160_v0 = vld [vmem:[#allocation4 + $0xc0] sm:$0xf]  ;;  %v4064_v2 = vld [vmem:[#allocation4 + $0xc4] sm:$0xf] }
  0x38   :  { %v4068_v1 = vld [vmem:[#allocation4 + $0xdc] sm:$0xf0]  ;;  %v3162_v4 = vld [vmem:[#allocation4 + $0xe0] sm:$0xf0]  ;;  %v3168_v22 = vld [vmem:[#allocation4 + $0xc8] sm:$0xf] }
  0x39   :  { %v3161_v3 = vor.u32 %v4068_v1, %v3160_v0  ;;  %v3128_v5 = vld [vmem:[#allocation4 + $0x80] sm:$0xf]  ;;  %v3165_v7 = vor.u32 %v4064_v2, %v3162_v4  ;;  %v4056_v8 = vld [vmem:[#allocation4 + $0x84] sm:$0xf]  ;;  %v4069_v23 = vld [vmem:[#allocation4 + $0xe4] sm:$0xf0] }
  0x3a   :  { %v4060_v6 = vld [vmem:[#allocation4 + $0x9c] sm:$0xf0]  ;;  %v3130_v9 = vld [vmem:[#allocation4 + $0xa0] sm:$0xf0]  ;;  %v4065_v24 = vld [vmem:[#allocation4 + $0xcc] sm:$0xf]  ;;  %v3169_v30 = vor.u32 %v4069_v23, %v3168_v22 }
  0x3b   :  { %418 = vmatpush.bf16.msra.mxu0 %v3161_v3  ;;  %4280 = vmatpush.bf16.msra.mxu2 %v3161_v3  ;;  %v3129_v10 = vor.u32 %v4060_v6, %v3128_v5  ;;  %v3133_v11 = vor.u32 %v4056_v8, %v3130_v9  ;;  %v3096_v12 = vld [vmem:[#allocation4 + $0x40] sm:$0xf]  ;;  %v4048_v14 = vld [vmem:[#allocation4 + $0x44] sm:$0xf]  ;;  %v3170_v25 = vld [vmem:[#allocation4 + $0xe8] sm:$0xf0] }
  0x3c   :  { %437 = vmatpush.bf16.msra.mxu1 %v3165_v7  ;;  %4284 = vmatpush.bf16.msra.mxu3 %v3165_v7  ;;  %v4052_v13 = vld [vmem:[#allocation4 + $0x5c] sm:$0xf0]  ;;  %v3098_v15 = vld [vmem:[#allocation4 + $0x60] sm:$0xf0]  ;;  %v4718_v28 = vld [vmem:[#allocation2] sm:$0xff]  ;;  %v3173_v31 = vor.u32 %v4065_v24, %v3170_v25  ;;  %vm407_vm0 = vcmask 523264  }
  0x3d   :  { %v3097_v16 = vor.u32 %v4052_v13, %v3096_v12  ;;  %v3101_v17 = vor.u32 %v4048_v14, %v3098_v15  ;;  %v3064_v18 = vld [vmem:[#allocation4] sm:$0xf]  ;;  %v4040_v20 = vld [vmem:[#allocation4 + $0x4] sm:$0xf]  ;;  %v4720_v29 = vld [vmem:[#allocation2 + $0x8] sm:$0xff]  ;;  %vm753_vm9 = vcmask 1040384  }
  0x3e   :  { %v4044_v19 = vld [vmem:[#allocation4 + $0x1c] sm:$0xf0]  ;;  %v3066_v21 = vld [vmem:[#allocation4 + $0x20] sm:$0xf0]  ;;  %v3136_v32 = vld [vmem:[#allocation4 + $0x88] sm:$0xf] }
  0x3f   :  { %419 = vmatpush.bf16.msra.mxu0 %v3129_v10  ;;  %4281 = vmatpush.bf16.msra.mxu2 %v3129_v10  ;;  %v3065_v26 = vor.u32 %v4044_v19, %v3064_v18  ;;  %v3069_v27 = vor.u32 %v4040_v20, %v3066_v21  ;;  %v4061_v33 = vld [vmem:[#allocation4 + $0xa4] sm:$0xf0]  ;;  %v4057_v34 = vld [vmem:[#allocation4 + $0x8c] sm:$0xf]  ;;  %vm755_vm13 = vcmask 1042434   ;;  %vm757_vm15 = vcmask 1041408  }
  0x40   :  { %438 = vmatpush.bf16.msra.mxu1 %v3133_v11  ;;  %4285 = vmatpush.bf16.msra.mxu3 %v3133_v11  ;;  %v3138_v35 = vld [vmem:[#allocation4 + $0xa8] sm:$0xf0]  ;;  %v3137_v36 = vor.u32 %v4061_v33, %v3136_v32  ;;  %v3104_v38 = vld [vmem:[#allocation4 + $0x48] sm:$0xf]  ;;  %s5558_s20 = sld [smem:[#allocation28_spill]] }
  0x41   :  { %v3141_v37 = vor.u32 %v4057_v34, %v3138_v35  ;;  %v4053_v39 = vld [vmem:[#allocation4 + $0x64] sm:$0xf0]  ;;  %v4049_v40 = vld [vmem:[#allocation4 + $0x4c] sm:$0xf]  ;;  %v4067_v35 = vld [vmem:[#allocation4 + $0xdc] sm:$0xf] }
  0x42   :  { %v3106_v41 = vld [vmem:[#allocation4 + $0x68] sm:$0xf0]  ;;  %v3105_v42 = vor.u32 %v4053_v39, %v3104_v38  ;;  %v3072_v44 = vld [vmem:[#allocation4 + $0x8] sm:$0xf] }
  0x43   :  { %420 = vmatpush.bf16.msra.mxu0 %v3097_v16  ;;  %4282 = vmatpush.bf16.msra.mxu2 %v3097_v16  ;;  %v3109_v43 = vor.u32 %v4049_v40, %v3106_v41  ;;  %v4045_v45 = vld [vmem:[#allocation4 + $0x24] sm:$0xf0]  ;;  %v4041_v46 = vld [vmem:[#allocation4 + $0xc] sm:$0xf]  ;;  %v3152_v41 = vld [vmem:[#allocation4 + $0x98] sm:$0xf] }
  0x44   :  { %439 = vmatpush.bf16.msra.mxu1 %v3101_v17  ;;  %4286 = vmatpush.bf16.msra.mxu3 %v3101_v17  ;;  %v3074_v47 = vld [vmem:[#allocation4 + $0x28] sm:$0xf0]  ;;  %v3073_v48 = vor.u32 %v4045_v45, %v3072_v44 }
  0x45   :  { %v3077_v49 = vor.u32 %v4041_v46, %v3074_v47  ;;  %v3176_v46 = vld [vmem:[#allocation4 + $0xd0] sm:$0xf] }
  0x46   :  { %v4070_v47 = vld [vmem:[#allocation4 + $0xec] sm:$0xf0] }
  0x47   :  { %421 = vmatpush.bf16.msra.mxu0 %v3065_v26  ;;  %4283 = vmatpush.bf16.msra.mxu2 %v3065_v26 }
  0x48   :  { %440 = vmatpush.bf16.msra.mxu1 %v3069_v27  ;;  %4287 = vmatpush.bf16.msra.mxu3 %v3069_v27  ;;  %v3184_v27 = vld [vmem:[#allocation4 + $0xd8] sm:$0xf] }
  0x4a   :  { %3190 = vmatmul.msk.bf16.vlgmr.msra.gmra.mxu0 %vm407_vm0, %v4718_v28  ;;  %3191 = vmatmul.msk.bf16.vlgmr.msra.gmra.mxu2 %vm407_vm0, %v4720_v29 }
  0x4b   :  { %456 = vmatpush.bf16.msrb.mxu2 %v3169_v30  ;;  %3192 = vmatmul.msk.bf16.vlgmr.msra.gmra.mxu1 %vm407_vm0, %v4718_v28  ;;  %v4071_v30 = vld [vmem:[#allocation4 + $0xf4] sm:$0xf0] }
  0x4c   :  { %475 = vmatpush.bf16.msrb.mxu3 %v3173_v31  ;;  %v3185_v34 = vor.u32 %v4071_v30, %v3184_v27 }
  0x4d   :  { %3193 = vmatmul.msk.bf16.vlgmr.msra.gmra.mxu3 %vm407_vm0, %v4720_v29 }
  0x4f   :  { %457 = vmatpush.bf16.msrb.mxu2 %v3137_v36  ;;  %v3186_v36 = vld [vmem:[#allocation4 + $0xf8] sm:$0xf0] }
  0x50   :  { %476 = vmatpush.bf16.msrb.mxu3 %v3141_v37  ;;  %v3189_v40 = vor.u32 %v4067_v35, %v3186_v36  ;;  %v3090_v36 = vld [vmem:[#allocation4 + $0x38] sm:$0xf0] }
  0x53   :  { %458 = vmatpush.bf16.msrb.mxu2 %v3105_v42  ;;  %v4063_v42 = vld [vmem:[#allocation4 + $0xb4] sm:$0xf0] }
  0x54   :  { %477 = vmatpush.bf16.msrb.mxu3 %v3109_v43  ;;  %v3153_v45 = vor.u32 %v4063_v42, %v3152_v41  ;;  %v3080_v41 = vld [vmem:[#allocation4 + $0x10] sm:$0xf] }
  0x55   :  { %v4046_v42 = vld [vmem:[#allocation4 + $0x2c] sm:$0xf0] }
  0x57   :  { %459 = vmatpush.bf16.msrb.mxu2 %v3073_v48 }
  0x58   :  { %478 = vmatpush.bf16.msrb.mxu3 %v3077_v49 }
  0x5a   :  { %3194 = vmatmul.msk.bf16.vlgmr.msrb.gmra.mxu2 %vm407_vm0, %v4718_v28 }
  0x5b   :  { %532 = vmatpush.bf16.msra.mxu2 %v3185_v34  ;;  %v4043_v34 = vld [vmem:[#allocation4 + $0x1c] sm:$0xf] }
  0x5c   :  { %551 = vmatpush.bf16.msra.mxu3 %v3189_v40  ;;  %v3093_v40 = vor.u32 %v4043_v34, %v3090_v36 }
  0x5d   :  { %3196 = vmatmul.msk.bf16.vlgmr.msrb.gmra.mxu3 %vm407_vm0, %v4718_v28 }
  0x5f   :  { %533 = vmatpush.bf16.msra.mxu2 %v3153_v45 }
  0x6a   :  { %3195 = vmatmul.msk.bf16.gmra.mxu2 %vm407_vm0, %v4720_v29 }
  0x6d   :  { %3197 = vmatmul.msk.bf16.gmra.mxu3 %vm407_vm0, %v4720_v29 }
  0xc7   :  { %v4738_v50 = vpop.f32.mrf.mxu0 }
  0xc8   :  { %v4740_v51 = vpop.f32.mrf.mxu1  ;;  %v630_v54 = vmul.f32 %v4738_v50, %v4738_v50 }
  0xc9   :  { %v631_v55 = vmul.f32 %v4740_v51, %v4740_v51 }
  0xcd   :  { %v4742_v52 = vpop.f32.mrf.mxu2 }
  0xce   :  { %v638_v1 = vmul.f32 %v4742_v52, %v4742_v52 }
  0xcf   :  { %v4750_v56 = vpop.f32.mrf.mxu0 }
  0xd0   :  { %v4744_v53 = vpop.f32.mrf.mxu3  ;;  %v594_v57 = vadd.f32 %v4750_v56, %v4738_v50  ;;  %v634_v58 = vmul.f32 %v4750_v56, %v4750_v56  ;;  %v4756_v59 = vpop.f32.mrf.mxu1 }
  0xd1   :  { %v603_v60 = vadd.f32 %v4756_v59, %v4740_v51  ;;  %v635_v61 = vmul.f32 %v4756_v59, %v4756_v59  ;;  %v639_v2 = vmul.f32 %v4744_v53, %v4744_v53 }
  0xd2   :  { %v646_v62 = vadd.f32 %v634_v58, %v630_v54  ;;  %v595_v0 = vadd.f32 %v594_v57, %v4742_v52  ;;  %v3154_v57 = vld [vmem:[#allocation4 + $0xb8] sm:$0xf0] }
  0xd3   :  { %v655_v63 = vadd.f32 %v635_v61, %v631_v55  ;;  %v604_v4 = vadd.f32 %v603_v60, %v4744_v53  ;;  %v4059_v55 = vld [vmem:[#allocation4 + $0x9c] sm:$0xf]  ;;  %v4066_v60 = vld [vmem:[#allocation4 + $0xd4] sm:$0xf] }
  0xd4   :  { %v647_v8 = vadd.f32 %v646_v62, %v638_v1  ;;  %v3178_v61 = vld [vmem:[#allocation4 + $0xf0] sm:$0xf0]  ;;  %v3157_v62 = vor.u32 %v4059_v55, %v3154_v57  ;;  %v4055_v1 = vld [vmem:[#allocation4 + $0x74] sm:$0xf0] }
  0xd5   :  { %v4767_v3 = vpop.f32.mrf.mxu2  ;;  %v656_v11 = vadd.f32 %v655_v63, %v639_v2  ;;  %v3177_v63 = vor.u32 %v4070_v47, %v3176_v46  ;;  %v3144_v2 = vld [vmem:[#allocation4 + $0x90] sm:$0xf]  ;;  %v3082_v55 = vld [vmem:[#allocation4 + $0x30] sm:$0xf0] }
  0xd6   :  { %v596_v5 = vadd.f32 %v595_v0, %v4767_v3  ;;  %v642_v6 = vmul.f32 %v4767_v3, %v4767_v3  ;;  %v3120_v0 = vld [vmem:[#allocation4 + $0x58] sm:$0xf]  ;;  %552 = vmatpush.bf16.msra.mxu3 %v3157_v62 }
  0xd7   :  { %494 = vmatpush.bf16.msrb.mxu0 %v3177_v63 }
  0xd8   :  { %v4773_v7 = vpop.f32.mrf.mxu3  ;;  %v597_v12 = vrot.slane %v596_v5, 4  ;;  %v648_v13 = vadd.f32 %v647_v8, %v642_v6  ;;  %v3121_v6 = vor.u32 %v4055_v1, %v3120_v0  ;;  %v4062_v8 = vld [vmem:[#allocation4 + $0xac] sm:$0xf0] }
  0xd9   :  { %v605_v9 = vadd.f32 %v604_v4, %v4773_v7  ;;  %v643_v10 = vmul.f32 %v4773_v7, %v4773_v7 }
  0xda   :  { %v598_v16 = vadd.f32 %v597_v12, %v596_v5  ;;  %v649_v19 = vrot.slane %v648_v13, 4  ;;  %v3181_v5 = vor.u32 %v4066_v60, %v3178_v61  ;;  %534 = vmatpush.bf16.msra.mxu2 %v3121_v6  ;;  %v3081_v61 = vor.u32 %v4046_v42, %v3080_v41  ;;  %v3704_v42 = vld [vmem:[#allocation6 + $0x3e0] sm:$0xf] }
  0xdb   :  { %v606_v14 = vrot.slane %v605_v9, 4  ;;  %v657_v15 = vadd.f32 %v656_v11, %v643_v10  ;;  %v3146_v10 = vld [vmem:[#allocation4 + $0xb0] sm:$0xf0] }
  0xdc   :  { %v599_v24 = vrot.slane %v598_v16, 2  ;;  %v650_v31 = vadd.f32 %v649_v19, %v648_v13  ;;  %v3145_v13 = vor.u32 %v4062_v8, %v3144_v2  ;;  %513 = vmatpush.bf16.msrb.mxu1 %v3181_v5  ;;  %v4054_v19 = vld [vmem:[#allocation4 + $0x6c] sm:$0xf0] }
  0xdd   :  { %v607_v17 = vadd.f32 %v606_v14, %v605_v9  ;;  %v658_v18 = vrot.slane %v657_v15, 4  ;;  %v4778_v22 = vpop.f32.mrf.mxu2  ;;  %v4058_v9 = vld [vmem:[#allocation4 + $0x94] sm:$0xf]  ;;  %v4051_v14 = vld [vmem:[#allocation4 + $0x5c] sm:$0xf] }
  0xde   :  { %v600_v37 = vadd.f32 %v599_v24, %v598_v16  ;;  %v651_v43 = vrot.slane %v650_v31, 2  ;;  %v3149_v16 = vor.u32 %v4058_v9, %v3146_v10  ;;  %495 = vmatpush.bf16.msrb.mxu0 %v3145_v13  ;;  %v632_v35 = vmul.f32 %v4778_v22, %v4778_v22 }
  0xdf   :  { %v608_v20 = vrot.slane %v607_v17, 2  ;;  %v659_v21 = vadd.f32 %v658_v18, %v657_v15  ;;  %v3122_v15 = vld [vmem:[#allocation4 + $0x78] sm:$0xf0]  ;;  %v3112_v18 = vld [vmem:[#allocation4 + $0x50] sm:$0xf] }
  0xe0   :  { %v4780_v23 = vpop.f32.mrf.mxu3  ;;  %v601_v58 = vrot.slane %v600_v37, 1  ;;  %v652_v4 = vadd.f32 %v651_v43, %v650_v31  ;;  %v3113_v31 = vor.u32 %v4054_v19, %v3112_v18  ;;  %514 = vmatpush.bf16.msrb.mxu1 %v3149_v16  ;;  %v4042_v43 = vld [vmem:[#allocation4 + $0x14] sm:$0xf] }
  0xe1   :  { %v609_v25 = vadd.f32 %v608_v20, %v607_v17  ;;  %v660_v26 = vrot.slane %v659_v21, 2  ;;  %v3125_v17 = vor.u32 %v4051_v14, %v3122_v15  ;;  %v633_v47 = vmul.f32 %v4780_v23, %v4780_v23 }
  0xe2   :  { %v602_v20 = vadd.f32 %v601_v58, %v600_v37  ;;  %496 = vmatpush.bf16.msrb.mxu0 %v3113_v31  ;;  %v3085_v0 = vor.u32 %v4042_v43, %v3082_v55  ;;  %v4198_v43 = vld [vmem:[#allocation6 + $0x3ec] sm:$0xf0]  ;;  %v3560_v55 = vld [vmem:[#allocation6 + $0x2c0] sm:$0xf] }
  0xe3   :  { %v610_v32 = vrot.slane %v609_v25, 1  ;;  %v661_v33 = vadd.f32 %v660_v26, %v659_v21  ;;  %v653_v21 = vrot.slane %v652_v4, 1  ;;  %v3114_v26 = vld [vmem:[#allocation4 + $0x70] sm:$0xf0]  ;;  %553 = vmatpush.bf16.msra.mxu3 %v3125_v17 }
  0xe4   :  { %v4798_v46 = vmul.f32 0.03125, %v602_v20  ;;  %v3576_v20 = vld [vmem:[#allocation6 + $0x2e0] sm:$0xf] }
  0xe5   :  { %v611_v38 = vadd.f32 %v610_v32, %v609_v25  ;;  %v662_v39 = vrot.slane %v661_v33, 1  ;;  %v4782_v44 = vpop.f32.mrf.mxu2  ;;  %v4050_v25 = vld [vmem:[#allocation4 + $0x54] sm:$0xf]  ;;  %v3088_v32 = vld [vmem:[#allocation4 + $0x18] sm:$0xf]  ;;  %v654_v45 = vadd.f32 %v653_v21, %v652_v4 }
  0xe6   :  { %v636_v37 = vmul.f32 %v4782_v44, %v4782_v44  ;;  %v612_v58 = vadd.f32 %v4782_v44, %v4778_v22  ;;  %v690_v5 = vmul.f32 %v4798_v46, %v4798_v46  ;;  %497 = vmatpush.bf16.msrb.mxu0 %v3081_v61  ;;  %v4166_v21 = vld [vmem:[#allocation6 + $0x2ec] sm:$0xf0] }
  0xe7   :  { %v663_v48 = vadd.f32 %v662_v39, %v661_v33  ;;  %v4784_v49 = vmul.f32 0.03125, %v611_v38  ;;  %v4047_v33 = vld [vmem:[#allocation4 + $0x34] sm:$0xf0]  ;;  %v3117_v38 = vor.u32 %v4050_v25, %v3114_v26  ;;  %554 = vmatpush.bf16.msra.mxu3 %v3093_v40  ;;  %v686_v4 = vmul.f32 0.03125, %v654_v45 }
  0xe8   :  { %v4786_v54 = vpop.f32.mrf.mxu3  ;;  %v3089_v39 = vor.u32 %v4047_v33, %v3088_v32  ;;  %v664_v2 = vadd.f32 %v636_v37, %v632_v35  ;;  %v3577_v31 = vor.u32 %v4166_v21, %v3576_v20  ;;  %v3320_v32 = vld [vmem:[#allocation6 + $0xe0] sm:$0xf]  ;;  %v4102_v33 = vld [vmem:[#allocation6 + $0xec] sm:$0xf0] }
  0xe9   :  { %v687_v11 = vmul.f32 0.03125, %v663_v48  ;;  %v691_v12 = vmul.f32 %v4784_v49, %v4784_v49  ;;  %v637_v48 = vmul.f32 %v4786_v54, %v4786_v54  ;;  %v621_v62 = vadd.f32 %v4786_v54, %v4780_v23  ;;  %515 = vmatpush.bf16.msrb.mxu1 %v3117_v38  ;;  %3198 = vmatmul.msk.bf16.vlgmr.msrb.gmra.mxu0 %vm407_vm0, %v4718_v28  ;;  %v3448_v37 = vld [vmem:[#allocation6 + $0x1e0] sm:$0xf]  ;;  %v4134_v38 = vld [vmem:[#allocation6 + $0x1ec] sm:$0xf0] }
  0xea   :  { %535 = vmatpush.bf16.msra.mxu2 %v3089_v39  ;;  %3204 = vmatmul.msk.bf16.vlgmr.msra.gmra.mxu3 %vm407_vm0, %v4718_v28  ;;  %v694_v25 = vsub.f32 %v686_v4, %v690_v5  ;;  %v3321_v36 = vor.u32 %v4102_v33, %v3320_v32  ;;  %v3449_v41 = vor.u32 %v4134_v38, %v3448_v37  ;;  %v3432_v4 = vld [vmem:[#allocation6 + $0x1c0] sm:$0xf]  ;;  %v4130_v5 = vld [vmem:[#allocation6 + $0x1cc] sm:$0xf0] }
  0xeb   :  { %v695_v27 = vsub.f32 %v687_v11, %v691_v12  ;;  %v673_v8 = vadd.f32 %v637_v48, %v633_v47  ;;  %v3705_v48 = vor.u32 %v4198_v43, %v3704_v42  ;;  %v3288_v32 = vld [vmem:[#allocation6 + $0xa0] sm:$0xf]  ;;  %v4126_v42 = vld [vmem:[#allocation6 + $0x1ac] sm:$0xf0] }
  0xec   :  { %1619 = vmatpush.bf16.msra.mxu0 %v3321_v36  ;;  %v4094_v36 = vld [vmem:[#allocation6 + $0xac] sm:$0xf0]  ;;  %v3416_v37 = vld [vmem:[#allocation6 + $0x1a0] sm:$0xf] }
  0xed   :  { %v4790_v24 = vpop.f32.mrf.mxu2  ;;  %v699_v57 = vmax.f32 %v695_v27, 0.0  ;;  %3202 = vmatmul.msk.bf16.vlgmr.msra.gmra.mxu2 %vm407_vm0, %v4718_v28  ;;  %516 = vmatpush.bf16.msrb.mxu1 %v3085_v0  ;;  %v3672_v43 = vld [vmem:[#allocation6 + $0x3a0] sm:$0xf] }
  0xee   :  { %v640_v60 = vmul.f32 %v4790_v24, %v4790_v24  ;;  %v613_v1 = vadd.f32 %v612_v58, %v4790_v24  ;;  %1657 = vmatpush.bf16.msrb.mxu2 %v3577_v31  ;;  %v698_v58 = vmax.f32 %v694_v25, 0.0  ;;  %1676 = vmatpush.bf16.msrb.mxu3 %v3705_v48  ;;  %v3544_v25 = vld [vmem:[#allocation6 + $0x2a0] sm:$0xf]  ;;  %v4158_v31 = vld [vmem:[#allocation6 + $0x2ac] sm:$0xf0]  ;;  %v3417_v48 = vor.u32 %v4126_v42, %v3416_v37 }
  0xef   :  { %v4820_v10 = vadd.f32 1e-05, %v699_v57  ;;  %v4162_v57 = vld [vmem:[#allocation6 + $0x2cc] sm:$0xf0] }
  0xf0   :  { %v4792_v30 = vpop.f32.mrf.mxu3  ;;  %v665_v11 = vadd.f32 %v664_v2, %v640_v60  ;;  %3200 = vmatmul.msk.bf16.vlgmr.msrb.gmra.mxu1 %vm407_vm0, %v4718_v28  ;;  %v3561_v28 = vor.u32 %v4162_v57, %v3560_v55  ;;  %v4190_v55 = vld [vmem:[#allocation6 + $0x3ac] sm:$0xf0]  ;;  %v3528_v57 = vld [vmem:[#allocation6 + $0x280] sm:$0xf] }
  0xf1   :  { %v641_v63 = vmul.f32 %v4792_v30, %v4792_v30  ;;  %v622_v6 = vadd.f32 %v621_v62, %v4792_v30  ;;  %4308 = vrsqrt.f32 %v4820_v10  ;;  %1638 = vmatpush.bf16.msra.mxu1 %v3449_v41  ;;  %v3304_v62 = vld [vmem:[#allocation6 + $0xc0] sm:$0xf]  ;;  %v3289_v41 = vor.u32 %v4094_v36, %v3288_v32  ;;  %v4118_v37 = vld [vmem:[#allocation6 + $0x16c] sm:$0xf0] }
  0xf2   :  { %1658 = vmatpush.bf16.msrb.mxu2 %v3561_v28  ;;  %v4154_v28 = vld [vmem:[#allocation6 + $0x28c] sm:$0xf0]  ;;  %v3384_v32 = vld [vmem:[#allocation6 + $0x160] sm:$0xf]  ;;  %vm722_vm2 = vweird.f32 %v4820_v10 }
  0xf3   :  { %v674_v15 = vadd.f32 %v673_v8, %v641_v63  ;;  %v4098_v63 = vld [vmem:[#allocation6 + $0xcc] sm:$0xf0] }
  0xf4   :  { %v3305_v2 = vor.u32 %v4098_v63, %v3304_v62  ;;  %v3272_v62 = vld [vmem:[#allocation6 + $0x80] sm:$0xf]  ;;  %v4182_v42 = vld [vmem:[#allocation6 + $0x36c] sm:$0xf0] }
  0xf5   :  { %v4816_v9 = vpop.f32.mrf.mxu2 }
  0xf6   :  { %v614_v12 = vadd.f32 %v613_v1, %v4816_v9  ;;  %v644_v13 = vmul.f32 %v4816_v9, %v4816_v9  ;;  %1620 = vmatpush.bf16.msra.mxu0 %v3305_v2  ;;  %v3529_v2 = vor.u32 %v4154_v28, %v3528_v57  ;;  %v4114_v28 = vld [vmem:[#allocation6 + $0x14c] sm:$0xf0] }
  0xf8   :  { %v4825_v14 = vpop.f32.mrf.mxu3  ;;  %v615_v18 = vrot.slane %v614_v12, 4  ;;  %v666_v19 = vadd.f32 %v665_v11, %v644_v13  ;;  %v3433_v11 = vor.u32 %v4130_v5, %v3432_v4  ;;  %v4194_v13 = vld [vmem:[#allocation6 + $0x3cc] sm:$0xf0]  ;;  %v3400_v5 = vld [vmem:[#allocation6 + $0x180] sm:$0xf] }
  0xf9   :  { %v623_v16 = vadd.f32 %v622_v6, %v4825_v14  ;;  %v645_v17 = vmul.f32 %v4825_v14, %v4825_v14  ;;  %v4090_v4 = vld [vmem:[#allocation6 + $0x8c] sm:$0xf0]  ;;  %3199 = vmatmul.msk.bf16.gmra.mxu0 %vm407_vm0, %v4720_v29 }
  0xfa   :  { %v616_v34 = vadd.f32 %v615_v18, %v614_v12  ;;  %v667_v35 = vrot.slane %v666_v19, 4  ;;  %v3688_v12 = vld [vmem:[#allocation6 + $0x3c0] sm:$0xf]  ;;  %1639 = vmatpush.bf16.msra.mxu1 %v3433_v11  ;;  %1621 = vmatpush.bf16.msra.mxu0 %v3289_v41  ;;  %v4122_v11 = vld [vmem:[#allocation6 + $0x18c] sm:$0xf0]  ;;  %v3385_v41 = vor.u32 %v4118_v37, %v3384_v32 }
  0xfb   :  { %v624_v26 = vrot.slane %v623_v16, 4  ;;  %v675_v27 = vadd.f32 %v674_v15, %v645_v17  ;;  %v4837_v15 = vpop.eup %4308  ;;  %v3689_v18 = vor.u32 %v4194_v13, %v3688_v12  ;;  %3205 = vmatmul.msk.bf16.gmra.mxu3 %vm407_vm0, %v4720_v29  ;;  %v3656_v12 = vld [vmem:[#allocation6 + $0x380] sm:$0xf]  ;;  %v4186_v13 = vld [vmem:[#allocation6 + $0x38c] sm:$0xf0] }
  0xfc   :  { %v617_v45 = vrot.slane %v616_v34, 2  ;;  %v668_v47 = vadd.f32 %v667_v35, %v666_v19  ;;  %v4839_v19 = vadd.f32 1e-05, %v698_v58  ;;  %v717_v33 = vmul.f32 %v4837_v15, %v4820_v10  ;;  %v4138_v32 = vld [vmem:[#allocation6 + $0x20c] sm:$0xf0] }
  0xfd   :  { %v625_v39 = vadd.f32 %v624_v26, %v623_v16  ;;  %v676_v40 = vrot.slane %v675_v27, 4  ;;  %1677 = vmatpush.bf16.msrb.mxu3 %v3689_v18  ;;  %3203 = vmatmul.msk.bf16.gmra.mxu2 %vm407_vm0, %v4720_v29  ;;  %v3657_v18 = vor.u32 %v4186_v13, %v3656_v12  ;;  %v3352_v12 = vld [vmem:[#allocation6 + $0x120] sm:$0xf]  ;;  %v4110_v13 = vld [vmem:[#allocation6 + $0x12c] sm:$0xf0]  ;;  %vm723_vm1 = vweird.f32 %v4837_v15 }
  0xfe   :  { %v618_v0 = vadd.f32 %v617_v45, %v616_v34  ;;  %v669_v1 = vrot.slane %v668_v47, 2  ;;  %4310 = vrsqrt.f32 %v4839_v19  ;;  %v718_v63 = vmul.f32 %v4837_v15, %v717_v33  ;;  %1640 = vmatpush.bf16.msra.mxu1 %v3417_v48  ;;  %v4146_v48 = vld [vmem:[#allocation6 + $0x24c] sm:$0xf0]  ;;  %vm4886_vm3 = vmor %vm722_vm2, %vm723_vm1 }
  0xff   :  { %v626_v60 = vrot.slane %v625_v39, 2  ;;  %v677_v61 = vadd.f32 %v676_v40, %v675_v27  ;;  %v3545_v40 = vor.u32 %v4158_v31, %v3544_v25  ;;  %v3256_v25 = vld [vmem:[#allocation6 + $0x60] sm:$0xf]  ;;  %v4086_v31 = vld [vmem:[#allocation6 + $0x6c] sm:$0xf0]  ;;  %vm712_vm12 = vweird.f32 %v4839_v19 }
 0x100   :  { %v619_v16 = vrot.slane %v618_v0, 1  ;;  %v670_v17 = vadd.f32 %v669_v1, %v668_v47  ;;  %3201 = vmatmul.msk.bf16.gmra.mxu1 %vm407_vm0, %v4720_v29  ;;  %v3257_v36 = vor.u32 %v4086_v31, %v3256_v25  ;;  %v3353_v25 = vor.u32 %v4110_v13, %v3352_v12  ;;  %v3464_v31 = vld [vmem:[#allocation6 + $0x200] sm:$0xf]  ;;  %v3322_v12 = vld [vmem:[#allocation6 + $0xf0] sm:$0xf0] }
 0x101   :  { %v627_v6 = vadd.f32 %v626_v60, %v625_v39  ;;  %v678_v8 = vrot.slane %v677_v61, 2  ;;  %1659 = vmatpush.bf16.msrb.mxu2 %v3545_v40 }
 0x102   :  { %v620_v26 = vadd.f32 %v619_v16, %v618_v0  ;;  %v671_v27 = vrot.slane %v670_v17, 1 }
 0x103   :  { %v628_v20 = vrot.slane %v627_v6, 1  ;;  %v679_v21 = vadd.f32 %v678_v8, %v677_v61  ;;  %v3673_v61 = vor.u32 %v4190_v55, %v3672_v43  ;;  %v3273_v8 = vor.u32 %v4090_v4, %v3272_v62  ;;  %v3496_v43 = vld [vmem:[#allocation6 + $0x240] sm:$0xf] }
 0x104   :  { %v672_v38 = vadd.f32 %v671_v27, %v670_v17  ;;  %v4843_v39 = vmul.f32 0.03125, %v620_v26  ;;  %v3401_v17 = vor.u32 %v4122_v11, %v3400_v5  ;;  %v4861_v33 = vpop.eup %4310  ;;  %v3240_v55 = vld [vmem:[#allocation6 + $0x40] sm:$0xf]  ;;  %v4078_v11 = vld [vmem:[#allocation6 + $0x2c] sm:$0xf0] }
 0x105   :  { %v629_v34 = vadd.f32 %v628_v20, %v627_v6  ;;  %v680_v35 = vrot.slane %v679_v21, 1  ;;  %1678 = vmatpush.bf16.msrb.mxu3 %v3673_v61  ;;  %v3512_v20 = vld [vmem:[#allocation6 + $0x260] sm:$0xf]  ;;  %1660 = vmatpush.bf16.msrb.mxu2 %v3529_v2  ;;  %v707_v57 = vmul.f32 %v4861_v33, %v4839_v19  ;;  %v4178_v2 = vld [vmem:[#allocation6 + $0x34c] sm:$0xf0]  ;;  %vm713_vm11 = vweird.f32 %v4861_v33 }
 0x106   :  { %v688_v58 = vmul.f32 0.03125, %v672_v38  ;;  %v692_v60 = vmul.f32 %v4843_v39, %v4843_v39  ;;  %1622 = vmatpush.bf16.msra.mxu0 %v3273_v8  ;;  %1641 = vmatpush.bf16.msra.mxu1 %v3401_v17  ;;  %v3640_v38 = vld [vmem:[#allocation6 + $0x360] sm:$0xf]  ;;  %vm714_vm14 = vmor %vm712_vm12, %vm713_vm11 }
 0x107   :  { %v681_v45 = vadd.f32 %v680_v35, %v679_v21  ;;  %v4846_v47 = vmul.f32 0.03125, %v629_v34  ;;  %v4150_v21 = vld [vmem:[#allocation6 + $0x26c] sm:$0xf0]  ;;  %v719_v34 = vmul.f32 0.5, %v718_v63  ;;  %v3368_v61 = vld [vmem:[#allocation6 + $0x140] sm:$0xf] }
 0x108   :  { %v696_v6 = vsub.f32 %v688_v58, %v692_v60  ;;  %v3513_v27 = vor.u32 %v4150_v21, %v3512_v20  ;;  %v3497_v58 = vor.u32 %v4146_v48, %v3496_v43  ;;  %v4082_v60 = vld [vmem:[#allocation6 + $0x4c] sm:$0xf0]  ;;  %v3480_v5 = vld [vmem:[#allocation6 + $0x220] sm:$0xf]  ;;  %v3465_v48 = vor.u32 %v4138_v32, %v3464_v31  ;;  %v4160_v31 = vld [vmem:[#allocation6 + $0x2c4] sm:$0xf] }
 0x109   :  { %v689_v0 = vmul.f32 0.03125, %v681_v45  ;;  %v693_v1 = vmul.f32 %v4846_v47, %v4846_v47  ;;  %1679 = vmatpush.bf16.msrb.mxu3 %v3657_v18  ;;  %v3641_v45 = vor.u32 %v4182_v42, %v3640_v38  ;;  %v720_v62 = vsub.f32 1.5, %v719_v34  ;;  %v3224_v8 = vld [vmem:[#allocation6 + $0x20] sm:$0xf]  ;;  %v4174_v20 = vld [vmem:[#allocation6 + $0x32c] sm:$0xf0] }
 0x10a   :  { %v700_v26 = vmax.f32 %v696_v6, 0.0  ;;  %1661 = vmatpush.bf16.msrb.mxu2 %v3513_v27  ;;  %1623 = vmatpush.bf16.msra.mxu0 %v3257_v36  ;;  %v3241_v63 = vor.u32 %v4082_v60, %v3240_v55  ;;  %v4142_v6 = vld [vmem:[#allocation6 + $0x22c] sm:$0xf0]  ;;  %v3608_v18 = vld [vmem:[#allocation6 + $0x320] sm:$0xf]  ;;  %v3225_v21 = vor.u32 %v4078_v11, %v3224_v8 }
 0x10b   :  { %v697_v16 = vsub.f32 %v689_v0, %v693_v1  ;;  %1642 = vmatpush.bf16.msra.mxu1 %v3385_v41  ;;  %v3369_v0 = vor.u32 %v4114_v28, %v3368_v61  ;;  %v3624_v1 = vld [vmem:[#allocation6 + $0x340] sm:$0xf]  ;;  %v3481_v17 = vor.u32 %v4142_v6, %v3480_v5  ;;  %v3609_v27 = vor.u32 %v4174_v20, %v3608_v18  ;;  %v4074_v38 = vld [vmem:[#allocation6 + $0xc] sm:$0xf0]  ;;  %v3578_v5 = vld [vmem:[#allocation6 + $0x2f0] sm:$0xf0] }
 0x10c   :  { %v4863_v40 = vadd.f32 1e-05, %v700_v26  ;;  %v3625_v4 = vor.u32 %v4178_v2, %v3624_v1  ;;  %v3208_v34 = vld [vmem:[#allocation6] sm:$0xf]  ;;  %v721_v36 = vmul.f32 %v4837_v15, %v720_v62  ;;  %v4106_v42 = vld [vmem:[#allocation6 + $0x10c] sm:$0xf0] }
 0x10d   :  { %v701_v35 = vmax.f32 %v697_v16, 0.0  ;;  %1680 = vmatpush.bf16.msrb.mxu3 %v3641_v45  ;;  %v708_v16 = vmul.f32 %v4861_v33, %v707_v57  ;;  %v3336_v41 = vld [vmem:[#allocation6 + $0x100] sm:$0xf]  ;;  %v4170_v57 = vld [vmem:[#allocation6 + $0x30c] sm:$0xf0]  ;;  %v3209_v60 = vor.u32 %v4074_v38, %v3208_v34 }
 0x10e   :  { %4312 = vrsqrt.f32 %v4863_v40  ;;  %1662 = vmatpush.bf16.msrb.mxu2 %v3497_v58  ;;  %1624 = vmatpush.bf16.msra.mxu0 %v3241_v63  ;;  %v3592_v55 = vld [vmem:[#allocation6 + $0x300] sm:$0xf]  ;;  %v3337_v61 = vor.u32 %v4106_v42, %v3336_v41  ;;  %v725_v10 = vsel %vm4886_vm3, %v4837_v15, %v721_v36  ;;  %vm732_vm6 = vweird.f32 %v4863_v40  ;;  %v4100_v11 = vld [vmem:[#allocation6 + $0xe4] sm:$0xf]  ;;  %v3450_v20 = vld [vmem:[#allocation6 + $0x1f0] sm:$0xf0] }
 0x10f   :  { %v4865_v29 = vadd.f32 1e-05, %v701_v35  ;;  %1643 = vmatpush.bf16.msra.mxu1 %v3369_v0  ;;  %v709_v43 = vmul.f32 0.5, %v708_v16  ;;  %v3593_v63 = vor.u32 %v4170_v57, %v3592_v55  ;;  %v750_v13 = vrot.slane %v725_v10, 7  ;;  %v4132_v18 = vld [vmem:[#allocation6 + $0x1e4] sm:$0xf] }
 0x110   :  { %v4096_v38 = vld [vmem:[#allocation6 + $0xc4] sm:$0xf]  ;;  %v3306_v41 = vld [vmem:[#allocation6 + $0xd0] sm:$0xf0] }
 0x111   :  { %4314 = vrsqrt.f32 %v4865_v29  ;;  %1681 = vmatpush.bf16.msrb.mxu3 %v3625_v4  ;;  %v710_v1 = vsub.f32 1.5, %v709_v43  ;;  %v4164_v4 = vld [vmem:[#allocation6 + $0x2e4] sm:$0xf]  ;;  %vm742_vm8 = vweird.f32 %v4865_v29  ;;  %v3434_v55 = vld [vmem:[#allocation6 + $0x1d0] sm:$0xf0] }
 0x112   :  { %1663 = vmatpush.bf16.msrb.mxu2 %v3481_v17  ;;  %1625 = vmatpush.bf16.msra.mxu0 %v3225_v21  ;;  %v3581_v15 = vor.u32 %v4164_v4, %v3578_v5  ;;  %v3325_v17 = vor.u32 %v4100_v11, %v3322_v12  ;;  %v3453_v21 = vor.u32 %v4132_v18, %v3450_v20  ;;  %v4192_v57 = vld [vmem:[#allocation6 + $0x3c4] sm:$0xf]  ;;  %v3290_v4 = vld [vmem:[#allocation6 + $0xb0] sm:$0xf0] }
 0x113   :  { %1644 = vmatpush.bf16.msra.mxu1 %v3353_v25  ;;  %v4196_v25 = vld [vmem:[#allocation6 + $0x3e4] sm:$0xf]  ;;  %v711_v32 = vmul.f32 %v4861_v33, %v710_v1 }
 0x114   :  { %v4872_v26 = vpop.eup %4312  ;;  %v4092_v1 = vld [vmem:[#allocation6 + $0xa4] sm:$0xf] }
 0x115   :  { %v727_v37 = vmul.f32 %v4872_v26, %v4863_v40  ;;  %vm733_vm4 = vweird.f32 %v4872_v26  ;;  %1682 = vmatpush.bf16.msrb.mxu3 %v3609_v27  ;;  %v3706_v27 = vld [vmem:[#allocation6 + $0x3f0] sm:$0xf0]  ;;  %v4124_v5 = vld [vmem:[#allocation6 + $0x1a4] sm:$0xf]  ;;  %v3293_v19 = vor.u32 %v4092_v1, %v3290_v4 }
 0x116   :  { %1664 = vmatpush.bf16.msrb.mxu2 %v3465_v48  ;;  %vm4897_vm7 = vmor %vm732_vm6, %vm733_vm4  ;;  %1626 = vmatpush.bf16.msra.mxu0 %v3209_v60  ;;  %v3709_v36 = vor.u32 %v4196_v25, %v3706_v27  ;;  %v4128_v48 = vld [vmem:[#allocation6 + $0x1c4] sm:$0xf]  ;;  %v592_v60 = vld [vmem:[%s5522_s3] sm:$0xf] }
 0x117   :  { %v4874_v35 = vpop.eup %4314  ;;  %v728_v58 = vmul.f32 %v4872_v26, %v727_v37  ;;  %1645 = vmatpush.bf16.msra.mxu1 %v3337_v61  ;;  %v3562_v37 = vld [vmem:[#allocation6 + $0x2d0] sm:$0xf0]  ;;  %v3437_v28 = vor.u32 %v4128_v48, %v3434_v55  ;;  %v4188_v12 = vld [vmem:[#allocation6 + $0x3a4] sm:$0xf] }
 0x118   :  { %v737_v45 = vmul.f32 %v4874_v35, %v4865_v29  ;;  %vm743_vm5 = vweird.f32 %v4874_v35  ;;  %v3565_v43 = vor.u32 %v4160_v31, %v3562_v37  ;;  %v4152_v40 = vld [vmem:[#allocation6 + $0x284] sm:$0xf] }
 0x119   :  { %v729_v0 = vmul.f32 0.5, %v728_v58  ;;  %vm4904_vm10 = vmor %vm742_vm8, %vm743_vm5  ;;  %1683 = vmatpush.bf16.msrb.mxu3 %v3593_v63  ;;  %v4088_v20 = vld [vmem:[#allocation6 + $0x84] sm:$0xf] }
 0x11a   :  { %v738_v62 = vmul.f32 %v4874_v35, %v737_v45  ;;  %1733 = vmatpush.bf16.msra.mxu2 %v3581_v15  ;;  %1695 = vmatpush.bf16.msrb.mxu0 %v3325_v17  ;;  %v3309_v45 = vor.u32 %v4096_v38, %v3306_v41  ;;  %v4120_v27 = vld [vmem:[#allocation6 + $0x184] sm:$0xf] }
 0x11b   :  { %v730_v6 = vsub.f32 1.5, %v729_v0  ;;  %1714 = vmatpush.bf16.msrb.mxu1 %v3453_v21  ;;  %v3546_v0 = vld [vmem:[#allocation6 + $0x2b0] sm:$0xf0]  ;;  %v4184_v31 = vld [vmem:[#allocation6 + $0x384] sm:$0xf] }
 0x11c   :  { %v739_v2 = vmul.f32 0.5, %v738_v62  ;;  %v3690_v62 = vld [vmem:[#allocation6 + $0x3d0] sm:$0xf0]  ;;  %v4116_v1 = vld [vmem:[#allocation6 + $0x164] sm:$0xf] }
 0x11d   :  { %v731_v29 = vmul.f32 %v4872_v26, %v730_v6  ;;  %1752 = vmatpush.bf16.msra.mxu3 %v3709_v36  ;;  %v3693_v10 = vor.u32 %v4192_v57, %v3690_v62  ;;  %v3418_v6 = vld [vmem:[#allocation6 + $0x1b0] sm:$0xf0]  ;;  %v593_v57 = vld [vmem:[%s5523_s4] sm:$0xf] }
 0x11e   :  { %v740_v16 = vsub.f32 1.5, %v739_v2  ;;  %1734 = vmatpush.bf16.msra.mxu2 %v3565_v43  ;;  %v715_v2 = vsel %vm714_vm14, %v4861_v33, %v711_v32  ;;  %1696 = vmatpush.bf16.msrb.mxu0 %v3309_v45  ;;  %v3421_v11 = vor.u32 %v4124_v5, %v3418_v6  ;;  %v3530_v33 = vld [vmem:[#allocation6 + $0x290] sm:$0xf0]  ;;  %v4180_v6 = vld [vmem:[#allocation6 + $0x364] sm:$0xf] }
 0x11f   :  { %v735_v42 = vsel %vm4897_vm7, %v4872_v26, %v731_v29  ;;  %v4156_v26 = vld [vmem:[#allocation6 + $0x2a4] sm:$0xf]  ;;  %v754_v8 = vsel %vm753_vm9, %v715_v2, %v750_v13  ;;  %1715 = vmatpush.bf16.msrb.mxu1 %v3437_v28  ;;  %v3274_v29 = vld [vmem:[#allocation6 + $0x90] sm:$0xf0]  ;;  %v3533_v25 = vor.u32 %v4152_v40, %v3530_v33 }
 0x120   :  { %v741_v34 = vmul.f32 %v4874_v35, %v740_v16  ;;  %v751_v58 = vrot.slane %v735_v42, 6  ;;  %v3674_v16 = vld [vmem:[#allocation6 + $0x3b0] sm:$0xf0]  ;;  %v3277_v32 = vor.u32 %v4088_v20, %v3274_v29  ;;  %v4112_v33 = vld [vmem:[#allocation6 + $0x144] sm:$0xf] }
 0x121   :  { %1753 = vmatpush.bf16.msra.mxu3 %v3693_v10  ;;  %v3677_v18 = vor.u32 %v4188_v12, %v3674_v16  ;;  %v3402_v13 = vld [vmem:[#allocation6 + $0x190] sm:$0xf0]  ;;  %v4080_v16 = vld [vmem:[#allocation6 + $0x44] sm:$0xf] }
 0x122   :  { %v745_v61 = vsel %vm4904_vm10, %v4874_v35, %v741_v34  ;;  %v3549_v35 = vor.u32 %v4156_v26, %v3546_v0  ;;  %1697 = vmatpush.bf16.msrb.mxu0 %v3293_v19  ;;  %v3405_v34 = vor.u32 %v4120_v27, %v3402_v13  ;;  %v3658_v36 = vld [vmem:[#allocation6 + $0x390] sm:$0xf0]  ;;  %v4176_v20 = vld [vmem:[#allocation6 + $0x344] sm:$0xf] }
 0x123   :  { %v752_v63 = vrot.slane %v745_v61, 5  ;;  %1716 = vmatpush.bf16.msrb.mxu1 %v3421_v11  ;;  %v3661_v43 = vor.u32 %v4184_v31, %v3658_v36  ;;  %v3514_v62 = vld [vmem:[#allocation6 + $0x270] sm:$0xf0] }
 0x124   :  { %1735 = vmatpush.bf16.msra.mxu2 %v3549_v35  ;;  %v3258_v0 = vld [vmem:[#allocation6 + $0x70] sm:$0xf0] }
 0x125   :  { %v756_v15 = vsel %vm755_vm13, %v751_v58, %v752_v63  ;;  %1754 = vmatpush.bf16.msra.mxu3 %v3677_v18  ;;  %v3386_v2 = vld [vmem:[#allocation6 + $0x170] sm:$0xf0] }
 0x126   :  { %v758_v17 = vsel %vm757_vm15, %v754_v8, %v756_v15  ;;  %1698 = vmatpush.bf16.msrb.mxu0 %v3277_v32  ;;  %v3642_v8 = vld [vmem:[#allocation6 + $0x370] sm:$0xf0] }
 0x127   :  { %v760_v21 = vmul.f32 %v758_v17, %v592_v60  ;;  %1717 = vmatpush.bf16.msrb.mxu1 %v3405_v34  ;;  %v3498_v12 = vld [vmem:[#allocation6 + $0x250] sm:$0xf0]  ;;  %v3389_v17 = vor.u32 %v4116_v1, %v3386_v2  ;;  %v4108_v1 = vld [vmem:[#allocation6 + $0x124] sm:$0xf] }
 0x128   :  { %1736 = vmatpush.bf16.msra.mxu2 %v3533_v25 }
 0x129   :  { %v4930_v37 = vperm.slane %v760_v21, 0  ;;  %v4932_v38 = vperm.slane %v760_v21, 1  ;;  %v4934_v41 = vperm.slane %v760_v21, 2  ;;  %v4936_v42 = vperm.slane %v760_v21, 3  ;;  %1755 = vmatpush.bf16.msra.mxu3 %v3661_v43 }
 0x12b   :  { %v771_v45 = vmul.f32 %v4932_v38, %v4784_v49  ;;  %v772_v48 = vmul.f32 %v4934_v41, %v4843_v39  ;;  %v773_v55 = vmul.f32 %v4936_v42, %v4846_v47  ;;  %v770_v58 = vmul.f32 %v4930_v37, %v4798_v46  ;;  %v4148_v39 = vld [vmem:[#allocation6 + $0x264] sm:$0xf]  ;;  %1718 = vmatpush.bf16.msrb.mxu1 %v3389_v17 }
 0x12c   :  { %v801_v49 = vmul.f32 %v4936_v42, %v4825_v14  ;;  %v4084_v47 = vld [vmem:[#allocation6 + $0x64] sm:$0xf]  ;;  %v786_v10 = vmul.f32 %v4930_v37, %v4738_v50  ;;  %v790_v46 = vmul.f32 %v4930_v37, %v4750_v56  ;;  %v787_v14 = vmul.f32 %v4932_v38, %v4740_v51  ;;  %v3242_v51 = vld [vmem:[#allocation6 + $0x50] sm:$0xf0] }
 0x12d   :  { %v778_v60 = vrot.slane %v771_v45, 7  ;;  %v779_v61 = vrot.slane %v772_v48, 6  ;;  %v780_v28 = vrot.slane %v773_v55, 5  ;;  %v791_v4 = vmul.f32 %v4932_v38, %v4756_v59  ;;  %v4144_v50 = vld [vmem:[#allocation6 + $0x244] sm:$0xf] }
 0x12e   :  { %v788_v5 = vmul.f32 %v4934_v41, %v4778_v22  ;;  %v792_v56 = vmul.f32 %v4934_v41, %v4782_v44  ;;  %v789_v19 = vmul.f32 %v4936_v42, %v4780_v23  ;;  %v3517_v11 = vor.u32 %v4148_v39, %v3514_v62  ;;  %v3370_v22 = vld [vmem:[#allocation6 + $0x150] sm:$0xf0] }
 0x12f   :  { %v781_v26 = vsel %vm753_vm9, %v770_v58, %v778_v60  ;;  %v782_v63 = vsel %vm755_vm13, %v779_v61, %v780_v28  ;;  %v3261_v40 = vor.u32 %v4084_v47, %v3258_v0  ;;  %v3645_v59 = vor.u32 %v4180_v6, %v3642_v8  ;;  %v3626_v23 = vld [vmem:[#allocation6 + $0x350] sm:$0xf0]  ;;  %v4076_v0 = vld [vmem:[#allocation6 + $0x24] sm:$0xf] }
 0x130   :  { %v783_v35 = vsel %vm757_vm15, %v781_v26, %v782_v63  ;;  %v3501_v18 = vor.u32 %v4144_v50, %v3498_v12  ;;  %1737 = vmatpush.bf16.msra.mxu2 %v3517_v11  ;;  %v793_v27 = vmul.f32 %v4936_v42, %v4786_v54  ;;  %v3245_v13 = vor.u32 %v4080_v16, %v3242_v51  ;;  %v4140_v26 = vld [vmem:[#allocation6 + $0x224] sm:$0xf]  ;;  %v3482_v63 = vld [vmem:[#allocation6 + $0x230] sm:$0xf0] }
 0x131   :  { %v785_v15 = vsub.f32 %v593_v57, %v783_v35  ;;  %1699 = vmatpush.bf16.msrb.mxu0 %v3261_v40  ;;  %v3373_v31 = vor.u32 %v4112_v33, %v3370_v22  ;;  %1756 = vmatpush.bf16.msra.mxu3 %v3645_v59  ;;  %v3629_v43 = vor.u32 %v4176_v20, %v3626_v23  ;;  %v3610_v8 = vld [vmem:[#allocation6 + $0x330] sm:$0xf0]  ;;  %v4136_v50 = vld [vmem:[#allocation6 + $0x204] sm:$0xf]  ;;  %v3584_v23 = vld [vmem:[#allocation6 + $0x2e8] sm:$0xf] }
 0x132   :  { %v3466_v11 = vld [vmem:[#allocation6 + $0x210] sm:$0xf0]  ;;  %v4072_v12 = vld [vmem:[#allocation6 + $0x4] sm:$0xf]  ;;  %v795_v51 = vmul.f32 %v4932_v38, %v4744_v53  ;;  %v799_v40 = vmul.f32 %v4932_v38, %v4773_v7  ;;  %v796_v17 = vmul.f32 %v4934_v41, %v4790_v24  ;;  %v3485_v59 = vor.u32 %v4140_v26, %v3482_v63  ;;  %v4167_v7 = vld [vmem:[#allocation6 + $0x2f4] sm:$0xf0] }
 0x133   :  { %v4968_v29 = vperm.slane %v785_v15, 3  ;;  %v4970_v21 = vperm.slane %v785_v15, 0  ;;  %v4972_v25 = vperm.slane %v785_v15, 1  ;;  %v4974_v44 = vperm.slane %v785_v15, 2  ;;  %1719 = vmatpush.bf16.msrb.mxu1 %v3373_v31  ;;  %v3210_v16 = vld [vmem:[#allocation6 + $0x10] sm:$0xf0] }
 0x134   :  { %1738 = vmatpush.bf16.msra.mxu2 %v3501_v18  ;;  %v4104_v18 = vld [vmem:[#allocation6 + $0x104] sm:$0xf]  ;;  %v3338_v33 = vld [vmem:[#allocation6 + $0x110] sm:$0xf0]  ;;  %v3328_v31 = vld [vmem:[#allocation6 + $0xe8] sm:$0xf] }
 0x135   :  { %v811_v32 = vadd.f32 %v4970_v21, %v786_v10  ;;  %v815_v34 = vadd.f32 %v4970_v21, %v790_v46  ;;  %v812_v36 = vadd.f32 %v4972_v25, %v787_v14  ;;  %v816_v45 = vadd.f32 %v4972_v25, %v791_v4  ;;  %1700 = vmatpush.bf16.msrb.mxu0 %v3245_v13  ;;  %v3354_v4 = vld [vmem:[#allocation6 + $0x130] sm:$0xf0]  ;;  %v4168_v22 = vld [vmem:[#allocation6 + $0x304] sm:$0xf]  ;;  %v4099_v26 = vld [vmem:[#allocation6 + $0xd4] sm:$0xf0] }
 0x136   :  { %v813_v48 = vadd.f32 %v4974_v44, %v788_v5  ;;  %v817_v55 = vadd.f32 %v4974_v44, %v792_v56  ;;  %v814_v54 = vadd.f32 %v4968_v29, %v789_v19  ;;  %v4986_v57 = vadd.f32 %v4968_v29, %v801_v49  ;;  %1757 = vmatpush.bf16.msra.mxu3 %v3629_v43  ;;  %v3226_v49 = vld [vmem:[#allocation6 + $0x30] sm:$0xf0]  ;;  %v4172_v5 = vld [vmem:[#allocation6 + $0x324] sm:$0xf]  ;;  %v4199_v43 = vld [vmem:[#allocation6 + $0x3f4] sm:$0xf0] }
 0x137   :  { %v827_v58 = vmax.f32 %v811_v32, 0.0  ;;  %v831_v60 = vmax.f32 %v815_v34, 0.0  ;;  %v828_v61 = vmax.f32 %v812_v36, 0.0  ;;  %v832_v28 = vmax.f32 %v816_v45, 0.0  ;;  %v3594_v20 = vld [vmem:[#allocation6 + $0x310] sm:$0xf0] }
 0x138   :  { %v829_v39 = vmax.f32 %v813_v48, 0.0  ;;  %v833_v62 = vmax.f32 %v817_v55, 0.0  ;;  %v818_v47 = vadd.f32 %v4968_v29, %v793_v27  ;;  %v830_v46 = vmax.f32 %v814_v54, 0.0  ;;  %1739 = vmatpush.bf16.msra.mxu2 %v3485_v59  ;;  %v4103_v32 = vld [vmem:[#allocation6 + $0xf4] sm:$0xf0] }
 0x139   :  { %v4989_v10 = vpack.c.bf16 %v831_v60, %v827_v58  ;;  %v4991_v2 = vpack.c.bf16 %v832_v28, %v828_v61  ;;  %v842_v6 = vmax.f32 %v4986_v57, 0.0  ;;  %v794_v56 = vmul.f32 %v4930_v37, %v4742_v52  ;;  %v3456_v34 = vld [vmem:[#allocation6 + $0x1e8] sm:$0xf] }
 0x13a   :  { %v4993_v35 = vpack.c.bf16 %v833_v62, %v829_v39  ;;  %v834_v14 = vmax.f32 %v818_v47, 0.0  ;;  %v798_v19 = vmul.f32 %v4930_v37, %v4767_v3  ;;  %v800_v52 = vmul.f32 %v4934_v41, %v4816_v9  ;;  %v3712_v36 = vld [vmem:[#allocation6 + $0x3e8] sm:$0xf]  ;;  %v4163_v39 = vld [vmem:[#allocation6 + $0x2d4] sm:$0xf0] }
 0x13b   :  { %1627 = vmatmul.bf16.vlgmr.msra.gmra.mxu0 %v4989_v10  ;;  %1646 = vmatmul.bf16.vlgmr.msra.gmra.mxu1 %v4991_v2  ;;  %v797_v3 = vmul.f32 %v4936_v42, %v4792_v30  ;;  %v3229_v37 = vor.u32 %v4076_v0, %v3226_v49  ;;  %v3357_v53 = vor.u32 %v4108_v1, %v3354_v4  ;;  %v4135_v42 = vld [vmem:[#allocation6 + $0x1f4] sm:$0xf0]  ;;  %v3568_v28 = vld [vmem:[#allocation6 + $0x2c8] sm:$0xf] }
 0x13c   :  { %1665 = vmatmul.bf16.vlgmr.msrb.gmra.mxu2 %v4993_v35  ;;  %v4999_v15 = vpack.c.bf16 %v834_v14, %v830_v46  ;;  %v819_v38 = vadd.f32 %v4970_v21, %v794_v56  ;;  %v823_v24 = vadd.f32 %v4970_v21, %v798_v19  ;;  %v3613_v27 = vor.u32 %v4172_v5, %v3610_v8  ;;  %v3312_v62 = vld [vmem:[#allocation6 + $0xc8] sm:$0xf]  ;;  %v4131_v46 = vld [vmem:[#allocation6 + $0x1d4] sm:$0xf0] }
 0x13d   :  { %v3469_v13 = vor.u32 %v4136_v50, %v3466_v11  ;;  %v820_v9 = vadd.f32 %v4972_v25, %v795_v51  ;;  %1701 = vmatpush.bf16.msrb.mxu0 %v3229_v37  ;;  %1720 = vmatpush.bf16.msrb.mxu1 %v3357_v53  ;;  %v3213_v30 = vor.u32 %v4072_v12, %v3210_v16  ;;  %v3440_v63 = vld [vmem:[#allocation6 + $0x1c8] sm:$0xf]  ;;  %v4195_v1 = vld [vmem:[#allocation6 + $0x3d4] sm:$0xf0] }
 0x13e   :  { %1684 = vmatmul.bf16.vlgmr.msrb.gmra.mxu3 %v4999_v15  ;;  %v3341_v41 = vor.u32 %v4104_v18, %v3338_v33  ;;  %v824_v45 = vadd.f32 %v4972_v25, %v799_v40  ;;  %v821_v48 = vadd.f32 %v4974_v44, %v796_v17  ;;  %v3597_v21 = vor.u32 %v4168_v22, %v3594_v20  ;;  %v3696_v49 = vld [vmem:[#allocation6 + $0x3c8] sm:$0xf]  ;;  %v4159_v11 = vld [vmem:[#allocation6 + $0x2b4] sm:$0xf0] }
 0x13f   :  { %1758 = vmatpush.bf16.msra.mxu3 %v3613_v27  ;;  %v3585_v55 = vor.u32 %v4167_v7, %v3584_v23  ;;  %v825_v54 = vadd.f32 %v4974_v44, %v800_v52  ;;  %v822_v58 = vadd.f32 %v4968_v29, %v797_v3  ;;  %v3329_v60 = vor.u32 %v4103_v32, %v3328_v31  ;;  %v3552_v19 = vld [vmem:[#allocation6 + $0x2a8] sm:$0xf]  ;;  %v4095_v51 = vld [vmem:[#allocation6 + $0xb4] sm:$0xf0] }
 0x140   :  { %v3457_v61 = vor.u32 %v4135_v42, %v3456_v34  ;;  %1740 = vmatpush.bf16.msra.mxu2 %v3469_v13  ;;  %v3713_v47 = vor.u32 %v4199_v43, %v3712_v36  ;;  %v835_v25 = vmax.f32 %v819_v38, 0.0  ;;  %v839_v0 = vmax.f32 %v823_v24, 0.0  ;;  %v3296_v16 = vld [vmem:[#allocation6 + $0xa8] sm:$0xf]  ;;  %v4127_v17 = vld [vmem:[#allocation6 + $0x1b4] sm:$0xf0] }
 0x141   :  { %1702 = vmatpush.bf16.msrb.mxu0 %v3213_v30  ;;  %1721 = vmatpush.bf16.msrb.mxu1 %v3341_v41  ;;  %v836_v14 = vmax.f32 %v820_v9, 0.0  ;;  %v840_v44 = vmax.f32 %v824_v45, 0.0  ;;  %v837_v4 = vmax.f32 %v821_v48, 0.0  ;;  %v3569_v29 = vor.u32 %v4163_v39, %v3568_v28  ;;  %v3424_v40 = vld [vmem:[#allocation6 + $0x1a8] sm:$0xf] }
 0x142   :  { %v841_v5 = vmax.f32 %v825_v54, 0.0  ;;  %v838_v8 = vmax.f32 %v822_v58, 0.0  ;;  %v3313_v50 = vor.u32 %v4099_v26, %v3312_v62  ;;  %v3441_v56 = vor.u32 %v4131_v46, %v3440_v63  ;;  %v3680_v59 = vld [vmem:[#allocation6 + $0x3a8] sm:$0xf]  ;;  %v4191_v18 = vld [vmem:[#allocation6 + $0x3b4] sm:$0xf0] }
 0x143   :  { %1759 = vmatpush.bf16.msra.mxu3 %v3597_v21  ;;  %v3697_v12 = vor.u32 %v4195_v1, %v3696_v49  ;;  %v5023_v33 = vpack.c.bf16 %v839_v0, %v835_v25  ;;  %v3553_v22 = vor.u32 %v4159_v11, %v3552_v19  ;;  %v5025_v52 = vpack.c.bf16 %v840_v44, %v836_v14  ;;  %v3536_v53 = vld [vmem:[#allocation6 + $0x288] sm:$0xf]  ;;  %v4155_v20 = vld [vmem:[#allocation6 + $0x294] sm:$0xf0] }
 0x144   :  { %1809 = vmatpush.bf16.msrb.mxu2 %v3585_v55  ;;  %v5027_v3 = vpack.c.bf16 %v841_v5, %v837_v4  ;;  %v3297_v37 = vor.u32 %v4095_v51, %v3296_v16  ;;  %v3425_v23 = vor.u32 %v4127_v17, %v3424_v40  ;;  %v3681_v7 = vor.u32 %v4191_v18, %v3680_v59  ;;  %v3280_v38 = vld [vmem:[#allocation6 + $0x88] sm:$0xf]  ;;  %v4091_v24 = vld [vmem:[#allocation6 + $0x94] sm:$0xf0] }
 0x145   :  { %1771 = vmatpush.bf16.msra.mxu0 %v3329_v60  ;;  %1790 = vmatpush.bf16.msra.mxu1 %v3457_v61  ;;  %v3408_v27 = vld [vmem:[#allocation6 + $0x188] sm:$0xf]  ;;  %v5034_v13 = vpack.c.bf16 %v842_v6, %v838_v8  ;;  %v4123_v31 = vld [vmem:[#allocation6 + $0x194] sm:$0xf0]  ;;  %v3537_v9 = vor.u32 %v4155_v20, %v3536_v53  ;;  %v3281_v30 = vor.u32 %v4091_v24, %v3280_v38  ;;  %v4165_v38 = vld [vmem:[#allocation6 + $0x2ec] sm:$0xf] }
 0x146   :  { %v3664_v32 = vld [vmem:[#allocation6 + $0x388] sm:$0xf]  ;;  %v4187_v34 = vld [vmem:[#allocation6 + $0x394] sm:$0xf0]  ;;  %v3409_v36 = vor.u32 %v4123_v31, %v3408_v27  ;;  %v3586_v24 = vld [vmem:[#allocation6 + $0x2f8] sm:$0xf0] }
 0x147   :  { %1828 = vmatpush.bf16.msrb.mxu3 %v3713_v47  ;;  %v3520_v41 = vld [vmem:[#allocation6 + $0x268] sm:$0xf]  ;;  %v4151_v42 = vld [vmem:[#allocation6 + $0x274] sm:$0xf0]  ;;  %v3665_v43 = vor.u32 %v4187_v34, %v3664_v32  ;;  %v4101_v27 = vld [vmem:[#allocation6 + $0xec] sm:$0xf]  ;;  %v3589_v32 = vor.u32 %v4165_v38, %v3586_v24 }
 0x148   :  { %1810 = vmatpush.bf16.msrb.mxu2 %v3569_v29  ;;  %v3264_v45 = vld [vmem:[#allocation6 + $0x68] sm:$0xf]  ;;  %v4087_v48 = vld [vmem:[#allocation6 + $0x74] sm:$0xf0]  ;;  %v3521_v54 = vor.u32 %v4151_v42, %v3520_v41  ;;  %v3330_v34 = vld [vmem:[#allocation6 + $0xf8] sm:$0xf0] }
 0x149   :  { %1772 = vmatpush.bf16.msra.mxu0 %v3313_v50  ;;  %1791 = vmatpush.bf16.msra.mxu1 %v3441_v56  ;;  %v3392_v57 = vld [vmem:[#allocation6 + $0x168] sm:$0xf]  ;;  %v4119_v6 = vld [vmem:[#allocation6 + $0x174] sm:$0xf0]  ;;  %v3265_v58 = vor.u32 %v4087_v48, %v3264_v45  ;;  %v3333_v41 = vor.u32 %v4101_v27, %v3330_v34  ;;  %v4161_v45 = vld [vmem:[#allocation6 + $0x2cc] sm:$0xf] }
 0x14a   :  { %v3648_v21 = vld [vmem:[#allocation6 + $0x368] sm:$0xf]  ;;  %v4183_v55 = vld [vmem:[#allocation6 + $0x374] sm:$0xf0]  ;;  %v3393_v28 = vor.u32 %v4119_v6, %v3392_v57  ;;  %v3570_v57 = vld [vmem:[#allocation6 + $0x2d8] sm:$0xf0] }
 0x14b   :  { %1632 = vmatmul.bf16.gmra.mxu0 %v5023_v33  ;;  %1829 = vmatpush.bf16.msrb.mxu3 %v3697_v12  ;;  %v3504_v60 = vld [vmem:[#allocation6 + $0x248] sm:$0xf]  ;;  %v4147_v61 = vld [vmem:[#allocation6 + $0x254] sm:$0xf0]  ;;  %v3649_v39 = vor.u32 %v4183_v55, %v3648_v21  ;;  %v4097_v6 = vld [vmem:[#allocation6 + $0xcc] sm:$0xf] }
 0x14c   :  { %1651 = vmatmul.bf16.gmra.mxu1 %v5025_v52  ;;  %1670 = vmatmul.bf16.gmra.mxu2 %v5027_v3  ;;  %v3248_v62 = vld [vmem:[#allocation6 + $0x48] sm:$0xf]  ;;  %v4083_v47 = vld [vmem:[#allocation6 + $0x54] sm:$0xf0]  ;;  %v3505_v46 = vor.u32 %v4147_v61, %v3504_v60  ;;  %v3314_v21 = vld [vmem:[#allocation6 + $0xd8] sm:$0xf0] }
 0x14d   :  { %1811 = vmatpush.bf16.msrb.mxu2 %v3553_v22  ;;  %1773 = vmatpush.bf16.msra.mxu0 %v3297_v37  ;;  %v3376_v26 = vld [vmem:[#allocation6 + $0x148] sm:$0xf]  ;;  %v4115_v63 = vld [vmem:[#allocation6 + $0x154] sm:$0xf0]  ;;  %v3249_v0 = vor.u32 %v4083_v47, %v3248_v62  ;;  %v3442_v60 = vld [vmem:[#allocation6 + $0x1d8] sm:$0xf0] }
 0x14e   :  { %1689 = vmatmul.bf16.gmra.mxu3 %v5034_v13  ;;  %1792 = vmatpush.bf16.msra.mxu1 %v3425_v23  ;;  %v3632_v25 = vld [vmem:[#allocation6 + $0x348] sm:$0xf]  ;;  %v4179_v49 = vld [vmem:[#allocation6 + $0x354] sm:$0xf0]  ;;  %v3377_v44 = vor.u32 %v4115_v63, %v3376_v26  ;;  %v4193_v61 = vld [vmem:[#allocation6 + $0x3cc] sm:$0xf] }
 0x14f   :  { %1830 = vmatpush.bf16.msrb.mxu3 %v3681_v7  ;;  %v3488_v1 = vld [vmem:[#allocation6 + $0x228] sm:$0xf]  ;;  %v4143_v14 = vld [vmem:[#allocation6 + $0x234] sm:$0xf0]  ;;  %v3633_v50 = vor.u32 %v4179_v49, %v3632_v25  ;;  %v4157_v62 = vld [vmem:[#allocation6 + $0x2ac] sm:$0xf] }
 0x150   :  { %v3232_v4 = vld [vmem:[#allocation6 + $0x28] sm:$0xf]  ;;  %v4079_v29 = vld [vmem:[#allocation6 + $0x34] sm:$0xf0]  ;;  %v3489_v56 = vor.u32 %v4143_v14, %v3488_v1  ;;  %v3554_v47 = vld [vmem:[#allocation6 + $0x2b8] sm:$0xf0] }
 0x151   :  { %1812 = vmatpush.bf16.msrb.mxu2 %v3537_v9  ;;  %1774 = vmatpush.bf16.msra.mxu0 %v3281_v30  ;;  %v3360_v5 = vld [vmem:[#allocation6 + $0x128] sm:$0xf]  ;;  %v4111_v8 = vld [vmem:[#allocation6 + $0x134] sm:$0xf0]  ;;  %v3233_v11 = vor.u32 %v4079_v29, %v3232_v4  ;;  %v4133_v9 = vld [vmem:[#allocation6 + $0x1ec] sm:$0xf]  ;;  %v3557_v25 = vor.u32 %v4157_v62, %v3554_v47 }
 0x152   :  { %1793 = vmatpush.bf16.msra.mxu1 %v3409_v36  ;;  %v3616_v19 = vld [vmem:[#allocation6 + $0x328] sm:$0xf]  ;;  %v4175_v12 = vld [vmem:[#allocation6 + $0x334] sm:$0xf0]  ;;  %v3361_v40 = vor.u32 %v4111_v8, %v3360_v5  ;;  %v3458_v30 = vld [vmem:[#allocation6 + $0x1f8] sm:$0xf0] }
 0x153   :  { %1831 = vmatpush.bf16.msrb.mxu3 %v3665_v43  ;;  %v3472_v16 = vld [vmem:[#allocation6 + $0x208] sm:$0xf]  ;;  %v4139_v51 = vld [vmem:[#allocation6 + $0x214] sm:$0xf0]  ;;  %v3617_v37 = vor.u32 %v4175_v12, %v3616_v19  ;;  %v3461_v42 = vor.u32 %v4133_v9, %v3458_v30  ;;  %v4197_v36 = vld [vmem:[#allocation6 + $0x3ec] sm:$0xf] }
 0x154   :  { %v3216_v17 = vld [vmem:[#allocation6 + $0x8] sm:$0xf]  ;;  %v4075_v59 = vld [vmem:[#allocation6 + $0x14] sm:$0xf0]  ;;  %v3473_v53 = vor.u32 %v4139_v51, %v3472_v16  ;;  %v3714_v43 = vld [vmem:[#allocation6 + $0x3f8] sm:$0xf0] }
 0x155   :  { %1813 = vmatpush.bf16.msrb.mxu2 %v3521_v54  ;;  %1775 = vmatpush.bf16.msra.mxu0 %v3265_v58  ;;  %v3344_v18 = vld [vmem:[#allocation6 + $0x108] sm:$0xf]  ;;  %v4107_v22 = vld [vmem:[#allocation6 + $0x114] sm:$0xf0]  ;;  %v3217_v7 = vor.u32 %v4075_v59, %v3216_v17  ;;  %v3717_v55 = vor.u32 %v4197_v36, %v3714_v43  ;;  %v3573_v54 = vor.u32 %v4161_v45, %v3570_v57  ;;  %v4129_v58 = vld [vmem:[#allocation6 + $0x1cc] sm:$0xf] }
 0x156   :  { %1794 = vmatpush.bf16.msra.mxu1 %v3393_v28  ;;  %v3600_v20 = vld [vmem:[#allocation6 + $0x308] sm:$0xf]  ;;  %v4171_v23 = vld [vmem:[#allocation6 + $0x314] sm:$0xf0]  ;;  %v3345_v31 = vor.u32 %v4107_v22, %v3344_v18  ;;  %v3317_v28 = vor.u32 %v4097_v6, %v3314_v21  ;;  %v3445_v26 = vor.u32 %v4129_v58, %v3442_v60  ;;  %v4093_v63 = vld [vmem:[#allocation6 + $0xac] sm:$0xf] }
 0x157   :  { %1832 = vmatpush.bf16.msrb.mxu3 %v3649_v39  ;;  %v3601_v48 = vor.u32 %v4171_v23, %v3600_v20  ;;  %v3698_v39 = vld [vmem:[#allocation6 + $0x3d8] sm:$0xf0]  ;;  %v4125_v49 = vld [vmem:[#allocation6 + $0x1ac] sm:$0xf] }
 0x158   :  { %v3426_v1 = vld [vmem:[#allocation6 + $0x1b8] sm:$0xf0]  ;;  %v4153_v14 = vld [vmem:[#allocation6 + $0x28c] sm:$0xf] }
 0x159   :  { %1814 = vmatpush.bf16.msrb.mxu2 %v3505_v46  ;;  %1776 = vmatpush.bf16.msra.mxu0 %v3249_v0  ;;  %v3701_v46 = vor.u32 %v4193_v61, %v3698_v39  ;;  %v3298_v0 = vld [vmem:[#allocation6 + $0xb8] sm:$0xf0]  ;;  %v4189_v4 = vld [vmem:[#allocation6 + $0x3ac] sm:$0xf]  ;;  %v3429_v8 = vor.u32 %v4125_v49, %v3426_v1 }
 0x15a   :  { %1795 = vmatpush.bf16.msra.mxu1 %v3377_v44  ;;  %v3538_v44 = vld [vmem:[#allocation6 + $0x298] sm:$0xf0]  ;;  %v3301_v5 = vor.u32 %v4093_v63, %v3298_v0  ;;  %v4185_v51 = vld [vmem:[#allocation6 + $0x38c] sm:$0xf] }
 0x15b   :  { %1703 = vmatmul.bf16.vlgmr.msrb.gmra.mxu0 %v4989_v10  ;;  %1833 = vmatpush.bf16.msrb.mxu3 %v3633_v50  ;;  %v3682_v29 = vld [vmem:[#allocation6 + $0x3b8] sm:$0xf0]  ;;  %v4089_v50 = vld [vmem:[#allocation6 + $0x8c] sm:$0xf] }
 0x15c   :  { %1722 = vmatmul.bf16.vlgmr.msrb.gmra.mxu1 %v4991_v2  ;;  %1741 = vmatmul.bf16.vlgmr.msra.gmra.mxu2 %v4993_v35  ;;  %v3282_v19 = vld [vmem:[#allocation6 + $0x98] sm:$0xf0]  ;;  %v3685_v16 = vor.u32 %v4189_v4, %v3682_v29  ;;  %v4149_v18 = vld [vmem:[#allocation6 + $0x26c] sm:$0xf] }
 0x15d   :  { %1815 = vmatpush.bf16.msrb.mxu2 %v3489_v56  ;;  %1777 = vmatpush.bf16.msra.mxu0 %v3233_v11  ;;  %v3541_v56 = vor.u32 %v4153_v14, %v3538_v44  ;;  %v4121_v11 = vld [vmem:[#allocation6 + $0x18c] sm:$0xf]  ;;  %v3410_v12 = vld [vmem:[#allocation6 + $0x198] sm:$0xf0]  ;;  %v3285_v17 = vor.u32 %v4089_v50, %v3282_v19 }
 0x15e   :  { %1760 = vmatmul.bf16.vlgmr.msra.gmra.mxu3 %v4999_v15  ;;  %1796 = vmatpush.bf16.msra.mxu1 %v3361_v40  ;;  %v3666_v40 = vld [vmem:[#allocation6 + $0x398] sm:$0xf0]  ;;  %v3413_v59 = vor.u32 %v4121_v11, %v3410_v12  ;;  %v4181_v24 = vld [vmem:[#allocation6 + $0x36c] sm:$0xf] }
 0x15f   :  { %1834 = vmatpush.bf16.msrb.mxu3 %v3617_v37  ;;  %v3522_v22 = vld [vmem:[#allocation6 + $0x278] sm:$0xf0]  ;;  %v4085_v37 = vld [vmem:[#allocation6 + $0x6c] sm:$0xf] }
 0x160   :  { %v3525_v20 = vor.u32 %v4149_v18, %v3522_v22  ;;  %v3266_v23 = vld [vmem:[#allocation6 + $0x78] sm:$0xf0]  ;;  %v4081_v30 = vld [vmem:[#allocation6 + $0x4c] sm:$0xf] }
 0x161   :  { %1816 = vmatpush.bf16.msrb.mxu2 %v3473_v53  ;;  %1778 = vmatpush.bf16.msra.mxu0 %v3217_v7  ;;  %v3669_v53 = vor.u32 %v4185_v51, %v3666_v40  ;;  %v4117_v7 = vld [vmem:[#allocation6 + $0x16c] sm:$0xf]  ;;  %v3394_v38 = vld [vmem:[#allocation6 + $0x178] sm:$0xf0] }
 0x162   :  { %1797 = vmatpush.bf16.msra.mxu1 %v3345_v31  ;;  %v3650_v27 = vld [vmem:[#allocation6 + $0x378] sm:$0xf0]  ;;  %v4145_v31 = vld [vmem:[#allocation6 + $0x24c] sm:$0xf]  ;;  %v3397_v34 = vor.u32 %v4117_v7, %v3394_v38 }
 0x163   :  { %1835 = vmatpush.bf16.msrb.mxu3 %v3601_v48  ;;  %v3506_v9 = vld [vmem:[#allocation6 + $0x258] sm:$0xf0]  ;;  %v4113_v36 = vld [vmem:[#allocation6 + $0x14c] sm:$0xf]  ;;  %v3653_v45 = vor.u32 %v4181_v24, %v3650_v27 }
 0x164   :  { %v3378_v43 = vld [vmem:[#allocation6 + $0x158] sm:$0xf0]  ;;  %v4141_v48 = vld [vmem:[#allocation6 + $0x22c] sm:$0xf] }
 0x165   :  { %1885 = vmatpush.bf16.msra.mxu2 %v3589_v32  ;;  %1847 = vmatpush.bf16.msrb.mxu0 %v3333_v41  ;;  %v3269_v32 = vor.u32 %v4085_v37, %v3266_v23  ;;  %v3509_v41 = vor.u32 %v4145_v31, %v3506_v9  ;;  %v3490_v57 = vld [vmem:[#allocation6 + $0x238] sm:$0xf0]  ;;  %v4177_v6 = vld [vmem:[#allocation6 + $0x34c] sm:$0xf] }
 0x166   :  { %1866 = vmatpush.bf16.msrb.mxu1 %v3461_v42  ;;  %v3250_v42 = vld [vmem:[#allocation6 + $0x58] sm:$0xf0]  ;;  %v4077_v58 = vld [vmem:[#allocation6 + $0x2c] sm:$0xf]  ;;  %v3493_v60 = vor.u32 %v4141_v48, %v3490_v57  ;;  %v5053_v11 = vpop.f32.mrf.mxu0 }
 0x167   :  { %1904 = vmatpush.bf16.msra.mxu3 %v3717_v55  ;;  %v3634_v21 = vld [vmem:[#allocation6 + $0x358] sm:$0xf0]  ;;  %v3253_v55 = vor.u32 %v4081_v30, %v3250_v42  ;;  %v4137_v47 = vld [vmem:[#allocation6 + $0x20c] sm:$0xf] }
 0x168   :  { %v3234_v61 = vld [vmem:[#allocation6 + $0x38] sm:$0xf0]  ;;  %v3637_v62 = vor.u32 %v4177_v6, %v3634_v21  ;;  %v4173_v63 = vld [vmem:[#allocation6 + $0x32c] sm:$0xf] }
 0x169   :  { %1886 = vmatpush.bf16.msra.mxu2 %v3573_v54  ;;  %1848 = vmatpush.bf16.msrb.mxu0 %v3317_v28  ;;  %v3381_v54 = vor.u32 %v4113_v36, %v3378_v43  ;;  %v4109_v28 = vld [vmem:[#allocation6 + $0x12c] sm:$0xf]  ;;  %v3362_v39 = vld [vmem:[#allocation6 + $0x138] sm:$0xf0] }
 0x16a   :  { %1867 = vmatpush.bf16.msrb.mxu1 %v3445_v26  ;;  %v3474_v26 = vld [vmem:[#allocation6 + $0x218] sm:$0xf0]  ;;  %v3365_v0 = vor.u32 %v4109_v28, %v3362_v39  ;;  %v4073_v49 = vld [vmem:[#allocation6 + $0xc] sm:$0xf] }
 0x16b   :  { %1905 = vmatpush.bf16.msra.mxu3 %v3701_v46  ;;  %1708 = vmatmul.bf16.gmra.mxu0 %v5023_v33  ;;  %v3618_v46 = vld [vmem:[#allocation6 + $0x338] sm:$0xf0]  ;;  %v3477_v1 = vor.u32 %v4137_v47, %v3474_v26  ;;  %v4105_v44 = vld [vmem:[#allocation6 + $0x10c] sm:$0xf] }
 0x16c   :  { %1727 = vmatmul.bf16.gmra.mxu1 %v5025_v52  ;;  %1746 = vmatmul.bf16.gmra.mxu2 %v5027_v3  ;;  %v3218_v14 = vld [vmem:[#allocation6 + $0x18] sm:$0xf0]  ;;  %v3621_v29 = vor.u32 %v4173_v63, %v3618_v46 }
 0x16d   :  { %1887 = vmatpush.bf16.msra.mxu2 %v3557_v25  ;;  %1849 = vmatpush.bf16.msrb.mxu0 %v3301_v5  ;;  %v3237_v25 = vor.u32 %v4077_v58, %v3234_v61  ;;  %v3346_v4 = vld [vmem:[#allocation6 + $0x118] sm:$0xf0]  ;;  %v4169_v5 = vld [vmem:[#allocation6 + $0x30c] sm:$0xf]  ;;  %v3221_v50 = vor.u32 %v4073_v49, %v3218_v14  ;;  %v5055_v12 = vpop.f32.mrf.mxu1  ;;  %v5059_v51 = vpop.f32.mrf.mxu3 }
 0x16e   :  { %1868 = vmatpush.bf16.msrb.mxu1 %v3429_v8  ;;  %1765 = vmatmul.bf16.gmra.mxu3 %v5034_v13  ;;  %v3602_v8 = vld [vmem:[#allocation6 + $0x318] sm:$0xf0]  ;;  %v5064_v40 = vpop.f32.mrf.mxu0 }
 0x16f   :  { %1906 = vmatpush.bf16.msra.mxu3 %v3685_v16  ;;  %v3605_v19 = vor.u32 %v4169_v5, %v3602_v8 }
 0x170   :  { %v5057_v16 = vpop.f32.mrf.mxu2 }
 0x171   :  { %1888 = vmatpush.bf16.msra.mxu2 %v3541_v56  ;;  %1850 = vmatpush.bf16.msrb.mxu0 %v3285_v17  ;;  %v3349_v56 = vor.u32 %v4105_v44, %v3346_v4 }
 0x172   :  { %1869 = vmatpush.bf16.msrb.mxu1 %v3413_v59 }
 0x173   :  { %1907 = vmatpush.bf16.msra.mxu3 %v3669_v53 }
 0x175   :  { %1889 = vmatpush.bf16.msra.mxu2 %v3525_v20  ;;  %1851 = vmatpush.bf16.msrb.mxu0 %v3269_v32  ;;  %v5066_v17 = vpop.f32.mrf.mxu1  ;;  %v5071_v18 = vpop.f32.mrf.mxu3 }
 0x176   :  { %1870 = vmatpush.bf16.msrb.mxu1 %v3397_v34  ;;  %v5073_v22 = vpop.f32.mrf.mxu0 }
 0x177   :  { %1908 = vmatpush.bf16.msra.mxu3 %v3653_v45 }
 0x178   :  { %v5069_v59 = vpop.f32.mrf.mxu2 }
 0x179   :  { %1890 = vmatpush.bf16.msra.mxu2 %v3509_v41  ;;  %1852 = vmatpush.bf16.msrb.mxu0 %v3253_v55 }
 0x17a   :  { %1871 = vmatpush.bf16.msrb.mxu1 %v3381_v54 }
 0x17b   :  { %1779 = vmatmul.bf16.vlgmr.msra.gmra.mxu0 %v4989_v10  ;;  %1909 = vmatpush.bf16.msra.mxu3 %v3637_v62 }
 0x17c   :  { %1798 = vmatmul.bf16.vlgmr.msra.gmra.mxu1 %v4991_v2  ;;  %1817 = vmatmul.bf16.vlgmr.msrb.gmra.mxu2 %v4993_v35 }
 0x17d   :  { %1891 = vmatpush.bf16.msra.mxu2 %v3493_v60  ;;  %1853 = vmatpush.bf16.msrb.mxu0 %v3237_v25  ;;  %v5075_v37 = vpop.f32.mrf.mxu1 }
 0x17e   :  { %1872 = vmatpush.bf16.msrb.mxu1 %v3365_v0  ;;  %1836 = vmatmul.bf16.vlgmr.msrb.gmra.mxu3 %v4999_v15 }
 0x17f   :  { %1910 = vmatpush.bf16.msra.mxu3 %v3621_v29 }
 0x181   :  { %1892 = vmatpush.bf16.msra.mxu2 %v3477_v1  ;;  %1854 = vmatpush.bf16.msrb.mxu0 %v3221_v50 }
 0x182   :  { %1873 = vmatpush.bf16.msrb.mxu1 %v3349_v56 }
 0x183   :  { %1911 = vmatpush.bf16.msra.mxu3 %v3605_v19 }
 0x18b   :  { %1784 = vmatmul.bf16.gmra.mxu0 %v5023_v33 }
 0x18c   :  { %1803 = vmatmul.bf16.gmra.mxu1 %v5025_v52  ;;  %1822 = vmatmul.bf16.gmra.mxu2 %v5027_v3 }
 0x18e   :  { %1841 = vmatmul.bf16.gmra.mxu3 %v5034_v13 }
 0x19b   :  { %1855 = vmatmul.bf16.vlgmr.msrb.gmra.mxu0 %v4989_v10  ;;  %v5080_v10 = vpop.f32.mrf.mxu2 }
 0x19c   :  { %1874 = vmatmul.bf16.vlgmr.msrb.gmra.mxu1 %v4991_v2  ;;  %1893 = vmatmul.bf16.vlgmr.msra.gmra.mxu2 %v4993_v35  ;;  %v5083_v2 = vpop.f32.mrf.mxu3  ;;  %v5085_v35 = vpop.f32.mrf.mxu0 }
 0x19e   :  { %1912 = vmatmul.bf16.vlgmr.msra.gmra.mxu3 %v4999_v15  ;;  %v5087_v15 = vpop.f32.mrf.mxu1 }
 0x1a3   :  { %v5089_v53 = vpop.f32.mrf.mxu2 }
 0x1a4   :  { %v5091_v23 = vpop.f32.mrf.mxu3 }
 0x1ab   :  { %1860 = vmatmul.bf16.gmra.mxu0 %v5023_v33 }
 0x1ac   :  { %1879 = vmatmul.bf16.gmra.mxu1 %v5025_v52  ;;  %1898 = vmatmul.bf16.gmra.mxu2 %v5027_v3 }
 0x1ae   :  { %1917 = vmatmul.bf16.gmra.mxu3 %v5034_v13 }
 0x1b8   :  { %v1628_v20 = vpop.f32.mrf.mxu0  ;;  %v1647_v33 = vpop.f32.mrf.mxu1 }
 0x1b9   :  { %v1648_v7 = vadd.f32 %v1647_v33, %v1628_v20 }
 0x1bf   :  { %v1666_v52 = vpop.f32.mrf.mxu2 }
 0x1c0   :  { %v1667_v38 = vadd.f32 %v1666_v52, %v1648_v7  ;;  %v1630_v3 = vpop.f32.mrf.mxu0  ;;  %v1649_v27 = vpop.f32.mrf.mxu1 }
 0x1c1   :  { %v1685_v24 = vpop.f32.mrf.mxu3  ;;  %v1650_v13 = vadd.f32 %v1649_v27, %v1630_v3 }
 0x1c2   :  { %v5093_v31 = vadd.f32 %v1685_v24, %v1667_v38 }
 0x1c4   :  { %v1961_v43 = vmul.f32 %v5093_v31, %v5093_v31 }
 0x1c7   :  { %v1668_v32 = vpop.f32.mrf.mxu2 }
 0x1c8   :  { %v1669_v34 = vadd.f32 %v1668_v32, %v1650_v13  ;;  %v1633_v9 = vpop.f32.mrf.mxu0 }
 0x1c9   :  { %v1687_v30 = vpop.f32.mrf.mxu3  ;;  %v1652_v41 = vpop.f32.mrf.mxu1 }
 0x1ca   :  { %v5095_v42 = vadd.f32 %v1687_v30, %v1669_v34  ;;  %v1653_v36 = vadd.f32 %v1652_v41, %v1633_v9 }
 0x1cc   :  { %v1925_v45 = vadd.f32 %v5095_v42, %v5093_v31  ;;  %v1965_v48 = vmul.f32 %v5095_v42, %v5095_v42 }
 0x1ce   :  { %v1977_v57 = vadd.f32 %v1965_v48, %v1961_v43 }
 0x1cf   :  { %v1671_v6 = vpop.f32.mrf.mxu2 }
 0x1d0   :  { %v1672_v21 = vadd.f32 %v1671_v6, %v1653_v36  ;;  %v1635_v55 = vpop.f32.mrf.mxu0 }
 0x1d1   :  { %v1690_v54 = vpop.f32.mrf.mxu3  ;;  %v1654_v58 = vpop.f32.mrf.mxu1 }
 0x1d2   :  { %v5103_v60 = vadd.f32 %v1690_v54, %v1672_v21  ;;  %v1655_v61 = vadd.f32 %v1654_v58, %v1635_v55 }
 0x1d4   :  { %v1969_v39 = vmul.f32 %v5103_v60, %v5103_v60  ;;  %v1926_v46 = vadd.f32 %v1925_v45, %v5103_v60 }
 0x1d6   :  { %v1978_v49 = vadd.f32 %v1977_v57, %v1969_v39 }
 0x1d7   :  { %v1673_v28 = vpop.f32.mrf.mxu2 }
 0x1d8   :  { %v1674_v62 = vadd.f32 %v1673_v28, %v1655_v61  ;;  %v1704_v47 = vpop.f32.mrf.mxu0 }
 0x1d9   :  { %v1692_v26 = vpop.f32.mrf.mxu3  ;;  %v1723_v63 = vpop.f32.mrf.mxu1 }
 0x1da   :  { %v5108_v25 = vadd.f32 %v1692_v26, %v1674_v62  ;;  %v1724_v0 = vadd.f32 %v1723_v63, %v1704_v47 }
 0x1dc   :  { %v1927_v1 = vadd.f32 %v1926_v46, %v5108_v25  ;;  %v1973_v14 = vmul.f32 %v5108_v25, %v5108_v25 }
 0x1de   :  { %v1928_v44 = vrot.slane %v1927_v1, 4  ;;  %v1979_v4 = vadd.f32 %v1978_v49, %v1973_v14 }
 0x1df   :  { %v1742_v29 = vpop.f32.mrf.mxu2 }
 0x1e0   :  { %v1929_v5 = vadd.f32 %v1928_v44, %v1927_v1  ;;  %v1980_v8 = vrot.slane %v1979_v4, 4  ;;  %v1743_v50 = vadd.f32 %v1742_v29, %v1724_v0  ;;  %v1706_v56 = vpop.f32.mrf.mxu0 }
 0x1e1   :  { %v1761_v19 = vpop.f32.mrf.mxu3  ;;  %v1725_v20 = vpop.f32.mrf.mxu1 }
 0x1e2   :  { %v1930_v33 = vrot.slane %v1929_v5, 2  ;;  %v1981_v7 = vadd.f32 %v1980_v8, %v1979_v4  ;;  %v5113_v52 = vadd.f32 %v1761_v19, %v1743_v50  ;;  %v1726_v38 = vadd.f32 %v1725_v20, %v1706_v56 }
 0x1e4   :  { %v1931_v3 = vadd.f32 %v1930_v33, %v1929_v5  ;;  %v1982_v24 = vrot.slane %v1981_v7, 2  ;;  %v1962_v21 = vmul.f32 %v5113_v52, %v5113_v52 }
 0x1e6   :  { %v1932_v27 = vrot.slane %v1931_v3, 1  ;;  %v1983_v13 = vadd.f32 %v1982_v24, %v1981_v7 }
 0x1e7   :  { %v1744_v32 = vpop.f32.mrf.mxu2 }
 0x1e8   :  { %v1933_v34 = vadd.f32 %v1932_v27, %v1931_v3  ;;  %v1984_v9 = vrot.slane %v1983_v13, 1  ;;  %v1745_v30 = vadd.f32 %v1744_v32, %v1726_v38  ;;  %v1709_v41 = vpop.f32.mrf.mxu0 }
 0x1e9   :  { %v1763_v36 = vpop.f32.mrf.mxu3  ;;  %v1728_v43 = vpop.f32.mrf.mxu1 }
 0x1ea   :  { %v1985_v45 = vadd.f32 %v1984_v9, %v1983_v13  ;;  %v5115_v48 = vmul.f32 0.03125, %v1933_v34  ;;  %v5117_v57 = vadd.f32 %v1763_v36, %v1745_v30  ;;  %v1729_v6 = vadd.f32 %v1728_v43, %v1709_v41 }
 0x1ec   :  { %v2017_v55 = vmul.f32 0.03125, %v1985_v45  ;;  %v2021_v54 = vmul.f32 %v5115_v48, %v5115_v48  ;;  %v1934_v58 = vadd.f32 %v5117_v57, %v5113_v52  ;;  %v1966_v61 = vmul.f32 %v5117_v57, %v5117_v57 }
 0x1ee   :  { %v2025_v28 = vsub.f32 %v2017_v55, %v2021_v54  ;;  %v1986_v39 = vadd.f32 %v1966_v61, %v1962_v21 }
 0x1ef   :  { %v1747_v62 = vpop.f32.mrf.mxu2 }
 0x1f0   :  { %v1748_v47 = vadd.f32 %v1747_v62, %v1729_v6  ;;  %v1711_v26 = vpop.f32.mrf.mxu0  ;;  %v2029_v34 = vmax.f32 %v2025_v28, 0.0 }
 0x1f1   :  { %v1766_v63 = vpop.f32.mrf.mxu3  ;;  %v1730_v46 = vpop.f32.mrf.mxu1 }
 0x1f2   :  { %v5127_v0 = vadd.f32 %v1766_v63, %v1748_v47  ;;  %v1731_v49 = vadd.f32 %v1730_v46, %v1711_v26  ;;  %v5137_v43 = vadd.f32 1e-05, %v2029_v34 }
 0x1f4   :  { %v1970_v14 = vmul.f32 %v5127_v0, %v5127_v0  ;;  %v1935_v8 = vadd.f32 %v1934_v58, %v5127_v0  ;;  %4316 = vrsqrt.f32 %v5137_v43  ;;  %vm2043_vm4 = vweird.f32 %v5137_v43 }
 0x1f6   :  { %v1987_v56 = vadd.f32 %v1986_v39, %v1970_v14 }
 0x1f7   :  { %v1749_v1 = vpop.f32.mrf.mxu2 }
 0x1f8   :  { %v1750_v44 = vadd.f32 %v1749_v1, %v1731_v49  ;;  %v1780_v4 = vpop.f32.mrf.mxu0 }
 0x1f9   :  { %v1768_v29 = vpop.f32.mrf.mxu3  ;;  %v1799_v5 = vpop.f32.mrf.mxu1 }
 0x1fa   :  { %v5132_v50 = vadd.f32 %v1768_v29, %v1750_v44  ;;  %v1800_v49 = vadd.f32 %v1799_v5, %v1780_v4  ;;  %v5144_v29 = vpop.eup %4316 }
 0x1fb   :  { %v2038_v34 = vmul.f32 %v5144_v29, %v5137_v43  ;;  %vm2044_vm1 = vweird.f32 %v5144_v29 }
 0x1fc   :  { %v1936_v19 = vadd.f32 %v1935_v8, %v5132_v50  ;;  %v1974_v20 = vmul.f32 %v5132_v50, %v5132_v50  ;;  %vm2045_vm5 = vmor %vm2043_vm4, %vm2044_vm1 }
 0x1fe   :  { %v1937_v33 = vrot.slane %v1936_v19, 4  ;;  %v1988_v7 = vadd.f32 %v1987_v56, %v1974_v20 }
 0x1ff   :  { %v1818_v38 = vpop.f32.mrf.mxu2 }
 0x200   :  { %v1938_v3 = vadd.f32 %v1937_v33, %v1936_v19  ;;  %v1989_v24 = vrot.slane %v1988_v7, 4  ;;  %v1782_v27 = vpop.f32.mrf.mxu0  ;;  %v1819_v56 = vadd.f32 %v1818_v38, %v1800_v49  ;;  %v2039_v38 = vmul.f32 %v5144_v29, %v2038_v34 }
 0x201   :  { %v1837_v13 = vpop.f32.mrf.mxu3  ;;  %v1801_v32 = vpop.f32.mrf.mxu1 }
 0x202   :  { %v1939_v9 = vrot.slane %v1938_v3, 2  ;;  %v1990_v30 = vadd.f32 %v1989_v24, %v1988_v7  ;;  %v1802_v63 = vadd.f32 %v1801_v32, %v1782_v27  ;;  %v5150_v27 = vadd.f32 %v1837_v13, %v1819_v56 }
 0x204   :  { %v1940_v41 = vadd.f32 %v1939_v9, %v1938_v3  ;;  %v1991_v36 = vrot.slane %v1990_v30, 2 }
 0x206   :  { %v1941_v45 = vrot.slane %v1940_v41, 1  ;;  %v1992_v6 = vadd.f32 %v1991_v36, %v1990_v30  ;;  %v1963_v30 = vmul.f32 %v5150_v27, %v5150_v27 }
 0x207   :  { %v1820_v21 = vpop.f32.mrf.mxu2 }
 0x208   :  { %v1942_v55 = vadd.f32 %v1941_v45, %v1940_v41  ;;  %v1993_v54 = vrot.slane %v1992_v6, 1  ;;  %v1785_v58 = vpop.f32.mrf.mxu0  ;;  %v1821_v1 = vadd.f32 %v1820_v21, %v1802_v63 }
 0x209   :  { %v1839_v61 = vpop.f32.mrf.mxu3  ;;  %v1804_v39 = vpop.f32.mrf.mxu1 }
 0x20a   :  { %v1994_v62 = vadd.f32 %v1993_v54, %v1992_v6  ;;  %v5140_v47 = vmul.f32 0.03125, %v1942_v55  ;;  %v1805_v14 = vadd.f32 %v1804_v39, %v1785_v58  ;;  %v5146_v24 = vadd.f32 %v1839_v61, %v1821_v1 }
 0x20b   :  { %v2040_v39 = vmul.f32 0.5, %v2039_v38 }
 0x20c   :  { %v2018_v28 = vmul.f32 0.03125, %v1994_v62  ;;  %v2022_v26 = vmul.f32 %v5140_v47, %v5140_v47  ;;  %v1967_v5 = vmul.f32 %v5146_v24, %v5146_v24  ;;  %v1943_v41 = vadd.f32 %v5146_v24, %v5150_v27 }
 0x20e   :  { %v2026_v46 = vsub.f32 %v2018_v28, %v2022_v26  ;;  %v1995_v54 = vadd.f32 %v1967_v5, %v1963_v30 }
 0x20f   :  { %v1823_v44 = vpop.f32.mrf.mxu2 }
 0x210   :  { %v2030_v8 = vmax.f32 %v2026_v46, 0.0  ;;  %v1824_v19 = vadd.f32 %v1823_v44, %v1805_v14  ;;  %v1787_v20 = vpop.f32.mrf.mxu0  ;;  %v2041_v14 = vsub.f32 1.5, %v2040_v39 }
 0x211   :  { %v1842_v33 = vpop.f32.mrf.mxu3  ;;  %v1806_v7 = vpop.f32.mrf.mxu1 }
 0x212   :  { %v2034_v3 = vadd.f32 1e-05, %v2030_v8  ;;  %v5152_v4 = vadd.f32 %v1842_v33, %v1824_v19  ;;  %v1807_v32 = vadd.f32 %v1806_v7, %v1787_v20  ;;  %v2042_v38 = vmul.f32 %v5144_v29, %v2041_v14 }
 0x214   :  { %4318 = vrsqrt.f32 %v2034_v3  ;;  %v1971_v36 = vmul.f32 %v5152_v4, %v5152_v4  ;;  %v1944_v58 = vadd.f32 %v1943_v41, %v5152_v4  ;;  %vm2053_vm2 = vweird.f32 %v2034_v3 }
 0x216   :  { %v1996_v28 = vadd.f32 %v1995_v54, %v1971_v36 }
 0x217   :  { %v1825_v9 = vpop.f32.mrf.mxu2 }
 0x218   :  { %v1826_v13 = vadd.f32 %v1825_v9, %v1807_v32  ;;  %v1856_v45 = vpop.f32.mrf.mxu0 }
 0x219   :  { %v1844_v6 = vpop.f32.mrf.mxu3  ;;  %v1875_v21 = vpop.f32.mrf.mxu1 }
 0x21a   :  { %v4319_v55 = vpop.eup %4318  ;;  %v5164_v61 = vadd.f32 %v1844_v6, %v1826_v13 }
 0x21b   :  { %v2048_v62 = vmul.f32 %v4319_v55, %v2034_v3  ;;  %vm2054_vm0 = vweird.f32 %v4319_v55 }
 0x21c   :  { %5550 = vst [vmem:[#allocation24_spill] sm:$0xff] %v5164_v61  ;;  %v1945_v26 = vadd.f32 %v1944_v58, %v5164_v61  ;;  %v1975_v63 = vmul.f32 %v5164_v61, %v5164_v61  ;;  %vm2055_vm3 = vmor %vm2053_vm2, %vm2054_vm0  ;;  %v2046_v58 = vsel %vm2045_vm5, %v5144_v29, %v2042_v38  ;;  %v3720_v61 = vld [vmem:[#allocation10] sm:$0xf]  ;;  %vm3039_vm2 = vcmask 64512  }
 0x21d   :  { %v2049_v46 = vmul.f32 %v4319_v55, %v2048_v62 }
 0x21e   :  { %v1946_v49 = vrot.slane %v1945_v26, 4  ;;  %v1997_v1 = vadd.f32 %v1996_v28, %v1975_v63 }
 0x21f   :  { %v2050_v44 = vmul.f32 0.5, %v2049_v46  ;;  %v1894_v8 = vpop.f32.mrf.mxu2 }
 0x220   :  { %v1947_v56 = vadd.f32 %v1946_v49, %v1945_v26  ;;  %v1998_v19 = vrot.slane %v1997_v1, 4  ;;  %v1858_v20 = vpop.f32.mrf.mxu0 }
 0x221   :  { %v2051_v33 = vsub.f32 1.5, %v2050_v44  ;;  %v1913_v7 = vpop.f32.mrf.mxu3  ;;  %v1877_v34 = vpop.f32.mrf.mxu1 }
 0x222   :  { %v1948_v5 = vrot.slane %v1947_v56, 2  ;;  %v1999_v32 = vadd.f32 %v1998_v19, %v1997_v1  ;;  %v1878_v49 = vadd.f32 %v1877_v34, %v1858_v20  ;;  %v1876_v1 = vadd.f32 %v1875_v21, %v1856_v45 }
 0x223   :  { %v2052_v9 = vmul.f32 %v4319_v55, %v2051_v33 }
 0x224   :  { %v1949_v30 = vadd.f32 %v1948_v5, %v1947_v56  ;;  %v2000_v41 = vrot.slane %v1999_v32, 2  ;;  %v1895_v19 = vadd.f32 %v1894_v8, %v1876_v1 }
 0x225   :  { %v2056_v36 = vsel %vm2055_vm3, %v4319_v55, %v2052_v9 }
 0x226   :  { %v2081_v13 = vrot.slane %v2056_v36, 7  ;;  %v1950_v6 = vrot.slane %v1949_v30, 1  ;;  %v2001_v54 = vadd.f32 %v2000_v41, %v1999_v32  ;;  %v5182_v41 = vadd.f32 %v1913_v7, %v1895_v19 }
 0x227   :  { %v1896_v39 = vpop.f32.mrf.mxu2 }
 0x228   :  { %v1861_v62 = vpop.f32.mrf.mxu0  ;;  %v5174_v28 = vsel %vm753_vm9, %v2046_v58, %v2081_v13  ;;  %v1951_v3 = vadd.f32 %v1950_v6, %v1949_v30  ;;  %v2002_v46 = vrot.slane %v2001_v54, 1  ;;  %v1897_v55 = vadd.f32 %v1896_v39, %v1878_v49 }
 0x229   :  { %v1915_v26 = vpop.f32.mrf.mxu3  ;;  %v1880_v63 = vpop.f32.mrf.mxu1  ;;  %v1964_v36 = vmul.f32 %v5182_v41, %v5182_v41 }
 0x22a   :  { %v2003_v14 = vadd.f32 %v2002_v46, %v2001_v54  ;;  %v5176_v43 = vmul.f32 0.03125, %v1951_v3  ;;  %v1881_v44 = vadd.f32 %v1880_v63, %v1861_v62  ;;  %v5180_v38 = vadd.f32 %v1915_v26, %v1897_v55 }
 0x22c   :  { %v2019_v5 = vmul.f32 0.03125, %v2003_v14  ;;  %v2023_v32 = vmul.f32 %v5176_v43, %v5176_v43  ;;  %v1968_v20 = vmul.f32 %v5180_v38, %v5180_v38  ;;  %v1952_v13 = vadd.f32 %v5180_v38, %v5182_v41 }
 0x22e   :  { %v2027_v21 = vsub.f32 %v2019_v5, %v2023_v32  ;;  %v2004_v39 = vadd.f32 %v1968_v20, %v1964_v36  ;;  %v3904_v5 = vld [vmem:[#allocation10 + $0x170] sm:$0xf]  ;;  %v4247_v32 = vld [vmem:[#allocation10 + $0x174] sm:$0xf0] }
 0x22f   :  { %v1899_v56 = vpop.f32.mrf.mxu2  ;;  %v3840_v20 = vld [vmem:[#allocation10 + $0xf0] sm:$0xf] }
 0x230   :  { %v1900_v33 = vadd.f32 %v1899_v56, %v1881_v44  ;;  %v1863_v9 = vpop.f32.mrf.mxu0  ;;  %v2031_v58 = vmax.f32 %v2027_v21, 0.0  ;;  %v4215_v21 = vld [vmem:[#allocation10 + $0x74] sm:$0xf0] }
 0x231   :  { %v1918_v29 = vpop.f32.mrf.mxu3  ;;  %v1882_v30 = vpop.f32.mrf.mxu1 }
 0x232   :  { %v5184_v45 = vadd.f32 %v1918_v29, %v1900_v33  ;;  %v1883_v34 = vadd.f32 %v1882_v30, %v1863_v9  ;;  %v5200_v49 = vadd.f32 1e-05, %v2031_v58  ;;  %v3905_v9 = vor.u32 %v4247_v32, %v3904_v5  ;;  %v3776_v30 = vld [vmem:[#allocation10 + $0x70] sm:$0xf]  ;;  %v4229_v5 = vld [vmem:[#allocation10 + $0xe4] sm:$0xf0] }
 0x233   :  { %v3777_v36 = vor.u32 %v4215_v21, %v3776_v30  ;;  %v3960_v32 = vld [vmem:[#allocation10 + $0x1e0] sm:$0xf]  ;;  %v4261_v30 = vld [vmem:[#allocation10 + $0x1e4] sm:$0xf0] }
 0x234   :  { %v1972_v6 = vmul.f32 %v5184_v45, %v5184_v45  ;;  %v1953_v62 = vadd.f32 %v1952_v13, %v5184_v45  ;;  %4320 = vrsqrt.f32 %v5200_v49  ;;  %v4231_v13 = vld [vmem:[#allocation10 + $0xf4] sm:$0xf0]  ;;  %2617 = vmatpush.bf16.msrb.mxu2 %v3905_v9  ;;  %vm2063_vm8 = vweird.f32 %v5200_v49 }
 0x235   :  { %2579 = vmatpush.bf16.msra.mxu0 %v3777_v36  ;;  %v3888_v36 = vld [vmem:[#allocation10 + $0x150] sm:$0xf] }
 0x236   :  { %v2005_v63 = vadd.f32 %v2004_v39, %v1972_v6  ;;  %v3968_v6 = vld [vmem:[#allocation10 + $0x1f0] sm:$0xf] }
 0x237   :  { %v1901_v8 = vpop.f32.mrf.mxu2 }
 0x238   :  { %v1902_v54 = vadd.f32 %v1901_v8, %v1883_v34 }
 0x239   :  { %v1920_v7 = vpop.f32.mrf.mxu3 }
 0x23a   :  { %v5195_v26 = vadd.f32 %v1920_v7, %v1902_v54  ;;  %v3841_v54 = vor.u32 %v4231_v13, %v3840_v20  ;;  %v4263_v7 = vld [vmem:[#allocation10 + $0x1f4] sm:$0xf0]  ;;  %v5203_v58 = vpop.eup %4320 }
 0x23b   :  { %vm2064_vm6 = vweird.f32 %v5203_v58 }
 0x23c   :  { %v1954_v3 = vadd.f32 %v1953_v62, %v5195_v26  ;;  %v1976_v46 = vmul.f32 %v5195_v26, %v5195_v26  ;;  %2598 = vmatpush.bf16.msra.mxu1 %v3841_v54  ;;  %v4211_v54 = vld [vmem:[#allocation10 + $0x54] sm:$0xf0]  ;;  %vm5240_vm10 = vmor %vm2063_vm8, %vm2064_vm6 }
 0x23e   :  { %v1955_v1 = vrot.slane %v1954_v3, 4  ;;  %v2006_v14 = vadd.f32 %v2005_v63, %v1976_v46  ;;  %v3969_v63 = vor.u32 %v4263_v7, %v3968_v6  ;;  %v4245_v46 = vld [vmem:[#allocation10 + $0x164] sm:$0xf0]  ;;  %v3760_v6 = vld [vmem:[#allocation10 + $0x50] sm:$0xf] }
 0x23f   :  { %v3824_v7 = vld [vmem:[#allocation10 + $0xd0] sm:$0xf] }
 0x240   :  { %v1956_v55 = vadd.f32 %v1955_v1, %v1954_v3  ;;  %v2007_v44 = vrot.slane %v2006_v14, 4  ;;  %v3896_v3 = vld [vmem:[#allocation10 + $0x160] sm:$0xf]  ;;  %2636 = vmatpush.bf16.msrb.mxu3 %v3969_v63  ;;  %v4227_v63 = vld [vmem:[#allocation10 + $0xd4] sm:$0xf0] }
 0x241   :  { %v3897_v1 = vor.u32 %v4245_v46, %v3896_v3  ;;  %v3952_v3 = vld [vmem:[#allocation10 + $0x1d0] sm:$0xf]  ;;  %v4259_v46 = vld [vmem:[#allocation10 + $0x1d4] sm:$0xf0] }
 0x242   :  { %v1957_v56 = vrot.slane %v1956_v55, 2  ;;  %v2008_v19 = vadd.f32 %v2007_v44, %v2006_v14  ;;  %v3768_v14 = vld [vmem:[#allocation10 + $0x60] sm:$0xf] }
 0x243   :  { %v3832_v44 = vld [vmem:[#allocation10 + $0xe0] sm:$0xf]  ;;  %2618 = vmatpush.bf16.msrb.mxu2 %v3897_v1 }
 0x244   :  { %v1958_v33 = vadd.f32 %v1957_v56, %v1956_v55  ;;  %v2009_v29 = vrot.slane %v2008_v19, 2  ;;  %v4213_v55 = vld [vmem:[#allocation10 + $0x64] sm:$0xf0]  ;;  %v3833_v9 = vor.u32 %v4229_v5, %v3832_v44 }
 0x246   :  { %v1959_v34 = vrot.slane %v1958_v33, 1  ;;  %v2010_v8 = vadd.f32 %v2009_v29, %v2008_v19  ;;  %v3769_v29 = vor.u32 %v4213_v55, %v3768_v14  ;;  %2599 = vmatpush.bf16.msra.mxu1 %v3833_v9  ;;  %v3825_v14 = vor.u32 %v4227_v63, %v3824_v7  ;;  %v4209_v9 = vld [vmem:[#allocation10 + $0x44] sm:$0xf0]  ;;  %v4239_v7 = vld [vmem:[#allocation10 + $0x134] sm:$0xf0] }
 0x247   :  { %v3953_v55 = vor.u32 %v4259_v46, %v3952_v3  ;;  %v4207_v63 = vld [vmem:[#allocation10 + $0x34] sm:$0xf0]  ;;  %v3808_v3 = vld [vmem:[#allocation10 + $0xb0] sm:$0xf] }
 0x248   :  { %v1960_v39 = vadd.f32 %v1959_v34, %v1958_v33  ;;  %v2011_v62 = vrot.slane %v2010_v8, 1  ;;  %v2058_v33 = vmul.f32 %v5203_v58, %v5200_v49  ;;  %2580 = vmatpush.bf16.msra.mxu0 %v3769_v29  ;;  %v3961_v34 = vor.u32 %v4261_v30, %v3960_v32  ;;  %v4241_v29 = vld [vmem:[#allocation10 + $0x144] sm:$0xf0]  ;;  %v3752_v32 = vld [vmem:[#allocation10 + $0x40] sm:$0xf] }
 0x249   :  { %v3816_v30 = vld [vmem:[#allocation10 + $0xc0] sm:$0xf]  ;;  %v4223_v46 = vld [vmem:[#allocation10 + $0xb4] sm:$0xf0] }
 0x24a   :  { %v2012_v56 = vadd.f32 %v2011_v62, %v2010_v8  ;;  %v5205_v19 = vmul.f32 0.03125, %v1960_v39  ;;  %v4243_v8 = vld [vmem:[#allocation10 + $0x154] sm:$0xf0]  ;;  %2637 = vmatpush.bf16.msrb.mxu3 %v3961_v34  ;;  %v3761_v62 = vor.u32 %v4211_v54, %v3760_v6  ;;  %v2059_v1 = vmul.f32 %v5203_v58, %v2058_v33  ;;  %2600 = vmatpush.bf16.msra.mxu1 %v3825_v14  ;;  %v4225_v34 = vld [vmem:[#allocation10 + $0xc4] sm:$0xf0] }
 0x24b   :  { %v3889_v13 = vor.u32 %v4243_v8, %v3888_v36  ;;  %v3944_v36 = vld [vmem:[#allocation10 + $0x1c0] sm:$0xf]  ;;  %v3817_v33 = vor.u32 %v4225_v34, %v3816_v30  ;;  %v3872_v54 = vld [vmem:[#allocation10 + $0x130] sm:$0xf]  ;;  %v4205_v34 = vld [vmem:[#allocation10 + $0x24] sm:$0xf0] }
 0x24c   :  { %v2020_v21 = vmul.f32 0.03125, %v2012_v56  ;;  %v2024_v20 = vmul.f32 %v5205_v19, %v5205_v19  ;;  %2581 = vmatpush.bf16.msra.mxu0 %v3761_v62  ;;  %v3880_v56 = vld [vmem:[#allocation10 + $0x140] sm:$0xf]  ;;  %v5214_v8 = vmul.f32 0.5, %v2059_v1  ;;  %v3873_v62 = vor.u32 %v4239_v7, %v3872_v54  ;;  %v3936_v1 = vld [vmem:[#allocation10 + $0x1b0] sm:$0xf] }
 0x24d   :  { %2619 = vmatpush.bf16.msrb.mxu2 %v3889_v13  ;;  %v3881_v5 = vor.u32 %v4241_v29, %v3880_v56  ;;  %v4257_v13 = vld [vmem:[#allocation10 + $0x1c4] sm:$0xf0]  ;;  %v3736_v30 = vld [vmem:[#allocation10 + $0x20] sm:$0xf] }
 0x24e   :  { %v2028_v39 = vsub.f32 %v2020_v21, %v2024_v20  ;;  %2638 = vmatpush.bf16.msrb.mxu3 %v3953_v55  ;;  %v3753_v20 = vor.u32 %v4209_v9, %v3752_v32  ;;  %v3945_v6 = vor.u32 %v4257_v13, %v3944_v36  ;;  %2601 = vmatpush.bf16.msra.mxu1 %v3817_v33  ;;  %v566_v56 = vld [vmem:[%s5521_s2] sm:$0xf]  ;;  %v2061_v29 = vsub.f32 1.5, %v5214_v8  ;;  %v3864_v32 = vld [vmem:[#allocation10 + $0x120] sm:$0xf] }
 0x24f   :  { %v3809_v55 = vor.u32 %v4223_v46, %v3808_v3  ;;  %v4237_v9 = vld [vmem:[#allocation10 + $0x124] sm:$0xf0]  ;;  %v3800_v36 = vld [vmem:[#allocation10 + $0xa0] sm:$0xf]  ;;  %v4235_v3 = vld [vmem:[#allocation10 + $0x114] sm:$0xf0] }
 0x250   :  { %v2032_v44 = vmax.f32 %v2028_v39, 0.0  ;;  %2582 = vmatpush.bf16.msra.mxu0 %v3753_v20  ;;  %v3744_v39 = vld [vmem:[#allocation10 + $0x30] sm:$0xf]  ;;  %v3865_v20 = vor.u32 %v4237_v9, %v3864_v32  ;;  %v4221_v33 = vld [vmem:[#allocation10 + $0xa4] sm:$0xf0] }
 0x251   :  { %2620 = vmatpush.bf16.msrb.mxu2 %v3881_v5  ;;  %v3745_v14 = vor.u32 %v4207_v63, %v3744_v39  ;;  %v3801_v54 = vor.u32 %v4221_v33, %v3800_v36  ;;  %v3928_v7 = vld [vmem:[#allocation10 + $0x1a0] sm:$0xf]  ;;  %v4253_v39 = vld [vmem:[#allocation10 + $0x1a4] sm:$0xf0]  ;;  %v3856_v63 = vld [vmem:[#allocation10 + $0x110] sm:$0xf] }
 0x252   :  { %v5212_v21 = vadd.f32 1e-05, %v2032_v44  ;;  %2639 = vmatpush.bf16.msrb.mxu3 %v3945_v6  ;;  %v4255_v44 = vld [vmem:[#allocation10 + $0x1b4] sm:$0xf0]  ;;  %2602 = vmatpush.bf16.msra.mxu1 %v3809_v55  ;;  %v3737_v6 = vor.u32 %v4205_v34, %v3736_v30  ;;  %v3728_v46 = vld [vmem:[#allocation10 + $0x10] sm:$0xf] }
 0x253   :  { %v3937_v5 = vor.u32 %v4255_v44, %v3936_v1  ;;  %v5225_v55 = vperm.slane %v566_v56, 0  ;;  %v5227_v1 = vperm.slane %v566_v56, 1  ;;  %v3857_v44 = vor.u32 %v4235_v3, %v3856_v63  ;;  %v3792_v32 = vld [vmem:[#allocation10 + $0x90] sm:$0xf]  ;;  %v4219_v9 = vld [vmem:[#allocation10 + $0x94] sm:$0xf0] }
 0x254   :  { %4322 = vrsqrt.f32 %v5212_v21  ;;  %2583 = vmatpush.bf16.msra.mxu0 %v3745_v14  ;;  %v4203_v14 = vld [vmem:[#allocation10 + $0x14] sm:$0xf0]  ;;  %v3793_v34 = vor.u32 %v4219_v9, %v3792_v32  ;;  %v3848_v33 = vld [vmem:[#allocation10 + $0x100] sm:$0xf]  ;;  %v2062_v63 = vmul.f32 %v5203_v58, %v2061_v29  ;;  %v5236_v32 = vperm.slane %v566_v56, 3 }
 0x255   :  { %2621 = vmatpush.bf16.msrb.mxu2 %v3873_v62  ;;  %v3929_v62 = vor.u32 %v4253_v39, %v3928_v7  ;;  %v4251_v36 = vld [vmem:[#allocation10 + $0x194] sm:$0xf0]  ;;  %v4233_v39 = vld [vmem:[#allocation10 + $0x104] sm:$0xf0]  ;;  %vm2073_vm11 = vweird.f32 %v5212_v21  ;;  %v3912_v49 = vld [vmem:[#allocation10 + $0x180] sm:$0xf] }
 0x256   :  { %2640 = vmatpush.bf16.msrb.mxu3 %v3937_v5  ;;  %v3729_v5 = vor.u32 %v4203_v14, %v3728_v46  ;;  %2603 = vmatpush.bf16.msra.mxu1 %v3801_v54  ;;  %v3849_v46 = vor.u32 %v4233_v39, %v3848_v33  ;;  %v4217_v54 = vld [vmem:[#allocation10 + $0x84] sm:$0xf0]  ;;  %v5234_v14 = vperm.slane %v566_v56, 2  ;;  %v5257_v33 = vadd.f32 %v5227_v1, %v5055_v12 }
 0x257   :  { %v4249_v9 = vld [vmem:[#allocation10 + $0x184] sm:$0xf0]  ;;  %v2066_v39 = vsel %vm5240_vm10, %v5203_v58, %v2062_v63  ;;  %v3970_v58 = vld [vmem:[#allocation10 + $0x1f8] sm:$0xf0]  ;;  %v4212_v63 = vld [vmem:[#allocation10 + $0x64] sm:$0xf] }
 0x258   :  { %2584 = vmatpush.bf16.msra.mxu0 %v3737_v6  ;;  %v4201_v6 = vld [vmem:[#allocation10 + $0x4] sm:$0xf0] }
 0x259   :  { %2622 = vmatpush.bf16.msrb.mxu2 %v3865_v20  ;;  %v3920_v20 = vld [vmem:[#allocation10 + $0x190] sm:$0xf]  ;;  %v3721_v29 = vor.u32 %v4201_v6, %v3720_v61  ;;  %v4230_v61 = vld [vmem:[#allocation10 + $0xf4] sm:$0xf] }
 0x25a   :  { %v5221_v13 = vpop.eup %4322  ;;  %2641 = vmatpush.bf16.msrb.mxu3 %v3929_v62  ;;  %v3921_v7 = vor.u32 %v4251_v36, %v3920_v20  ;;  %2604 = vmatpush.bf16.msra.mxu1 %v3793_v34  ;;  %v5253_v20 = vadd.f32 %v5225_v55, %v5053_v11  ;;  %v3913_v36 = vor.u32 %v4249_v9, %v3912_v49  ;;  %v4246_v11 = vld [vmem:[#allocation10 + $0x174] sm:$0xf]  ;;  %v1923_v9 = vld [vmem:[#allocation7] sm:$0xf] }
 0x25b   :  { %v2068_v8 = vmul.f32 %v5221_v13, %v5212_v21  ;;  %vm2074_vm7 = vweird.f32 %v5221_v13  ;;  %v4214_v21 = vld [vmem:[#allocation10 + $0x74] sm:$0xf] }
 0x25c   :  { %2585 = vmatpush.bf16.msra.mxu0 %v3729_v5  ;;  %vm5247_vm12 = vmor %vm2073_vm11, %vm2074_vm7  ;;  %v3778_v5 = vld [vmem:[#allocation10 + $0x78] sm:$0xf0]  ;;  %v4262_v62 = vld [vmem:[#allocation10 + $0x1f4] sm:$0xf] }
 0x25d   :  { %v2069_v30 = vmul.f32 %v5221_v13, %v2068_v8  ;;  %2623 = vmatpush.bf16.msrb.mxu2 %v3857_v44  ;;  %v3784_v8 = vld [vmem:[#allocation10 + $0x80] sm:$0xf]  ;;  %v3781_v6 = vor.u32 %v4214_v21, %v3778_v5  ;;  %v4228_v21 = vld [vmem:[#allocation10 + $0xe4] sm:$0xf]  ;;  %v2082_v5 = vrot.slane %v2066_v39, 6 }
 0x25e   :  { %v3785_v56 = vor.u32 %v4217_v54, %v3784_v8  ;;  %2642 = vmatpush.bf16.msrb.mxu3 %v3921_v7  ;;  %v3906_v8 = vld [vmem:[#allocation10 + $0x178] sm:$0xf0]  ;;  %v5265_v7 = vadd.f32 %v5234_v14, %v5057_v16  ;;  %v5269_v54 = vadd.f32 %v5236_v32, %v5059_v51  ;;  %v3770_v51 = vld [vmem:[#allocation10 + $0x68] sm:$0xf0] }
 0x25f   :  { %v2070_v3 = vmul.f32 0.5, %v2069_v30  ;;  %v3909_v49 = vor.u32 %v4246_v11, %v3906_v8  ;;  %v4244_v8 = vld [vmem:[#allocation10 + $0x164] sm:$0xf]  ;;  %v3962_v39 = vld [vmem:[#allocation10 + $0x1e8] sm:$0xf0] }
 0x260   :  { %5555 = vst [vmem:[#allocation25_spill] sm:$0xff] %v5269_v54  ;;  %2586 = vmatpush.bf16.msra.mxu0 %v3721_v29  ;;  %2605 = vmatpush.bf16.msra.mxu1 %v3785_v56  ;;  %v3834_v29 = vld [vmem:[#allocation10 + $0xe8] sm:$0xf0]  ;;  %v5280_v54 = vadd.f32 %v5227_v1, %v5066_v17  ;;  %v4260_v56 = vld [vmem:[#allocation10 + $0x1e4] sm:$0xf] }
 0x261   :  { %v2071_v44 = vsub.f32 1.5, %v2070_v3  ;;  %2624 = vmatpush.bf16.msrb.mxu2 %v3849_v46  ;;  %v3842_v3 = vld [vmem:[#allocation10 + $0xf8] sm:$0xf0]  ;;  %v5273_v46 = vadd.f32 %v5225_v55, %v5064_v40  ;;  %v3837_v11 = vor.u32 %v4228_v21, %v3834_v29  ;;  %v3898_v40 = vld [vmem:[#allocation10 + $0x168] sm:$0xf0]  ;;  %v5307_v21 = vadd.f32 %v5236_v32, %v5083_v2 }
 0x262   :  { %v3845_v12 = vor.u32 %v4230_v61, %v3842_v3  ;;  %2643 = vmatpush.bf16.msrb.mxu3 %v3913_v36  ;;  %v3773_v3 = vor.u32 %v4212_v63, %v3770_v51  ;;  %v3901_v30 = vor.u32 %v4244_v8, %v3898_v40  ;;  %v5288_v36 = vadd.f32 %v5236_v32, %v5071_v18  ;;  %v4258_v51 = vld [vmem:[#allocation10 + $0x1d4] sm:$0xf]  ;;  %v3754_v8 = vld [vmem:[#allocation10 + $0x48] sm:$0xf0]  ;;  %v4224_v2 = vld [vmem:[#allocation10 + $0xc4] sm:$0xf] }
 0x263   :  { %v2072_v34 = vmul.f32 %v5221_v13, %v2071_v44  ;;  %v3973_v44 = vor.u32 %v4262_v62, %v3970_v58  ;;  %v3762_v62 = vld [vmem:[#allocation10 + $0x58] sm:$0xf0]  ;;  %v5301_v63 = vadd.f32 %v5234_v14, %v5080_v10 }
 0x264   :  { %2655 = vmatpush.bf16.msrb.mxu0 %v3781_v6  ;;  %2674 = vmatpush.bf16.msrb.mxu1 %v3845_v12  ;;  %v5292_v6 = vadd.f32 %v5225_v55, %v5073_v22  ;;  %v3965_v12 = vor.u32 %v4260_v56, %v3962_v39  ;;  %v3826_v58 = vld [vmem:[#allocation10 + $0xd8] sm:$0xf0]  ;;  %v3818_v56 = vld [vmem:[#allocation10 + $0xc8] sm:$0xf0]  ;;  %v4240_v39 = vld [vmem:[#allocation10 + $0x144] sm:$0xf] }
 0x265   :  { %v2076_v16 = vsel %vm5247_vm12, %v5221_v13, %v2072_v34  ;;  %v5284_v13 = vadd.f32 %v5234_v14, %v5069_v59  ;;  %2693 = vmatpush.bf16.msra.mxu2 %v3909_v49  ;;  %v4210_v34 = vld [vmem:[#allocation10 + $0x54] sm:$0xf]  ;;  %v5297_v49 = vadd.f32 %v5227_v1, %v5075_v37  ;;  %v5311_v37 = vadd.f32 %v5225_v55, %v5085_v35 }
 0x266   :  { %v2083_v61 = vrot.slane %v2076_v16, 5  ;;  %2712 = vmatpush.bf16.msra.mxu3 %v3973_v44  ;;  %v4226_v59 = vld [vmem:[#allocation10 + $0xd4] sm:$0xf]  ;;  %v3765_v22 = vor.u32 %v4210_v34, %v3762_v62  ;;  %v3890_v44 = vld [vmem:[#allocation10 + $0x158] sm:$0xf0] }
 0x267   :  { %v4242_v16 = vld [vmem:[#allocation10 + $0x154] sm:$0xf]  ;;  %v3829_v10 = vor.u32 %v4226_v59, %v3826_v58 }
 0x268   :  { %v2085_v17 = vsel %vm755_vm13, %v2082_v5, %v2083_v61  ;;  %2656 = vmatpush.bf16.msrb.mxu0 %v3773_v3  ;;  %2675 = vmatpush.bf16.msrb.mxu1 %v3837_v11  ;;  %v3954_v5 = vld [vmem:[#allocation10 + $0x1d8] sm:$0xf0]  ;;  %v4208_v61 = vld [vmem:[#allocation10 + $0x44] sm:$0xf]  ;;  %v3893_v3 = vor.u32 %v4242_v16, %v3890_v44  ;;  %v3882_v11 = vld [vmem:[#allocation10 + $0x148] sm:$0xf0] }
 0x269   :  { %v2086_v18 = vsel %vm757_vm15, %v5174_v28, %v2085_v17  ;;  %v5315_v28 = vadd.f32 %v5227_v1, %v5087_v15  ;;  %2694 = vmatpush.bf16.msra.mxu2 %v3901_v30  ;;  %v3957_v40 = vor.u32 %v4258_v51, %v3954_v5  ;;  %v5321_v17 = vadd.f32 %v5234_v14, %v5089_v53  ;;  %v3946_v44 = vld [vmem:[#allocation10 + $0x1c8] sm:$0xf0] }
 0x26a   :  { %v2088_v29 = vmul.f32 %v2086_v18, %v1923_v9  ;;  %2713 = vmatpush.bf16.msra.mxu3 %v3965_v12  ;;  %v3757_v15 = vor.u32 %v4208_v61, %v3754_v8  ;;  %v3821_v1 = vor.u32 %v4224_v2, %v3818_v56  ;;  %v3885_v30 = vor.u32 %v4240_v39, %v3882_v11  ;;  %v4206_v61 = vld [vmem:[#allocation10 + $0x34] sm:$0xf] }
 0x26b   :  { %v4222_v8 = vld [vmem:[#allocation10 + $0xb4] sm:$0xf] }
 0x26c   :  { %v2090_v34 = vperm.slane %v2088_v29, 0  ;;  %v2091_v35 = vperm.slane %v2088_v29, 1  ;;  %v5317_v55 = vperm.slane %v2088_v29, 2  ;;  %v2093_v9 = vperm.slane %v2088_v29, 3  ;;  %2657 = vmatpush.bf16.msrb.mxu0 %v3765_v22  ;;  %2676 = vmatpush.bf16.msrb.mxu1 %v3829_v10  ;;  %v4256_v22 = vld [vmem:[#allocation10 + $0x1c4] sm:$0xf] }
 0x26d   :  { %2695 = vmatpush.bf16.msra.mxu2 %v3893_v3  ;;  %v3949_v5 = vor.u32 %v4256_v22, %v3946_v44  ;;  %v5556_v44 = vld [vmem:[#allocation24_spill] sm:$0xff] }
 0x26e   :  { %v2098_v12 = vmul.f32 %v2090_v34, %v5115_v48  ;;  %v2099_v62 = vmul.f32 %v2091_v35, %v5140_v47  ;;  %v2100_v59 = vmul.f32 %v5317_v55, %v5176_v43  ;;  %v2101_v58 = vmul.f32 %v2093_v9, %v5205_v19  ;;  %2714 = vmatpush.bf16.msra.mxu3 %v3957_v40  ;;  %v1924_v43 = vld [vmem:[#allocation9] sm:$0xf] }
 0x26f   :  { %v2129_v18 = vmul.f32 %v2093_v9, %v5195_v26  ;;  %v2114_v16 = vmul.f32 %v2090_v34, %v5093_v31  ;;  %v2118_v53 = vmul.f32 %v2090_v34, %v5095_v42  ;;  %v2115_v14 = vmul.f32 %v2091_v35, %v5113_v52  ;;  %v3874_v40 = vld [vmem:[#allocation10 + $0x138] sm:$0xf0] }
 0x270   :  { %v2106_v48 = vrot.slane %v2099_v62, 7  ;;  %v2107_v51 = vrot.slane %v2100_v59, 6  ;;  %v2108_v47 = vrot.slane %v2101_v58, 5  ;;  %v2119_v29 = vmul.f32 %v2091_v35, %v5117_v57  ;;  %2658 = vmatpush.bf16.msrb.mxu0 %v3757_v15  ;;  %2677 = vmatpush.bf16.msrb.mxu1 %v3821_v1  ;;  %v4254_v15 = vld [vmem:[#allocation10 + $0x1b4] sm:$0xf] }
 0x271   :  { %v2116_v19 = vmul.f32 %v5317_v55, %v5150_v27  ;;  %v2120_v31 = vmul.f32 %v5317_v55, %v5146_v24  ;;  %v2117_v42 = vmul.f32 %v2093_v9, %v5182_v41  ;;  %v2121_v52 = vmul.f32 %v2093_v9, %v5180_v38  ;;  %v3746_v27 = vld [vmem:[#allocation10 + $0x38] sm:$0xf0]  ;;  %2696 = vmatpush.bf16.msra.mxu2 %v3885_v30  ;;  %v4220_v62 = vld [vmem:[#allocation10 + $0xa4] sm:$0xf]  ;;  %v3802_v59 = vld [vmem:[#allocation10 + $0xa8] sm:$0xf0] }
 0x272   :  { %v5341_v26 = vadd.f32 %v5236_v32, %v5091_v23  ;;  %v2109_v10 = vsel %vm753_vm9, %v2098_v12, %v2106_v48  ;;  %v2110_v57 = vsel %vm755_vm13, %v2107_v51, %v2108_v47  ;;  %v2122_v41 = vmul.f32 %v2090_v34, %v5103_v60  ;;  %v3810_v23 = vld [vmem:[#allocation10 + $0xb8] sm:$0xf0]  ;;  %v4238_v32 = vld [vmem:[#allocation10 + $0x134] sm:$0xf]  ;;  %2715 = vmatpush.bf16.msra.mxu3 %v3949_v5  ;;  %v4204_v60 = vld [vmem:[#allocation10 + $0x24] sm:$0xf] }
 0x273   :  { %v2111_v24 = vsel %vm757_vm15, %v2109_v10, %v2110_v57  ;;  %v2126_v38 = vmul.f32 %v2090_v34, %v5108_v25  ;;  %v2123_v3 = vmul.f32 %v2091_v35, %v5127_v0  ;;  %v2127_v56 = vmul.f32 %v2091_v35, %v5132_v50  ;;  %v3938_v1 = vld [vmem:[#allocation10 + $0x1b8] sm:$0xf0]  ;;  %v3738_v12 = vld [vmem:[#allocation10 + $0x28] sm:$0xf0] }
 0x274   :  { %v2113_v2 = vsub.f32 %v1924_v43, %v2111_v24  ;;  %v2124_v39 = vmul.f32 %v5317_v55, %v5152_v4  ;;  %v5353_v11 = vmul.f32 %v2093_v9, %v5184_v45  ;;  %v3749_v30 = vor.u32 %v4206_v61, %v3746_v27 }
 0x275   :  { %v3813_v25 = vor.u32 %v4222_v8, %v3810_v23  ;;  %v3877_v34 = vor.u32 %v4238_v32, %v3874_v40  ;;  %v3941_v0 = vor.u32 %v4254_v15, %v3938_v1  ;;  %v2128_v4 = vmul.f32 %v5317_v55, %v5556_v44 }
 0x276   :  { %v5355_v58 = vperm.slane %v2113_v2, 3  ;;  %v2131_v22 = vperm.slane %v2113_v2, 0  ;;  %v2132_v50 = vperm.slane %v2113_v2, 1  ;;  %v2133_v35 = vperm.slane %v2113_v2, 2  ;;  %2659 = vmatpush.bf16.msrb.mxu0 %v3749_v30 }
 0x277   :  { %2678 = vmatpush.bf16.msrb.mxu1 %v3813_v25  ;;  %v3741_v45 = vor.u32 %v4204_v60, %v3738_v12  ;;  %v3805_v9 = vor.u32 %v4220_v62, %v3802_v59  ;;  %2697 = vmatpush.bf16.msra.mxu2 %v3877_v34  ;;  %v4236_v60 = vld [vmem:[#allocation10 + $0x124] sm:$0xf]  ;;  %v4202_v62 = vld [vmem:[#allocation10 + $0x14] sm:$0xf]  ;;  %v3730_v59 = vld [vmem:[#allocation10 + $0x18] sm:$0xf0] }
 0x278   :  { %v5360_v48 = vadd.f32 %v5355_v58, %v2129_v18  ;;  %v2139_v51 = vadd.f32 %v2131_v22, %v2114_v16  ;;  %v2143_v47 = vadd.f32 %v2131_v22, %v2118_v53  ;;  %v2140_v43 = vadd.f32 %v2132_v50, %v2115_v14  ;;  %2716 = vmatpush.bf16.msra.mxu3 %v3941_v0  ;;  %v5557_v14 = vld [vmem:[#allocation25_spill] sm:$0xff]  ;;  %v3866_v0 = vld [vmem:[#allocation10 + $0x128] sm:$0xf0]  ;;  %v4252_v12 = vld [vmem:[#allocation10 + $0x1a4] sm:$0xf] }
 0x279   :  { %v2144_v10 = vadd.f32 %v2132_v50, %v2119_v29  ;;  %v2141_v57 = vadd.f32 %v2133_v35, %v2116_v19  ;;  %v2145_v5 = vadd.f32 %v2133_v35, %v2120_v31  ;;  %v2142_v61 = vadd.f32 %v5355_v58, %v2117_v42 }
 0x27a   :  { %v2155_v27 = vadd.f32 %v2139_v51, %v5253_v20  ;;  %v2159_v55 = vadd.f32 %v2143_v47, %v5273_v46  ;;  %v2156_v8 = vadd.f32 %v2140_v43, %v5257_v33  ;;  %v2146_v24 = vadd.f32 %v5355_v58, %v2121_v52  ;;  %2660 = vmatpush.bf16.msrb.mxu0 %v3741_v45  ;;  %v4234_v45 = vld [vmem:[#allocation10 + $0x114] sm:$0xf]  ;;  %v3922_v47 = vld [vmem:[#allocation10 + $0x198] sm:$0xf0] }
 0x27b   :  { %v2160_v18 = vadd.f32 %v2144_v10, %v5280_v54  ;;  %v2157_v16 = vadd.f32 %v2141_v57, %v5265_v7  ;;  %v2161_v53 = vadd.f32 %v2145_v5, %v5284_v13  ;;  %v2158_v29 = vadd.f32 %v2142_v61, %v5557_v14  ;;  %2679 = vmatpush.bf16.msrb.mxu1 %v3805_v9  ;;  %v3858_v9 = vld [vmem:[#allocation10 + $0x118] sm:$0xf0]  ;;  %v3722_v61 = vld [vmem:[#allocation10 + $0x8] sm:$0xf0]  ;;  %v4232_v14 = vld [vmem:[#allocation10 + $0x104] sm:$0xf] }
 0x27c   :  { %v2171_v19 = vmax.f32 %v2155_v27, 0.0  ;;  %v2175_v31 = vmax.f32 %v2159_v55, 0.0  ;;  %v2172_v42 = vmax.f32 %v2156_v8, 0.0  ;;  %v2162_v20 = vadd.f32 %v2146_v24, %v5288_v36  ;;  %v4216_v8 = vld [vmem:[#allocation10 + $0x84] sm:$0xf] }
 0x27d   :  { %v2176_v46 = vmax.f32 %v2160_v18, 0.0  ;;  %v2173_v23 = vmax.f32 %v2157_v16, 0.0  ;;  %v2177_v33 = vmax.f32 %v2161_v53, 0.0  ;;  %v2174_v32 = vmax.f32 %v2158_v29, 0.0  ;;  %v3786_v24 = vld [vmem:[#allocation10 + $0x88] sm:$0xf0] }
 0x27e   :  { %v5372_v52 = vpack.c.bf16 %v2175_v31, %v2171_v19  ;;  %v2178_v54 = vmax.f32 %v2162_v20, 0.0  ;;  %v2147_v40 = vadd.f32 %v2131_v22, %v2122_v41  ;;  %v2151_v7 = vadd.f32 %v2131_v22, %v2126_v38  ;;  %v3930_v41 = vld [vmem:[#allocation10 + $0x1a8] sm:$0xf0]  ;;  %v4218_v22 = vld [vmem:[#allocation10 + $0x94] sm:$0xf] }
 0x27f   :  { %v5374_v2 = vpack.c.bf16 %v2176_v46, %v2172_v42  ;;  %v5376_v13 = vpack.c.bf16 %v2177_v33, %v2173_v23  ;;  %v2148_v15 = vadd.f32 %v2132_v50, %v2123_v3  ;;  %v2152_v1 = vadd.f32 %v2132_v50, %v2127_v56  ;;  %v3794_v50 = vld [vmem:[#allocation10 + $0x98] sm:$0xf0]  ;;  %v3850_v29 = vld [vmem:[#allocation10 + $0x108] sm:$0xf0]  ;;  %v4248_v42 = vld [vmem:[#allocation10 + $0x184] sm:$0xf] }
 0x280   :  { %2587 = vmatmul.bf16.vlgmr.msra.gmra.mxu0 %v5372_v52  ;;  %v5379_v36 = vpack.c.bf16 %v2178_v54, %v2174_v32  ;;  %v2163_v30 = vadd.f32 %v2147_v40, %v5292_v6  ;;  %v2167_v25 = vadd.f32 %v2151_v7, %v5311_v37  ;;  %v2149_v34 = vadd.f32 %v2133_v35, %v2124_v39  ;;  %v3914_v20 = vld [vmem:[#allocation10 + $0x188] sm:$0xf0] }
 0x281   :  { %2606 = vmatmul.bf16.vlgmr.msra.gmra.mxu1 %v5374_v2  ;;  %2625 = vmatmul.bf16.vlgmr.msrb.gmra.mxu2 %v5376_v13  ;;  %v2164_v38 = vadd.f32 %v2148_v15, %v5297_v49  ;;  %v2168_v3 = vadd.f32 %v2152_v1, %v5315_v28  ;;  %v2153_v56 = vadd.f32 %v2133_v35, %v2128_v4  ;;  %v4250_v4 = vld [vmem:[#allocation10 + $0x194] sm:$0xf] }
 0x282   :  { %2644 = vmatmul.bf16.vlgmr.msrb.gmra.mxu3 %v5379_v36  ;;  %v2179_v6 = vmax.f32 %v2163_v30, 0.0  ;;  %v2183_v37 = vmax.f32 %v2167_v25, 0.0  ;;  %v2165_v39 = vadd.f32 %v2149_v34, %v5301_v63  ;;  %v2150_v44 = vadd.f32 %v5355_v58, %v5353_v11  ;;  %v4200_v63 = vld [vmem:[#allocation10 + $0x4] sm:$0xf] }
 0x283   :  { %v2180_v51 = vmax.f32 %v2164_v38, 0.0  ;;  %v2184_v49 = vmax.f32 %v2168_v3, 0.0  ;;  %v2169_v28 = vadd.f32 %v2153_v56, %v5321_v17  ;;  %v2170_v35 = vadd.f32 %v5360_v48, %v5341_v26 }
 0x284   :  { %v2191_v43 = vpack.c.bf16 %v2183_v37, %v2179_v6  ;;  %v2181_v10 = vmax.f32 %v2165_v39, 0.0  ;;  %v2166_v57 = vadd.f32 %v2150_v44, %v5307_v21  ;;  %v3869_v5 = vor.u32 %v4236_v60, %v3866_v0 }
 0x285   :  { %v2192_v27 = vpack.c.bf16 %v2184_v49, %v2180_v51  ;;  %v2185_v11 = vmax.f32 %v2169_v28, 0.0  ;;  %v2186_v58 = vmax.f32 %v2170_v35, 0.0  ;;  %v3933_v55 = vor.u32 %v4252_v12, %v3930_v41 }
 0x286   :  { %v2182_v18 = vmax.f32 %v2166_v57, 0.0  ;;  %2698 = vmatpush.bf16.msra.mxu2 %v3869_v5  ;;  %v3733_v17 = vor.u32 %v4202_v62, %v3730_v59  ;;  %v3797_v16 = vor.u32 %v4218_v22, %v3794_v50  ;;  %v3861_v26 = vor.u32 %v4234_v45, %v3858_v9 }
 0x287   :  { %v2193_v48 = vpack.c.bf16 %v2185_v11, %v2181_v10  ;;  %2717 = vmatpush.bf16.msra.mxu3 %v3933_v55  ;;  %v3925_v53 = vor.u32 %v4250_v4, %v3922_v47  ;;  %v3725_v19 = vor.u32 %v4200_v63, %v3722_v61  ;;  %v3789_v31 = vor.u32 %v4216_v8, %v3786_v24  ;;  %v4270_v61 = vld [vmem:[%s5531_s12 + $0x30] sm:$0xff]  ;;  %v4269_v8 = vld [vmem:[%s5531_s12 + $0x28] sm:$0xff] }
 0x288   :  { %v2194_v21 = vpack.c.bf16 %v2186_v58, %v2182_v18  ;;  %2661 = vmatpush.bf16.msrb.mxu0 %v3733_v17  ;;  %2680 = vmatpush.bf16.msrb.mxu1 %v3797_v16  ;;  %v3853_v46 = vor.u32 %v4232_v14, %v3850_v29  ;;  %v3917_v23 = vor.u32 %v4248_v42, %v3914_v20 }
 0x28a   :  { %2699 = vmatpush.bf16.msra.mxu2 %v3861_v26  ;;  %v4268_v26 = vld [vmem:[%s5531_s12 + $0x20] sm:$0xff] }
 0x28b   :  { %2718 = vmatpush.bf16.msra.mxu3 %v3925_v53 }
 0x28c   :  { %2662 = vmatpush.bf16.msrb.mxu0 %v3725_v19  ;;  %2681 = vmatpush.bf16.msrb.mxu1 %v3789_v31  ;;  %v4266_v31 = vld [vmem:[%s5531_s12 + $0x10] sm:$0xff] }
 0x28e   :  { %2700 = vmatpush.bf16.msra.mxu2 %v3853_v46  ;;  %v4265_v46 = vld [vmem:[%s5531_s12 + $0x8] sm:$0xff] }
 0x28f   :  { %2719 = vmatpush.bf16.msra.mxu3 %v3917_v23  ;;  %v4264_v23 = vld [vmem:[%s5531_s12] sm:$0xff] }
 0x290   :  { %2592 = vmatmul.bf16.gmra.mxu0 %v2191_v43 }
 0x291   :  { %2611 = vmatmul.bf16.gmra.mxu1 %v2192_v27  ;;  %2630 = vmatmul.bf16.gmra.mxu2 %v2193_v48 }
 0x292   :  { %2649 = vmatmul.bf16.gmra.mxu3 %v2194_v21 }
 0x2a0   :  { %2663 = vmatmul.bf16.vlgmr.msrb.gmra.mxu0 %v5372_v52 }
 0x2a1   :  { %2682 = vmatmul.bf16.vlgmr.msrb.gmra.mxu1 %v5374_v2  ;;  %2701 = vmatmul.bf16.vlgmr.msra.gmra.mxu2 %v5376_v13 }
 0x2a2   :  { %2720 = vmatmul.bf16.vlgmr.msra.gmra.mxu3 %v5379_v36 }
 0x2b0   :  { %2668 = vmatmul.bf16.gmra.mxu0 %v2191_v43  ;;  %v4271_v43 = vld [vmem:[%s5531_s12 + $0x38] sm:$0xff] }
 0x2b1   :  { %2687 = vmatmul.bf16.gmra.mxu1 %v2192_v27  ;;  %2706 = vmatmul.bf16.gmra.mxu2 %v2193_v48 }
 0x2b2   :  { %2725 = vmatmul.bf16.gmra.mxu3 %v2194_v21  ;;  %2866 = vmatpush.bf16.msra.mxu0 %v4271_v43  ;;  %v4267_v21 = vld [vmem:[%s5531_s12 + $0x18] sm:$0xff] }
 0x2b6   :  { %2867 = vmatpush.bf16.msra.mxu0 %v4270_v61 }
 0x2ba   :  { %2868 = vmatpush.bf16.msra.mxu0 %v4269_v8  ;;  %v4279_v8 = vld [vmem:[%s5534_s15 + $0x38] sm:$0xff] }
 0x2bb   :  { %3020 = vmatpush.bf16.msra.mxu1 %v4279_v8 }
 0x2be   :  { %2869 = vmatpush.bf16.msra.mxu0 %v4268_v26 }
 0x2c2   :  { %2870 = vmatpush.bf16.msra.mxu0 %v4267_v21 }
 0x2c6   :  { %2871 = vmatpush.bf16.msra.mxu0 %v4266_v31  ;;  %v4277_v31 = vld [vmem:[%s5534_s15 + $0x28] sm:$0xff] }
 0x2ca   :  { %2872 = vmatpush.bf16.msra.mxu0 %v4265_v46 }
 0x2ce   :  { %2873 = vmatpush.bf16.msra.mxu0 %v4264_v23 }
 0x2fd   :  { %v2588_v33 = vpop.f32.mrf.mxu0 }
 0x2fe   :  { %v2607_v32 = vpop.f32.mrf.mxu1 }
 0x2ff   :  { %v2608_v2 = vadd.f32 %v2607_v32, %v2588_v33 }
 0x304   :  { %v2626_v54 = vpop.f32.mrf.mxu2 }
 0x305   :  { %v2645_v40 = vpop.f32.mrf.mxu3  ;;  %v2590_v7 = vpop.f32.mrf.mxu0  ;;  %v2627_v36 = vadd.f32 %v2626_v54, %v2608_v2 }
 0x306   :  { %v2609_v15 = vpop.f32.mrf.mxu1 }
 0x307   :  { %v2610_v25 = vadd.f32 %v2609_v15, %v2590_v7  ;;  %v5401_v62 = vadd.f32 %v2645_v40, %v2627_v36  ;;  %v2739_v15 = vld [vmem:[#allocation13] sm:$0x1] }
 0x309   :  { %v2750_v37 = vmul.f32 %v5401_v62, %v5401_v62 }
 0x30c   :  { %v2628_v1 = vpop.f32.mrf.mxu2 }
 0x30d   :  { %v2647_v60 = vpop.f32.mrf.mxu3  ;;  %v2593_v30 = vpop.f32.mrf.mxu0  ;;  %v2629_v34 = vadd.f32 %v2628_v1, %v2610_v25 }
 0x30e   :  { %v2612_v52 = vpop.f32.mrf.mxu1 }
 0x30f   :  { %v2613_v13 = vadd.f32 %v2612_v52, %v2593_v30  ;;  %v5399_v38 = vadd.f32 %v2647_v60, %v2629_v34  ;;  %v2740_v52 = vld [vmem:[#allocation15] sm:$0x1] }
 0x311   :  { %v2751_v22 = vmul.f32 %v5399_v38, %v5399_v38  ;;  %v2741_v39 = vadd.f32 %v5399_v38, %v5401_v62 }
 0x313   :  { %v2754_v51 = vadd.f32 %v2751_v22, %v2750_v37 }
 0x314   :  { %v2631_v0 = vpop.f32.mrf.mxu2 }
 0x315   :  { %v2632_v12 = vadd.f32 %v2631_v0, %v2613_v13  ;;  %v2650_v41 = vpop.f32.mrf.mxu3  ;;  %v2595_v3 = vpop.f32.mrf.mxu0 }
 0x316   :  { %v2614_v56 = vpop.f32.mrf.mxu1 }
 0x317   :  { %v5403_v59 = vadd.f32 %v2650_v41, %v2632_v12  ;;  %v2615_v50 = vadd.f32 %v2614_v56, %v2595_v3 }
 0x319   :  { %v2752_v44 = vmul.f32 %v5403_v59, %v5403_v59  ;;  %v2742_v49 = vadd.f32 %v2741_v39, %v5403_v59 }
 0x31b   :  { %v2755_v35 = vadd.f32 %v2754_v51, %v2752_v44 }
 0x31c   :  { %v2633_v6 = vpop.f32.mrf.mxu2 }
 0x31d   :  { %v2634_v45 = vadd.f32 %v2633_v6, %v2615_v50  ;;  %v2652_v9 = vpop.f32.mrf.mxu3  ;;  %v5441_v51 = vpop.f32.mrf.mxu0 }
 0x31f   :  { %v2653_v28 = vadd.f32 %v2652_v9, %v2634_v45 }
 0x321   :  { %v2743_v4 = vadd.f32 %v2742_v49, %v2653_v28  ;;  %v2753_v47 = vmul.f32 %v2653_v28, %v2653_v28 }
 0x323   :  { %v2744_v10 = vrot.slane %v2743_v4, 4  ;;  %v2756_v57 = vadd.f32 %v2755_v35, %v2753_v47 }
 0x325   :  { %v2745_v5 = vadd.f32 %v2744_v10, %v2743_v4  ;;  %v2757_v63 = vrot.slane %v2756_v57, 4  ;;  %v5443_v49 = vpop.f32.mrf.mxu0  ;;  %v2721_v46 = vpop.f32.mrf.mxu3 }
 0x327   :  { %v2746_v27 = vrot.slane %v2745_v5, 2  ;;  %v2758_v11 = vadd.f32 %v2757_v63, %v2756_v57 }
 0x329   :  { %v2747_v58 = vadd.f32 %v2746_v27, %v2745_v5  ;;  %v2759_v55 = vrot.slane %v2758_v11, 2 }
 0x32b   :  { %v2748_v24 = vrot.slane %v2747_v58, 1  ;;  %v2760_v18 = vadd.f32 %v2759_v55, %v2758_v11 }
 0x32d   :  { %v2749_v17 = vadd.f32 %v2748_v24, %v2747_v58  ;;  %v2761_v16 = vrot.slane %v2760_v18, 1 }
 0x32f   :  { %v2762_v48 = vadd.f32 %v2761_v16, %v2760_v18  ;;  %v2763_v53 = vmul.f32 0.03125, %v2749_v17  ;;  %v2683_v17 = vpop.f32.mrf.mxu1 }
 0x331   :  { %v2764_v14 = vmul.f32 0.03125, %v2762_v48  ;;  %v2765_v29 = vmul.f32 %v2763_v53, %v2763_v53  ;;  %v4278_v48 = vld [vmem:[%s5534_s15 + $0x30] sm:$0xff] }
 0x332   :  { %3021 = vmatpush.bf16.msra.mxu1 %v4278_v48 }
 0x333   :  { %v2766_v19 = vsub.f32 %v2764_v14, %v2765_v29 }
 0x335   :  { %v2767_v42 = vmax.f32 %v2766_v19, 0.0 }
 0x336   :  { %3022 = vmatpush.bf16.msra.mxu1 %v4277_v31 }
 0x337   :  { %v2768_v20 = vadd.f32 1e-05, %v2767_v42 }
 0x339   :  { %4324 = vrsqrt.f32 %v2768_v20  ;;  %vm2775_vm13 = vweird.f32 %v2768_v20 }
 0x33f   :  { %v4325_v33 = vpop.eup %4324 }
 0x340   :  { %v2770_v32 = vmul.f32 %v4325_v33, %v2768_v20  ;;  %vm2776_vm9 = vweird.f32 %v4325_v33 }
 0x341   :  { %vm2777_vm14 = vmor %vm2775_vm13, %vm2776_vm9 }
 0x342   :  { %v2771_v54 = vmul.f32 %v4325_v33, %v2770_v32  ;;  %v4276_v32 = vld [vmem:[%s5534_s15 + $0x20] sm:$0xff] }
 0x343   :  { %3023 = vmatpush.bf16.msra.mxu1 %v4276_v32 }
 0x344   :  { %v2772_v40 = vmul.f32 0.5, %v2771_v54  ;;  %v2685_v54 = vpop.f32.mrf.mxu1 }
 0x346   :  { %v2773_v7 = vsub.f32 1.5, %v2772_v40 }
 0x348   :  { %v2774_v1 = vmul.f32 %v4325_v33, %v2773_v7 }
 0x34a   :  { %v2778_v60 = vsel %vm2777_vm14, %v4325_v33, %v2774_v1 }
 0x34b   :  { %v2779_v30 = vmul.f32 %v2778_v60, %v2739_v15  ;;  %v4275_v60 = vld [vmem:[%s5534_s15 + $0x18] sm:$0xff] }
 0x34c   :  { %3024 = vmatpush.bf16.msra.mxu1 %v4275_v60 }
 0x34d   :  { %v2780_v25 = vmul.f32 %v2779_v30, %v2763_v53  ;;  %v2783_v2 = vperm.slane %v2779_v30, 0  ;;  %v2702_v53 = vpop.f32.mrf.mxu2 }
 0x34f   :  { %v2781_v34 = vsub.f32 %v2740_v52, %v2780_v25  ;;  %v2788_v13 = vmul.f32 %v2783_v2, %v2653_v28  ;;  %v2785_v36 = vmul.f32 %v2783_v2, %v5401_v62  ;;  %v2786_v12 = vmul.f32 %v2783_v2, %v5399_v38  ;;  %v5445_v62 = vpop.f32.mrf.mxu0  ;;  %v4274_v52 = vld [vmem:[%s5534_s15 + $0x10] sm:$0xff] }
 0x350   :  { %v2787_v41 = vmul.f32 %v2783_v2, %v5403_v59  ;;  %v2723_v2 = vpop.f32.mrf.mxu3  ;;  %3025 = vmatpush.bf16.msra.mxu1 %v4274_v52 }
 0x351   :  { %v2790_v0 = vperm.slane %v2781_v34, 0  ;;  %v4273_v34 = vld [vmem:[%s5534_s15 + $0x8] sm:$0xff] }
 0x353   :  { %v2792_v3 = vadd.f32 %v2790_v0, %v2785_v36  ;;  %v2793_v56 = vadd.f32 %v2790_v0, %v2786_v12  ;;  %v2794_v22 = vadd.f32 %v2790_v0, %v2787_v41  ;;  %v2795_v50 = vadd.f32 %v2790_v0, %v2788_v13  ;;  %v2688_v13 = vpop.f32.mrf.mxu1  ;;  %v4272_v36 = vld [vmem:[%s5534_s15] sm:$0xff] }
 0x354   :  { %3026 = vmatpush.bf16.msra.mxu1 %v4273_v34 }
 0x355   :  { %v2796_v6 = vmax.f32 %v2792_v3, 0.0  ;;  %v2797_v37 = vmax.f32 %v2793_v56, 0.0  ;;  %v2798_v39 = vmax.f32 %v2794_v22, 0.0  ;;  %v2799_v44 = vmax.f32 %v2795_v50, 0.0  ;;  %v2704_v15 = vpop.f32.mrf.mxu2 }
 0x357   :  { %v2800_v45 = vpack.c.bf16 %v2797_v37, %v2796_v6  ;;  %v2801_v9 = vpack.c.bf16 %v2799_v44, %v2798_v39  ;;  %v5447_v38 = vpop.f32.mrf.mxu0  ;;  %v2684_v37 = vadd.f32 %v2683_v17, %v5441_v51  ;;  %v2686_v39 = vadd.f32 %v2685_v54, %v5443_v49  ;;  %v2886_v51 = vld [vmem:[%s5533_s14] sm:$0x1] }
 0x358   :  { %3027 = vmatpush.bf16.msra.mxu1 %v4272_v36  ;;  %v2726_v56 = vpop.f32.mrf.mxu3 }
 0x359   :  { %2874 = vmatmul.bf16.vlgmr.msra.gmra.mxu0 %v2800_v45  ;;  %v2689_v45 = vadd.f32 %v2688_v13, %v5445_v62 }
 0x35b   :  { %v2690_v50 = vpop.f32.mrf.mxu1 }
 0x35d   :  { %v2707_v0 = vpop.f32.mrf.mxu2 }
 0x360   :  { %v2728_v49 = vpop.f32.mrf.mxu3 }
 0x365   :  { %v2709_v44 = vpop.f32.mrf.mxu2 }
 0x369   :  { %2879 = vmatmul.bf16.gmra.mxu0 %v2801_v9  ;;  %v2691_v9 = vadd.f32 %v2690_v50, %v5447_v38 }
 0x3d6   :  { %v5449_v59 = vpop.f32.mrf.mxu0 }
 0x3d7   :  { %v2896_v47 = vmul.f32 %v5449_v59, %v5449_v59 }
 0x3de   :  { %v5451_v28 = vpop.f32.mrf.mxu0 }
 0x3df   :  { %v2897_v4 = vmul.f32 %v5451_v28, %v5451_v28  ;;  %v2887_v43 = vadd.f32 %v5451_v28, %v5449_v59 }
 0x3e1   :  { %v2900_v57 = vadd.f32 %v2897_v4, %v2896_v47  ;;  %v2885_v4 = vld [vmem:[#allocation16] sm:$0x1] }
 0x3e6   :  { %v5453_v35 = vpop.f32.mrf.mxu0 }
 0x3e7   :  { %v2898_v10 = vmul.f32 %v5453_v35, %v5453_v35  ;;  %v2888_v5 = vadd.f32 %v2887_v43, %v5453_v35  ;;  %v2703_v43 = vadd.f32 %v2702_v53, %v2684_v37 }
 0x3e9   :  { %v2901_v61 = vadd.f32 %v2900_v57, %v2898_v10  ;;  %v2705_v10 = vadd.f32 %v2704_v15, %v2686_v39  ;;  %v2708_v57 = vadd.f32 %v2707_v0, %v2689_v45  ;;  %v2722_v62 = vadd.f32 %v2721_v46, %v2703_v43 }
 0x3eb   :  { %v2724_v38 = vadd.f32 %v2723_v2, %v2705_v10  ;;  %v2727_v8 = vadd.f32 %v2726_v56, %v2708_v57 }
 0x3ee   :  { %v5464_v63 = vpop.f32.mrf.mxu0 }
 0x3ef   :  { %v2889_v27 = vadd.f32 %v2888_v5, %v5464_v63  ;;  %v2899_v11 = vmul.f32 %v5464_v63, %v5464_v63  ;;  %v2710_v5 = vadd.f32 %v2709_v44, %v2691_v9 }
 0x3f1   :  { %v2890_v58 = vrot.slane %v2889_v27, 4  ;;  %v2902_v55 = vadd.f32 %v2901_v61, %v2899_v11 }
 0x3f3   :  { %v2891_v24 = vadd.f32 %v2890_v58, %v2889_v27  ;;  %v2903_v18 = vrot.slane %v2902_v55, 4 }
 0x3f5   :  { %v2892_v16 = vrot.slane %v2891_v24, 2  ;;  %v2904_v26 = vadd.f32 %v2903_v18, %v2902_v55  ;;  %v4306_v55 = vld [vmem:[#allocation12] ss:$0 sm:$0xff] }
 0x3f7   :  { %v2893_v14 = vadd.f32 %v2892_v16, %v2891_v24  ;;  %v2905_v29 = vrot.slane %v2904_v26, 2  ;;  %v2729_v24 = vadd.f32 %v2728_v49, %v2710_v5 }
 0x3f9   :  { %v2894_v21 = vrot.slane %v2893_v14, 1  ;;  %v2906_v19 = vadd.f32 %v2905_v29, %v2904_v26  ;;  %v2736_v29 = vadd.f32 %v4306_v55, %v2724_v38 }
 0x3fb   :  { %v2895_v42 = vadd.f32 %v2894_v21, %v2893_v14  ;;  %v2907_v20 = vrot.slane %v2906_v19, 1  ;;  %v2735_v14 = vadd.f32 %v4306_v55, %v2722_v62  ;;  %v2737_v21 = vadd.f32 %v4306_v55, %v2727_v8 }
 0x3fd   :  { %v2908_v23 = vadd.f32 %v2907_v20, %v2906_v19  ;;  %v2909_v33 = vmul.f32 0.03125, %v2895_v42  ;;  %v2738_v19 = vadd.f32 %v4306_v55, %v2729_v24 }
 0x3ff   :  { %v2910_v40 = vmul.f32 0.03125, %v2908_v23  ;;  %v2911_v7 = vmul.f32 %v2909_v33, %v2909_v33 }
 0x401   :  { %v2912_v1 = vsub.f32 %v2910_v40, %v2911_v7 }
 0x403   :  { %v2913_v30 = vmax.f32 %v2912_v1, 0.0 }
 0x405   :  { %v2914_v25 = vadd.f32 1e-05, %v2913_v30 }
 0x407   :  { %4326 = vrsqrt.f32 %v2914_v25  ;;  %vm2921_vm0 = vweird.f32 %v2914_v25 }
 0x40d   :  { %v4327_v12 = vpop.eup %4326 }
 0x40e   :  { %v2916_v41 = vmul.f32 %v4327_v12, %v2914_v25  ;;  %vm2922_vm15 = vweird.f32 %v4327_v12 }
 0x40f   :  { %vm2923_vm1 = vmor %vm2921_vm0, %vm2922_vm15 }
 0x410   :  { %v2917_v3 = vmul.f32 %v4327_v12, %v2916_v41 }
 0x412   :  { %v2918_v22 = vmul.f32 0.5, %v2917_v3 }
 0x414   :  { %v2919_v6 = vsub.f32 1.5, %v2918_v22 }
 0x416   :  { %v2920_v47 = vmul.f32 %v4327_v12, %v2919_v6 }
 0x418   :  { %v2924_v61 = vsel %vm2923_vm1, %v4327_v12, %v2920_v47 }
 0x419   :  { %v2925_v27 = vmul.f32 %v2924_v61, %v2885_v4 }
 0x41b   :  { %v2926_v11 = vmul.f32 %v2925_v27, %v2909_v33  ;;  %v2929_v58 = vperm.slane %v2925_v27, 0 }
 0x41d   :  { %v2927_v18 = vsub.f32 %v2886_v51, %v2926_v11  ;;  %v2931_v17 = vmul.f32 %v2929_v58, %v5449_v59  ;;  %v2932_v16 = vmul.f32 %v2929_v58, %v5451_v28  ;;  %v2934_v26 = vmul.f32 %v2929_v58, %v5464_v63 }
 0x41e   :  { %v2933_v53 = vmul.f32 %v2929_v58, %v5453_v35  ;;  %v4307_v35 = vld [vmem:[%s5535_s16] ss:$0 sm:$0xff] }
 0x41f   :  { %v2936_v48 = vperm.slane %v2927_v18, 0 }
 0x421   :  { %v2941_v31 = vadd.f32 %v2936_v48, %v2934_v26  ;;  %v2938_v42 = vadd.f32 %v2936_v48, %v2931_v17  ;;  %v2939_v20 = vadd.f32 %v2936_v48, %v2932_v16  ;;  %v2940_v46 = vadd.f32 %v2936_v48, %v2933_v53 }
 0x423   :  { %v2945_v23 = vadd.f32 %v2941_v31, %v2738_v19  ;;  %v2942_v33 = vadd.f32 %v2938_v42, %v2735_v14  ;;  %v2943_v32 = vadd.f32 %v2939_v20, %v2736_v29  ;;  %v2944_v54 = vadd.f32 %v2940_v46, %v2737_v21 }
 0x425   :  { %v2946_v59 = vmax.f32 %v2942_v33, 0.0  ;;  %v2947_v40 = vmax.f32 %v2943_v32, 0.0  ;;  %v2948_v28 = vmax.f32 %v2944_v54, 0.0  ;;  %v2949_v7 = vmax.f32 %v2945_v23, 0.0 }
 0x427   :  { %v2950_v63 = vpack.c.bf16 %v2947_v40, %v2946_v59  ;;  %v2951_v15 = vpack.c.bf16 %v2949_v7, %v2948_v28 }
 0x429   :  { %3028 = vmatmul.bf16.vlgmr.msra.gmra.mxu1 %v2950_v63 }
 0x439   :  { %3033 = vmatmul.bf16.gmra.mxu1 %v2951_v15 }
 0x4a6   :  { %v3029_v1 = vpop.f32.mrf.mxu1 }
 0x4a7   :  { %v3030_v60 = vadd.f32 %v4307_v35, %v3029_v1 }
 0x4a9   :  { %3040 = vst.msk [vmem:[%s5558_s20] sm:$0xff] %vm3039_vm2, %v3030_v60 }
 0x4ae   :  { %v3031_v30 = vpop.f32.mrf.mxu1 }
 0x4af   :  { %v3032_v52 = vadd.f32 %v4307_v35, %v3031_v30 }
 0x4b1   :  { %3041 = vst.msk [vmem:[%s5558_s20 + $0x8] sm:$0xff] %vm3039_vm2, %v3032_v52 }
 0x4b6   :  { %v3034_v25 = vpop.f32.mrf.mxu1 }
 0x4b7   :  { %v3035_v2 = vadd.f32 %v4307_v35, %v3034_v25 }
 0x4b9   :  { %3042 = vst.msk [vmem:[%s5558_s20 + $0x10] sm:$0xff] %vm3039_vm2, %v3035_v2 }
 0x4be   :  { %v3036_v34 = vpop.f32.mrf.mxu1 }
 0x4bf   :  { %v3037_v13 = vadd.f32 %v4307_v35, %v3036_v34 }
 0x4c1   :  { %3043 = vst.msk [vmem:[%s5558_s20 + $0x18] sm:$0xff] %vm3039_vm2, %v3037_v13 }
 0x4c2   :  { %3048 = vsyncpa [#allocation3], 1 }
 0x4c3   :  { %3049 = vsyncpa [#allocation5], 1 }
 0x4c4   :  { %3050 = vsyncpa [#allocation8], 1 }
 0x4c5   :  { %3051 = vsyncpa [#allocation11], 1 }
 0x4c6   :  { %3052 = vsyncpa [#allocation14], 1 }
 0x4c7   :  { %3053 = vsyncpa [#allocation17], 1 }

</bundles_post_ra>
